<compile_context>
chip_gen: v5e
topology: v5e:2x2
jax: 0.10.0
libtpu: 0.0.40
codegen_flags: <defaults>
</compile_context>

<pallas_src>
import jax
import jax.numpy as jnp
from jax.experimental import pallas as pl
from jax.experimental.pallas import tpu as pltpu


# ---------------------------------------------------------------------------
# Kernel
# ---------------------------------------------------------------------------
def _sequence_encoder_kernel(x_ref, fused_ref, w_hh_ref, b_ih_ref, b_hh_ref,
                             o_ref):
    """One batch tile of the GRU sequence encoder.

    x_ref     : [Bb, T]     int32 token ids (0 == padding)
    fused_ref : [V, 3*HP]   E @ W_ih^T, each gate zero-padded to HP lanes
    w_hh_ref  : [HP, 3*HP]  W_hh^T, padded the same way
    b_ih_ref  : [1, 3*HP]   input bias (f32, padded)
    b_hh_ref  : [1, 3*HP]   hidden bias (f32, padded)
    o_ref     : [Bb, HP]    final hidden state (lane-padded; zeros for empty rows)
    """
    Bb, T = x_ref.shape
    V = fused_ref.shape[0]
    HP3 = fused_ref.shape[1]
    HP = HP3 // 3
    mxu_dtype = fused_ref.dtype

    x = x_ref[...]                                                    # [Bb, T]
    # PyTorch: l = (x != 0).sum(1); rows with l == 0 must stay exactly zero.
    lengths = jnp.sum((x != 0).astype(jnp.int32), axis=1,
                      keepdims=True)                                  # [Bb, 1]

    # ---- input-side transform: ONE big MXU matmul for the whole tile ------
    # Time-major layout so each timestep reads a contiguous [Bb, 3*HP] slab.
    x_tm = x.T                                                        # [T, Bb]
    vocab_iota = jax.lax.broadcasted_iota(jnp.int32, (T, Bb, V), 2)
    onehot = (x_tm[:, :, None] == vocab_iota).astype(mxu_dtype)
    onehot = onehot.reshape(T * Bb, V)                                # [T*Bb, V]
    gi_all = jnp.dot(onehot, fused_ref[...],
                     preferred_element_type=jnp.float32)              # [T*Bb, 3HP]
    gi_all = gi_all + b_ih_ref[...]                                   # + b_ih (once)

    w_hh = w_hh_ref[...]                                              # [HP, 3HP]
    b_hh = b_hh_ref[...]                                              # [1, 3HP]

    def gru_cell(gi, h, valid):
        gh = jnp.dot(h.astype(mxu_dtype), w_hh,
                     preferred_element_type=jnp.float32) + b_hh       # [Bb, 3HP]
        # PyTorch stacked-gate order: (reset, update, new); b_hn inside r*().
        r = jax.nn.sigmoid(gi[:, 0:HP] + gh[:, 0:HP])
        z = jax.nn.sigmoid(gi[:, HP:2 * HP] + gh[:, HP:2 * HP])
        n = jnp.tanh(gi[:, 2 * HP:3 * HP] + r * gh[:, 2 * HP:3 * HP])
        h_new = (1.0 - z) * n + z * h
        # pack_padded_sequence equivalent: rows with t >= length do not move.
        return jnp.where(valid, h_new, h)

    h = jnp.zeros((Bb, HP), jnp.float32)
    if T <= 32:
        # Static unroll: every gi slab below is a compile-time-constant slice.
        for t in range(T):
            gi = gi_all[t * Bb:(t + 1) * Bb, :]
            h = gru_cell(gi, h, lengths > t)
    else:
        # Long sequences: bounded vreg pressure via fori_loop.
        def body(t, h):
            start = pl.multiple_of(t * Bb, 8) if Bb % 8 == 0 else t * Bb
            gi = jax.lax.dynamic_slice(gi_all, (start, 0), (Bb, HP3))
            return gru_cell(gi, h, lengths > t)
        h = jax.lax.fori_loop(0, T, body, h, unroll=2)

    # Rows with length == 0 were never updated -> exactly zero, matching the
    # PyTorch masked_scatter_ of nonempty rows into a zeros tensor.
    o_ref[...] = h.astype(o_ref.dtype)


# ---------------------------------------------------------------------------
# Wrapper
# ---------------------------------------------------------------------------
def _round_up(x, m):
    return ((x + m - 1) // m) * m


def _pad_gates(w, hs, hp):
    """[K, 3*hs] -> [K, 3*hp]; each gate block zero-padded from hs to hp cols."""
    k = w.shape[0]
    w3 = w.reshape(k, 3, hs)
    out = jnp.zeros((k, 3, hp), w.dtype).at[:, :, :hs].set(w3)
    return out.reshape(k, 3 * hp)


def _pick_block_b(B):
    """Batch tile: large enough to amortize the ~0.35us/grid-step overhead
    (v5e/v6e), but keep >= 2 independent tiles so ("parallel",) can shard
    across v7x's two TensorCores when B is big enough to split."""
    if B <= 8:
        return B
    half = max(8, ((B + 1) // 2) // 8 * 8)
    return min(512, half)


def sequence_encoder_forward(x, embeddings, w_ih, w_hh, b_ih, b_hh,
                             *, block_b=None, mxu_dtype=jnp.bfloat16):
    """JAX/Pallas forward pass of SequenceEncoder.

    x          : [B, T] integer token ids (0 == padding)
    embeddings : [V, es]
    w_ih       : [3*hs, es]   (PyTorch GRU weight_ih_l0 layout, gates r,z,n)
    w_hh       : [3*hs, hs]   (PyTorch GRU weight_hh_l0 layout)
    b_ih, b_hh : [3*hs]
    returns    : [B, hs] float32 — final GRU hidden state per row, zeros for
                 rows with no non-padding tokens.
    """
    B, T = x.shape
    V, es = embeddings.shape
    hs = w_ih.shape[0] // 3
    HP = _round_up(hs, 128)                       # lane-aligned gate width

    if block_b is None:
        block_b = _pick_block_b(B)
    block_b = min(block_b, B)
    if block_b != B and block_b % 8 != 0:
        block_b = max(8, (block_b // 8) * 8)

    x = x.astype(jnp.int32)

    # ---- one-time parameter prep (plain XLA, outside the kernel) ----------
    emb = jnp.asarray(embeddings, jnp.float32)
    w_ih_t = jnp.asarray(w_ih, jnp.float32).T                     # [es, 3hs]
    w_hh_t = jnp.asarray(w_hh, jnp.float32).T                     # [hs, 3hs]

    # Fold the embedding into the input weights: gi = onehot @ (E @ W_ih^T).
    fused = emb @ w_ih_t                                          # [V, 3hs] f32
    fused = _pad_gates(fused, hs, HP).astype(mxu_dtype)           # [V, 3HP]

    w_hh_p = _pad_gates(w_hh_t, hs, HP)                           # [hs, 3HP]
    w_hh_p = jnp.zeros((HP, 3 * HP), jnp.float32).at[:hs, :].set(w_hh_p)
    w_hh_p = w_hh_p.astype(mxu_dtype)                             # [HP, 3HP]

    b_ih_p = _pad_gates(jnp.asarray(b_ih, jnp.float32).reshape(1, 3 * hs),
                        hs, HP)                                   # [1, 3HP] f32
    b_hh_p = _pad_gates(jnp.asarray(b_hh, jnp.float32).reshape(1, 3 * hs),
                        hs, HP)                                   # [1, 3HP] f32

    # VMEM-resident weight footprint (constant index_map => stays resident).
    itemsize = jnp.dtype(mxu_dtype).itemsize
    resident = (V * 3 * HP + HP * 3 * HP) * itemsize + 2 * 3 * HP * 4
    # TODO(synk): if `resident` grows toward v7x's 64 MiB VMEM (huge vocab /
    # hidden), tile the vocab dimension or DMA the fused table in chunks.

    grid = (pl.cdiv(B, block_b),)

    out = pl.pallas_call(
        _sequence_encoder_kernel,
        out_shape=jax.ShapeDtypeStruct((B, HP), jnp.float32),
        grid=grid,
        in_specs=[
            pl.BlockSpec((block_b, T), lambda i: (i, 0)),     # tokens (batch-tiled)
            pl.BlockSpec((V, 3 * HP), lambda i: (0, 0)),      # fused E@W_ih^T (resident)
            pl.BlockSpec((HP, 3 * HP), lambda i: (0, 0)),     # W_hh^T (resident)
            pl.BlockSpec((1, 3 * HP), lambda i: (0, 0)),      # b_ih
            pl.BlockSpec((1, 3 * HP), lambda i: (0, 0)),      # b_hh
        ],
        out_specs=pl.BlockSpec((block_b, HP), lambda i: (i, 0)),
        compiler_params=pltpu.CompilerParams(
            dimension_semantics=("parallel",),                # batch tiles independent
            vmem_limit_bytes=max(32 * 1024 * 1024, 4 * resident),
        ),
    )(x, fused, w_hh_p, b_ih_p, b_hh_p)

    return out[:, :hs]                                        # drop lane padding


class SequenceEncoder:
    """JAX/Pallas port of the PyTorch SequenceEncoder (Embedding + GRU)."""

    def __init__(self, vocab_size: int, embedding_size: int = 32,
                 hidden_size: int = 64, *, key=None,
                 mxu_dtype=jnp.bfloat16):
        if key is None:
            key = jax.random.PRNGKey(0)
        k_emb, k_wih, k_whh, k_bih, k_bhh = jax.random.split(key, 5)
        self.vocab_size = vocab_size
        self.embedding_size = embedding_size
        self.hidden_size = hidden_size
        self.mxu_dtype = mxu_dtype
        s = 0.1
        self.embeddings = s * jax.random.normal(k_emb, (vocab_size, embedding_size), jnp.float32)
        self.w_ih = s * jax.random.normal(k_wih, (3 * hidden_size, embedding_size), jnp.float32)
        self.w_hh = s * jax.random.normal(k_whh, (3 * hidden_size, hidden_size), jnp.float32)
        self.b_ih = s * jax.random.normal(k_bih, (3 * hidden_size,), jnp.float32)
        self.b_hh = s * jax.random.normal(k_bhh, (3 * hidden_size,), jnp.float32)

    @property
    def input_size(self) -> int:
        return self.embedding_size

    @property
    def output_size(self) -> int:
        return self.hidden_size

    def __call__(self, x: jnp.ndarray) -> jnp.ndarray:
        return sequence_encoder_forward(x, self.embeddings, self.w_ih,
                                        self.w_hh, self.b_ih, self.b_hh,
                                        mxu_dtype=self.mxu_dtype)


# ---------------------------------------------------------------------------
# Pure-JAX reference (correctness check only)
# ---------------------------------------------------------------------------
def _reference_forward(x, embeddings, w_ih, w_hh, b_ih, b_hh):
    B, T = x.shape
    hs = w_hh.shape[1]
    lengths = jnp.sum((x != 0).astype(jnp.int32), axis=1)          # [B]
    embs = embeddings[x]                                           # [B, T, es]

    def step(h, inputs):
        x_t, t = inputs
        gi = x_t @ w_ih.T + b_ih
        gh = h @ w_hh.T + b_hh
        r = jax.nn.sigmoid(gi[:, :hs] + gh[:, :hs])
        z = jax.nn.sigmoid(gi[:, hs:2 * hs] + gh[:, hs:2 * hs])
        n = jnp.tanh(gi[:, 2 * hs:] + r * gh[:, 2 * hs:])
        h_new = (1.0 - z) * n + z * h
        h = jnp.where((t < lengths)[:, None], h_new, h)
        return h, None

    h0 = jnp.zeros((B, hs), jnp.float32)
    xs = (jnp.swapaxes(embs, 0, 1), jnp.arange(T))
    h, _ = jax.lax.scan(step, h0, xs)
    return h


# ---------------------------------------------------------------------------
# Demo / smoke test
# ---------------------------------------------------------------------------
if __name__ == "__main__":
    key = jax.random.PRNGKey(0)
    B, T = 8, 12              # batch, max sequence length
    V, es, hs = 40, 32, 64    # vocab (len(field)), embedding_size, hidden_size

    k_x, k_params = jax.random.split(key)

    # Deterministic padded token ids; row 0 is fully empty (length == 0).
    x_full = jax.random.randint(k_x, (B, T), 1, V, dtype=jnp.int32)
    lens = jnp.array([0, 3, T, 5, 1, 7, T, 2], dtype=jnp.int32)
    pos = jnp.arange(T)[None, :]
    x = jnp.where(pos < lens[:, None], x_full, 0)

    enc = SequenceEncoder(vocab_size=V, embedding_size=es, hidden_size=hs,
                          key=k_params)

    y_ref = _reference_forward(x, enc.embeddings, enc.w_ih, enc.w_hh,
                               enc.b_ih, enc.b_hh)

    # f32 MXU operands: tight check against the pure-JAX reference.
    y_f32 = sequence_encoder_forward(x, enc.embeddings, enc.w_ih, enc.w_hh,
                                     enc.b_ih, enc.b_hh,
                                     mxu_dtype=jnp.float32)
    y_f32 = jax.block_until_ready(y_f32)

    # Default fast path: bf16 MXU operands, f32 accumulate / gate math.
    y_bf16 = enc(x)
    y_bf16 = jax.block_until_ready(y_bf16)

    assert y_f32.shape == (B, hs) and y_f32.dtype == jnp.float32
    assert y_bf16.shape == (B, hs) and y_bf16.dtype == jnp.float32
    assert bool(jnp.all(y_f32[0] == 0.0))                  # empty row -> zeros
    assert bool(jnp.all(y_bf16[0] == 0.0))
    assert bool(jnp.allclose(y_f32, y_ref, atol=1e-4, rtol=1e-4))
    assert bool(jnp.allclose(y_bf16, y_ref, atol=2e-2, rtol=2e-2))

    print("KERNEL_OK")
</pallas_src>

<mosaic_0001>
module attributes {stable_mosaic.version = 11 : i64} {
  func.func @_sequence_encoder_kernel(%arg0: i32, %arg1: memref<8x12xi32, #tpu.memory_space<vmem>>, %arg2: memref<40x384xf32, #tpu.memory_space<vmem>>, %arg3: memref<128x384xf32, #tpu.memory_space<vmem>>, %arg4: memref<1x384xf32, #tpu.memory_space<vmem>>, %arg5: memref<1x384xf32, #tpu.memory_space<vmem>>, %arg6: memref<8x128xf32, #tpu.memory_space<vmem>>) attributes {dimension_semantics = [#tpu.dimension_semantics<parallel>], iteration_bounds = array<i64: 1>, scalar_prefetch = 0 : i64, scratch_operands = 0 : i64, tpu.core_type = #tpu.core_type<tc>, window_params = [{transform_indices = @transform_0, window_bounds = array<i64: 8, 12>}, {pipeline_mode = #tpu.pipeline_mode<synchronous>, transform_indices = @transform_1, window_bounds = array<i64: 40, 384>}, {pipeline_mode = #tpu.pipeline_mode<synchronous>, transform_indices = @transform_2, window_bounds = array<i64: 128, 384>}, {pipeline_mode = #tpu.pipeline_mode<synchronous>, transform_indices = @transform_3, window_bounds = array<i64: 1, 384>}, {pipeline_mode = #tpu.pipeline_mode<synchronous>, transform_indices = @transform_4, window_bounds = array<i64: 1, 384>}, {transform_indices = @transform_5, window_bounds = array<i64: 8, 128>}]} {
    %c0 = arith.constant 0 : index
    %c0_0 = arith.constant 0 : index
    %0 = vector.load %arg1[%c0, %c0_0] : memref<8x12xi32, #tpu.memory_space<vmem>>, vector<8x12xi32>
    %c0_i32 = arith.constant 0 : i32
    %1 = vector.broadcast %c0_i32 : i32 to vector<8x12xi32>
    %2 = arith.cmpi ne, %0, %1 : vector<8x12xi32>
    %3 = arith.extui %2 : vector<8x12xi1> to vector<8x12xi32>
    %cst = arith.constant dense<0> : vector<8xi32>
    %4 = vector.multi_reduction <add>, %3, %cst [1] : vector<8x12xi32> to vector<8xi32>
    %5 = vector.shape_cast %4 : vector<8xi32> to vector<8x1xi32>
    %6 = tpu.transpose %0, [1, 0] : vector<8x12xi32> -> vector<12x8xi32>
    %7 = tpu.iota {dimensions = array<i32: 2>} : vector<12x8x40xi32>
    %8 = vector.shape_cast %6 : vector<12x8xi32> to vector<12x8x1xi32>
    %9 = vector.broadcast %8 : vector<12x8x1xi32> to vector<12x8x40xi32>
    %10 = arith.cmpi eq, %9, %7 : vector<12x8x40xi32>
    %11 = arith.extui %10 : vector<12x8x40xi1> to vector<12x8x40xi32>
    %12 = arith.sitofp %11 : vector<12x8x40xi32> to vector<12x8x40xf32>
    %13 = vector.shape_cast %12 : vector<12x8x40xf32> to vector<96x40xf32>
    %c0_1 = arith.constant 0 : index
    %c0_2 = arith.constant 0 : index
    %14 = vector.load %arg2[%c0_1, %c0_2] : memref<40x384xf32, #tpu.memory_space<vmem>>, vector<40x384xf32>
    %cst_3 = arith.constant dense<0.000000e+00> : vector<96x384xf32>
    %15 = tpu.matmul %13, %14, %cst_3 {dimension_numbers = #tpu.dot_dimension_numbers<[1], [0], [0], [1], [0, 0, 1, 1], [], []>} : vector<96x40xf32>, vector<40x384xf32>, vector<96x384xf32> -> vector<96x384xf32>
    %c0_4 = arith.constant 0 : index
    %c0_5 = arith.constant 0 : index
    %16 = vector.load %arg4[%c0_4, %c0_5] : memref<1x384xf32, #tpu.memory_space<vmem>>, vector<1x384xf32>
    %17 = vector.broadcast %16 : vector<1x384xf32> to vector<96x384xf32>
    %18 = arith.addf %15, %17 : vector<96x384xf32>
    %c0_6 = arith.constant 0 : index
    %c0_7 = arith.constant 0 : index
    %19 = vector.load %arg3[%c0_6, %c0_7] : memref<128x384xf32, #tpu.memory_space<vmem>>, vector<128x384xf32>
    %c0_8 = arith.constant 0 : index
    %c0_9 = arith.constant 0 : index
    %20 = vector.load %arg5[%c0_8, %c0_9] : memref<1x384xf32, #tpu.memory_space<vmem>>, vector<1x384xf32>
    %cst_10 = arith.constant 0.000000e+00 : f32
    %21 = vector.broadcast %cst_10 : f32 to vector<8x128xf32>
    %22 = vector.extract_strided_slice %18 {offsets = [0, 0], sizes = [8, 384], strides = [1, 1]} : vector<96x384xf32> to vector<8x384xf32>
    %c0_i32_11 = arith.constant 0 : i32
    %23 = vector.broadcast %c0_i32_11 : i32 to vector<8x1xi32>
    %24 = arith.cmpi sgt, %5, %23 : vector<8x1xi32>
    %cst_12 = arith.constant dense<0.000000e+00> : vector<8x384xf32>
    %25 = tpu.matmul %21, %19, %cst_12 {dimension_numbers = #tpu.dot_dimension_numbers<[1], [0], [0], [1], [0, 0, 1, 1], [], []>} : vector<8x128xf32>, vector<128x384xf32>, vector<8x384xf32> -> vector<8x384xf32>
    %26 = vector.broadcast %20 : vector<1x384xf32> to vector<8x384xf32>
    %27 = arith.addf %25, %26 : vector<8x384xf32>
    %28 = vector.extract_strided_slice %22 {offsets = [0, 0], sizes = [8, 128], strides = [1, 1]} : vector<8x384xf32> to vector<8x128xf32>
    %29 = vector.extract_strided_slice %27 {offsets = [0, 0], sizes = [8, 128], strides = [1, 1]} : vector<8x384xf32> to vector<8x128xf32>
    %30 = arith.addf %28, %29 : vector<8x128xf32>
    %31 = arith.negf %30 : vector<8x128xf32>
    %32 = math.exp %31 : vector<8x128xf32>
    %cst_13 = arith.constant 1.000000e+00 : f32
    %33 = vector.broadcast %cst_13 : f32 to vector<8x128xf32>
    %34 = arith.addf %33, %32 : vector<8x128xf32>
    %35 = arith.divf %33, %34 : vector<8x128xf32>
    %36 = vector.extract_strided_slice %22 {offsets = [0, 128], sizes = [8, 128], strides = [1, 1]} : vector<8x384xf32> to vector<8x128xf32>
    %37 = vector.extract_strided_slice %27 {offsets = [0, 128], sizes = [8, 128], strides = [1, 1]} : vector<8x384xf32> to vector<8x128xf32>
    %38 = arith.addf %36, %37 : vector<8x128xf32>
    %39 = arith.negf %38 : vector<8x128xf32>
    %40 = math.exp %39 : vector<8x128xf32>
    %cst_14 = arith.constant 1.000000e+00 : f32
    %41 = vector.broadcast %cst_14 : f32 to vector<8x128xf32>
    %42 = arith.addf %41, %40 : vector<8x128xf32>
    %43 = arith.divf %41, %42 : vector<8x128xf32>
    %44 = vector.extract_strided_slice %22 {offsets = [0, 256], sizes = [8, 128], strides = [1, 1]} : vector<8x384xf32> to vector<8x128xf32>
    %45 = vector.extract_strided_slice %27 {offsets = [0, 256], sizes = [8, 128], strides = [1, 1]} : vector<8x384xf32> to vector<8x128xf32>
    %46 = arith.mulf %35, %45 : vector<8x128xf32>
    %47 = arith.addf %44, %46 : vector<8x128xf32>
    %48 = math.tanh %47 : vector<8x128xf32>
    %cst_15 = arith.constant 1.000000e+00 : f32
    %49 = vector.broadcast %cst_15 : f32 to vector<8x128xf32>
    %50 = arith.subf %49, %43 : vector<8x128xf32>
    %51 = arith.mulf %50, %48 : vector<8x128xf32>
    %52 = arith.mulf %43, %21 : vector<8x128xf32>
    %53 = arith.addf %51, %52 : vector<8x128xf32>
    %54 = vector.shape_cast %24 : vector<8x1xi1> to vector<8x1xi1>
    %55 = vector.broadcast %54 : vector<8x1xi1> to vector<8x128xi1>
    %56 = arith.select %55, %53, %21 : vector<8x128xi1>, vector<8x128xf32>
    %57 = vector.extract_strided_slice %18 {offsets = [8, 0], sizes = [8, 384], strides = [1, 1]} : vector<96x384xf32> to vector<8x384xf32>
    %c1_i32 = arith.constant 1 : i32
    %58 = vector.broadcast %c1_i32 : i32 to vector<8x1xi32>
    %59 = arith.cmpi sgt, %5, %58 : vector<8x1xi32>
    %cst_16 = arith.constant dense<0.000000e+00> : vector<8x384xf32>
    %60 = tpu.matmul %56, %19, %cst_16 {dimension_numbers = #tpu.dot_dimension_numbers<[1], [0], [0], [1], [0, 0, 1, 1], [], []>} : vector<8x128xf32>, vector<128x384xf32>, vector<8x384xf32> -> vector<8x384xf32>
    %61 = vector.broadcast %20 : vector<1x384xf32> to vector<8x384xf32>
    %62 = arith.addf %60, %61 : vector<8x384xf32>
    %63 = vector.extract_strided_slice %57 {offsets = [0, 0], sizes = [8, 128], strides = [1, 1]} : vector<8x384xf32> to vector<8x128xf32>
    %64 = vector.extract_strided_slice %62 {offsets = [0, 0], sizes = [8, 128], strides = [1, 1]} : vector<8x384xf32> to vector<8x128xf32>
    %65 = arith.addf %63, %64 : vector<8x128xf32>
    %66 = arith.negf %65 : vector<8x128xf32>
    %67 = math.exp %66 : vector<8x128xf32>
    %cst_17 = arith.constant 1.000000e+00 : f32
    %68 = vector.broadcast %cst_17 : f32 to vector<8x128xf32>
    %69 = arith.addf %68, %67 : vector<8x128xf32>
    %70 = arith.divf %68, %69 : vector<8x128xf32>
    %71 = vector.extract_strided_slice %57 {offsets = [0, 128], sizes = [8, 128], strides = [1, 1]} : vector<8x384xf32> to vector<8x128xf32>
    %72 = vector.extract_strided_slice %62 {offsets = [0, 128], sizes = [8, 128], strides = [1, 1]} : vector<8x384xf32> to vector<8x128xf32>
    %73 = arith.addf %71, %72 : vector<8x128xf32>
    %74 = arith.negf %73 : vector<8x128xf32>
    %75 = math.exp %74 : vector<8x128xf32>
    %cst_18 = arith.constant 1.000000e+00 : f32
    %76 = vector.broadcast %cst_18 : f32 to vector<8x128xf32>
    %77 = arith.addf %76, %75 : vector<8x128xf32>
    %78 = arith.divf %76, %77 : vector<8x128xf32>
    %79 = vector.extract_strided_slice %57 {offsets = [0, 256], sizes = [8, 128], strides = [1, 1]} : vector<8x384xf32> to vector<8x128xf32>
    %80 = vector.extract_strided_slice %62 {offsets = [0, 256], sizes = [8, 128], strides = [1, 1]} : vector<8x384xf32> to vector<8x128xf32>
    %81 = arith.mulf %70, %80 : vector<8x128xf32>
    %82 = arith.addf %79, %81 : vector<8x128xf32>
    %83 = math.tanh %82 : vector<8x128xf32>
    %cst_19 = arith.constant 1.000000e+00 : f32
    %84 = vector.broadcast %cst_19 : f32 to vector<8x128xf32>
    %85 = arith.subf %84, %78 : vector<8x128xf32>
    %86 = arith.mulf %85, %83 : vector<8x128xf32>
    %87 = arith.mulf %78, %56 : vector<8x128xf32>
    %88 = arith.addf %86, %87 : vector<8x128xf32>
    %89 = vector.shape_cast %59 : vector<8x1xi1> to vector<8x1xi1>
    %90 = vector.broadcast %89 : vector<8x1xi1> to vector<8x128xi1>
    %91 = arith.select %90, %88, %56 : vector<8x128xi1>, vector<8x128xf32>
    %92 = vector.extract_strided_slice %18 {offsets = [16, 0], sizes = [8, 384], strides = [1, 1]} : vector<96x384xf32> to vector<8x384xf32>
    %c2_i32 = arith.constant 2 : i32
    %93 = vector.broadcast %c2_i32 : i32 to vector<8x1xi32>
    %94 = arith.cmpi sgt, %5, %93 : vector<8x1xi32>
    %cst_20 = arith.constant dense<0.000000e+00> : vector<8x384xf32>
    %95 = tpu.matmul %91, %19, %cst_20 {dimension_numbers = #tpu.dot_dimension_numbers<[1], [0], [0], [1], [0, 0, 1, 1], [], []>} : vector<8x128xf32>, vector<128x384xf32>, vector<8x384xf32> -> vector<8x384xf32>
    %96 = vector.broadcast %20 : vector<1x384xf32> to vector<8x384xf32>
    %97 = arith.addf %95, %96 : vector<8x384xf32>
    %98 = vector.extract_strided_slice %92 {offsets = [0, 0], sizes = [8, 128], strides = [1, 1]} : vector<8x384xf32> to vector<8x128xf32>
    %99 = vector.extract_strided_slice %97 {offsets = [0, 0], sizes = [8, 128], strides = [1, 1]} : vector<8x384xf32> to vector<8x128xf32>
    %100 = arith.addf %98, %99 : vector<8x128xf32>
    %101 = arith.negf %100 : vector<8x128xf32>
    %102 = math.exp %101 : vector<8x128xf32>
    %cst_21 = arith.constant 1.000000e+00 : f32
    %103 = vector.broadcast %cst_21 : f32 to vector<8x128xf32>
    %104 = arith.addf %103, %102 : vector<8x128xf32>
    %105 = arith.divf %103, %104 : vector<8x128xf32>
    %106 = vector.extract_strided_slice %92 {offsets = [0, 128], sizes = [8, 128], strides = [1, 1]} : vector<8x384xf32> to vector<8x128xf32>
    %107 = vector.extract_strided_slice %97 {offsets = [0, 128], sizes = [8, 128], strides = [1, 1]} : vector<8x384xf32> to vector<8x128xf32>
    %108 = arith.addf %106, %107 : vector<8x128xf32>
    %109 = arith.negf %108 : vector<8x128xf32>
    %110 = math.exp %109 : vector<8x128xf32>
    %cst_22 = arith.constant 1.000000e+00 : f32
    %111 = vector.broadcast %cst_22 : f32 to vector<8x128xf32>
    %112 = arith.addf %111, %110 : vector<8x128xf32>
    %113 = arith.divf %111, %112 : vector<8x128xf32>
    %114 = vector.extract_strided_slice %92 {offsets = [0, 256], sizes = [8, 128], strides = [1, 1]} : vector<8x384xf32> to vector<8x128xf32>
    %115 = vector.extract_strided_slice %97 {offsets = [0, 256], sizes = [8, 128], strides = [1, 1]} : vector<8x384xf32> to vector<8x128xf32>
    %116 = arith.mulf %105, %115 : vector<8x128xf32>
    %117 = arith.addf %114, %116 : vector<8x128xf32>
    %118 = math.tanh %117 : vector<8x128xf32>
    %cst_23 = arith.constant 1.000000e+00 : f32
    %119 = vector.broadcast %cst_23 : f32 to vector<8x128xf32>
    %120 = arith.subf %119, %113 : vector<8x128xf32>
    %121 = arith.mulf %120, %118 : vector<8x128xf32>
    %122 = arith.mulf %113, %91 : vector<8x128xf32>
    %123 = arith.addf %121, %122 : vector<8x128xf32>
    %124 = vector.shape_cast %94 : vector<8x1xi1> to vector<8x1xi1>
    %125 = vector.broadcast %124 : vector<8x1xi1> to vector<8x128xi1>
    %126 = arith.select %125, %123, %91 : vector<8x128xi1>, vector<8x128xf32>
    %127 = vector.extract_strided_slice %18 {offsets = [24, 0], sizes = [8, 384], strides = [1, 1]} : vector<96x384xf32> to vector<8x384xf32>
    %c3_i32 = arith.constant 3 : i32
    %128 = vector.broadcast %c3_i32 : i32 to vector<8x1xi32>
    %129 = arith.cmpi sgt, %5, %128 : vector<8x1xi32>
    %cst_24 = arith.constant dense<0.000000e+00> : vector<8x384xf32>
    %130 = tpu.matmul %126, %19, %cst_24 {dimension_numbers = #tpu.dot_dimension_numbers<[1], [0], [0], [1], [0, 0, 1, 1], [], []>} : vector<8x128xf32>, vector<128x384xf32>, vector<8x384xf32> -> vector<8x384xf32>
    %131 = vector.broadcast %20 : vector<1x384xf32> to vector<8x384xf32>
    %132 = arith.addf %130, %131 : vector<8x384xf32>
    %133 = vector.extract_strided_slice %127 {offsets = [0, 0], sizes = [8, 128], strides = [1, 1]} : vector<8x384xf32> to vector<8x128xf32>
    %134 = vector.extract_strided_slice %132 {offsets = [0, 0], sizes = [8, 128], strides = [1, 1]} : vector<8x384xf32> to vector<8x128xf32>
    %135 = arith.addf %133, %134 : vector<8x128xf32>
    %136 = arith.negf %135 : vector<8x128xf32>
    %137 = math.exp %136 : vector<8x128xf32>
    %cst_25 = arith.constant 1.000000e+00 : f32
    %138 = vector.broadcast %cst_25 : f32 to vector<8x128xf32>
    %139 = arith.addf %138, %137 : vector<8x128xf32>
    %140 = arith.divf %138, %139 : vector<8x128xf32>
    %141 = vector.extract_strided_slice %127 {offsets = [0, 128], sizes = [8, 128], strides = [1, 1]} : vector<8x384xf32> to vector<8x128xf32>
    %142 = vector.extract_strided_slice %132 {offsets = [0, 128], sizes = [8, 128], strides = [1, 1]} : vector<8x384xf32> to vector<8x128xf32>
    %143 = arith.addf %141, %142 : vector<8x128xf32>
    %144 = arith.negf %143 : vector<8x128xf32>
    %145 = math.exp %144 : vector<8x128xf32>
    %cst_26 = arith.constant 1.000000e+00 : f32
    %146 = vector.broadcast %cst_26 : f32 to vector<8x128xf32>
    %147 = arith.addf %146, %145 : vector<8x128xf32>
    %148 = arith.divf %146, %147 : vector<8x128xf32>
    %149 = vector.extract_strided_slice %127 {offsets = [0, 256], sizes = [8, 128], strides = [1, 1]} : vector<8x384xf32> to vector<8x128xf32>
    %150 = vector.extract_strided_slice %132 {offsets = [0, 256], sizes = [8, 128], strides = [1, 1]} : vector<8x384xf32> to vector<8x128xf32>
    %151 = arith.mulf %140, %150 : vector<8x128xf32>
    %152 = arith.addf %149, %151 : vector<8x128xf32>
    %153 = math.tanh %152 : vector<8x128xf32>
    %cst_27 = arith.constant 1.000000e+00 : f32
    %154 = vector.broadcast %cst_27 : f32 to vector<8x128xf32>
    %155 = arith.subf %154, %148 : vector<8x128xf32>
    %156 = arith.mulf %155, %153 : vector<8x128xf32>
    %157 = arith.mulf %148, %126 : vector<8x128xf32>
    %158 = arith.addf %156, %157 : vector<8x128xf32>
    %159 = vector.shape_cast %129 : vector<8x1xi1> to vector<8x1xi1>
    %160 = vector.broadcast %159 : vector<8x1xi1> to vector<8x128xi1>
    %161 = arith.select %160, %158, %126 : vector<8x128xi1>, vector<8x128xf32>
    %162 = vector.extract_strided_slice %18 {offsets = [32, 0], sizes = [8, 384], strides = [1, 1]} : vector<96x384xf32> to vector<8x384xf32>
    %c4_i32 = arith.constant 4 : i32
    %163 = vector.broadcast %c4_i32 : i32 to vector<8x1xi32>
    %164 = arith.cmpi sgt, %5, %163 : vector<8x1xi32>
    %cst_28 = arith.constant dense<0.000000e+00> : vector<8x384xf32>
    %165 = tpu.matmul %161, %19, %cst_28 {dimension_numbers = #tpu.dot_dimension_numbers<[1], [0], [0], [1], [0, 0, 1, 1], [], []>} : vector<8x128xf32>, vector<128x384xf32>, vector<8x384xf32> -> vector<8x384xf32>
    %166 = vector.broadcast %20 : vector<1x384xf32> to vector<8x384xf32>
    %167 = arith.addf %165, %166 : vector<8x384xf32>
    %168 = vector.extract_strided_slice %162 {offsets = [0, 0], sizes = [8, 128], strides = [1, 1]} : vector<8x384xf32> to vector<8x128xf32>
    %169 = vector.extract_strided_slice %167 {offsets = [0, 0], sizes = [8, 128], strides = [1, 1]} : vector<8x384xf32> to vector<8x128xf32>
    %170 = arith.addf %168, %169 : vector<8x128xf32>
    %171 = arith.negf %170 : vector<8x128xf32>
    %172 = math.exp %171 : vector<8x128xf32>
    %cst_29 = arith.constant 1.000000e+00 : f32
    %173 = vector.broadcast %cst_29 : f32 to vector<8x128xf32>
    %174 = arith.addf %173, %172 : vector<8x128xf32>
    %175 = arith.divf %173, %174 : vector<8x128xf32>
    %176 = vector.extract_strided_slice %162 {offsets = [0, 128], sizes = [8, 128], strides = [1, 1]} : vector<8x384xf32> to vector<8x128xf32>
    %177 = vector.extract_strided_slice %167 {offsets = [0, 128], sizes = [8, 128], strides = [1, 1]} : vector<8x384xf32> to vector<8x128xf32>
    %178 = arith.addf %176, %177 : vector<8x128xf32>
    %179 = arith.negf %178 : vector<8x128xf32>
    %180 = math.exp %179 : vector<8x128xf32>
    %cst_30 = arith.constant 1.000000e+00 : f32
    %181 = vector.broadcast %cst_30 : f32 to vector<8x128xf32>
    %182 = arith.addf %181, %180 : vector<8x128xf32>
    %183 = arith.divf %181, %182 : vector<8x128xf32>
    %184 = vector.extract_strided_slice %162 {offsets = [0, 256], sizes = [8, 128], strides = [1, 1]} : vector<8x384xf32> to vector<8x128xf32>
    %185 = vector.extract_strided_slice %167 {offsets = [0, 256], sizes = [8, 128], strides = [1, 1]} : vector<8x384xf32> to vector<8x128xf32>
    %186 = arith.mulf %175, %185 : vector<8x128xf32>
    %187 = arith.addf %184, %186 : vector<8x128xf32>
    %188 = math.tanh %187 : vector<8x128xf32>
    %cst_31 = arith.constant 1.000000e+00 : f32
    %189 = vector.broadcast %cst_31 : f32 to vector<8x128xf32>
    %190 = arith.subf %189, %183 : vector<8x128xf32>
    %191 = arith.mulf %190, %188 : vector<8x128xf32>
    %192 = arith.mulf %183, %161 : vector<8x128xf32>
    %193 = arith.addf %191, %192 : vector<8x128xf32>
    %194 = vector.shape_cast %164 : vector<8x1xi1> to vector<8x1xi1>
    %195 = vector.broadcast %194 : vector<8x1xi1> to vector<8x128xi1>
    %196 = arith.select %195, %193, %161 : vector<8x128xi1>, vector<8x128xf32>
    %197 = vector.extract_strided_slice %18 {offsets = [40, 0], sizes = [8, 384], strides = [1, 1]} : vector<96x384xf32> to vector<8x384xf32>
    %c5_i32 = arith.constant 5 : i32
    %198 = vector.broadcast %c5_i32 : i32 to vector<8x1xi32>
    %199 = arith.cmpi sgt, %5, %198 : vector<8x1xi32>
    %cst_32 = arith.constant dense<0.000000e+00> : vector<8x384xf32>
    %200 = tpu.matmul %196, %19, %cst_32 {dimension_numbers = #tpu.dot_dimension_numbers<[1], [0], [0], [1], [0, 0, 1, 1], [], []>} : vector<8x128xf32>, vector<128x384xf32>, vector<8x384xf32> -> vector<8x384xf32>
    %201 = vector.broadcast %20 : vector<1x384xf32> to vector<8x384xf32>
    %202 = arith.addf %200, %201 : vector<8x384xf32>
    %203 = vector.extract_strided_slice %197 {offsets = [0, 0], sizes = [8, 128], strides = [1, 1]} : vector<8x384xf32> to vector<8x128xf32>
    %204 = vector.extract_strided_slice %202 {offsets = [0, 0], sizes = [8, 128], strides = [1, 1]} : vector<8x384xf32> to vector<8x128xf32>
    %205 = arith.addf %203, %204 : vector<8x128xf32>
    %206 = arith.negf %205 : vector<8x128xf32>
    %207 = math.exp %206 : vector<8x128xf32>
    %cst_33 = arith.constant 1.000000e+00 : f32
    %208 = vector.broadcast %cst_33 : f32 to vector<8x128xf32>
    %209 = arith.addf %208, %207 : vector<8x128xf32>
    %210 = arith.divf %208, %209 : vector<8x128xf32>
    %211 = vector.extract_strided_slice %197 {offsets = [0, 128], sizes = [8, 128], strides = [1, 1]} : vector<8x384xf32> to vector<8x128xf32>
    %212 = vector.extract_strided_slice %202 {offsets = [0, 128], sizes = [8, 128], strides = [1, 1]} : vector<8x384xf32> to vector<8x128xf32>
    %213 = arith.addf %211, %212 : vector<8x128xf32>
    %214 = arith.negf %213 : vector<8x128xf32>
    %215 = math.exp %214 : vector<8x128xf32>
    %cst_34 = arith.constant 1.000000e+00 : f32
    %216 = vector.broadcast %cst_34 : f32 to vector<8x128xf32>
    %217 = arith.addf %216, %215 : vector<8x128xf32>
    %218 = arith.divf %216, %217 : vector<8x128xf32>
    %219 = vector.extract_strided_slice %197 {offsets = [0, 256], sizes = [8, 128], strides = [1, 1]} : vector<8x384xf32> to vector<8x128xf32>
    %220 = vector.extract_strided_slice %202 {offsets = [0, 256], sizes = [8, 128], strides = [1, 1]} : vector<8x384xf32> to vector<8x128xf32>
    %221 = arith.mulf %210, %220 : vector<8x128xf32>
    %222 = arith.addf %219, %221 : vector<8x128xf32>
    %223 = math.tanh %222 : vector<8x128xf32>
    %cst_35 = arith.constant 1.000000e+00 : f32
    %224 = vector.broadcast %cst_35 : f32 to vector<8x128xf32>
    %225 = arith.subf %224, %218 : vector<8x128xf32>
    %226 = arith.mulf %225, %223 : vector<8x128xf32>
    %227 = arith.mulf %218, %196 : vector<8x128xf32>
    %228 = arith.addf %226, %227 : vector<8x128xf32>
    %229 = vector.shape_cast %199 : vector<8x1xi1> to vector<8x1xi1>
    %230 = vector.broadcast %229 : vector<8x1xi1> to vector<8x128xi1>
    %231 = arith.select %230, %228, %196 : vector<8x128xi1>, vector<8x128xf32>
    %232 = vector.extract_strided_slice %18 {offsets = [48, 0], sizes = [8, 384], strides = [1, 1]} : vector<96x384xf32> to vector<8x384xf32>
    %c6_i32 = arith.constant 6 : i32
    %233 = vector.broadcast %c6_i32 : i32 to vector<8x1xi32>
    %234 = arith.cmpi sgt, %5, %233 : vector<8x1xi32>
    %cst_36 = arith.constant dense<0.000000e+00> : vector<8x384xf32>
    %235 = tpu.matmul %231, %19, %cst_36 {dimension_numbers = #tpu.dot_dimension_numbers<[1], [0], [0], [1], [0, 0, 1, 1], [], []>} : vector<8x128xf32>, vector<128x384xf32>, vector<8x384xf32> -> vector<8x384xf32>
    %236 = vector.broadcast %20 : vector<1x384xf32> to vector<8x384xf32>
    %237 = arith.addf %235, %236 : vector<8x384xf32>
    %238 = vector.extract_strided_slice %232 {offsets = [0, 0], sizes = [8, 128], strides = [1, 1]} : vector<8x384xf32> to vector<8x128xf32>
    %239 = vector.extract_strided_slice %237 {offsets = [0, 0], sizes = [8, 128], strides = [1, 1]} : vector<8x384xf32> to vector<8x128xf32>
    %240 = arith.addf %238, %239 : vector<8x128xf32>
    %241 = arith.negf %240 : vector<8x128xf32>
    %242 = math.exp %241 : vector<8x128xf32>
    %cst_37 = arith.constant 1.000000e+00 : f32
    %243 = vector.broadcast %cst_37 : f32 to vector<8x128xf32>
    %244 = arith.addf %243, %242 : vector<8x128xf32>
    %245 = arith.divf %243, %244 : vector<8x128xf32>
    %246 = vector.extract_strided_slice %232 {offsets = [0, 128], sizes = [8, 128], strides = [1, 1]} : vector<8x384xf32> to vector<8x128xf32>
    %247 = vector.extract_strided_slice %237 {offsets = [0, 128], sizes = [8, 128], strides = [1, 1]} : vector<8x384xf32> to vector<8x128xf32>
    %248 = arith.addf %246, %247 : vector<8x128xf32>
    %249 = arith.negf %248 : vector<8x128xf32>
    %250 = math.exp %249 : vector<8x128xf32>
    %cst_38 = arith.constant 1.000000e+00 : f32
    %251 = vector.broadcast %cst_38 : f32 to vector<8x128xf32>
    %252 = arith.addf %251, %250 : vector<8x128xf32>
    %253 = arith.divf %251, %252 : vector<8x128xf32>
    %254 = vector.extract_strided_slice %232 {offsets = [0, 256], sizes = [8, 128], strides = [1, 1]} : vector<8x384xf32> to vector<8x128xf32>
    %255 = vector.extract_strided_slice %237 {offsets = [0, 256], sizes = [8, 128], strides = [1, 1]} : vector<8x384xf32> to vector<8x128xf32>
    %256 = arith.mulf %245, %255 : vector<8x128xf32>
    %257 = arith.addf %254, %256 : vector<8x128xf32>
    %258 = math.tanh %257 : vector<8x128xf32>
    %cst_39 = arith.constant 1.000000e+00 : f32
    %259 = vector.broadcast %cst_39 : f32 to vector<8x128xf32>
    %260 = arith.subf %259, %253 : vector<8x128xf32>
    %261 = arith.mulf %260, %258 : vector<8x128xf32>
    %262 = arith.mulf %253, %231 : vector<8x128xf32>
    %263 = arith.addf %261, %262 : vector<8x128xf32>
    %264 = vector.shape_cast %234 : vector<8x1xi1> to vector<8x1xi1>
    %265 = vector.broadcast %264 : vector<8x1xi1> to vector<8x128xi1>
    %266 = arith.select %265, %263, %231 : vector<8x128xi1>, vector<8x128xf32>
    %267 = vector.extract_strided_slice %18 {offsets = [56, 0], sizes = [8, 384], strides = [1, 1]} : vector<96x384xf32> to vector<8x384xf32>
    %c7_i32 = arith.constant 7 : i32
    %268 = vector.broadcast %c7_i32 : i32 to vector<8x1xi32>
    %269 = arith.cmpi sgt, %5, %268 : vector<8x1xi32>
    %cst_40 = arith.constant dense<0.000000e+00> : vector<8x384xf32>
    %270 = tpu.matmul %266, %19, %cst_40 {dimension_numbers = #tpu.dot_dimension_numbers<[1], [0], [0], [1], [0, 0, 1, 1], [], []>} : vector<8x128xf32>, vector<128x384xf32>, vector<8x384xf32> -> vector<8x384xf32>
    %271 = vector.broadcast %20 : vector<1x384xf32> to vector<8x384xf32>
    %272 = arith.addf %270, %271 : vector<8x384xf32>
    %273 = vector.extract_strided_slice %267 {offsets = [0, 0], sizes = [8, 128], strides = [1, 1]} : vector<8x384xf32> to vector<8x128xf32>
    %274 = vector.extract_strided_slice %272 {offsets = [0, 0], sizes = [8, 128], strides = [1, 1]} : vector<8x384xf32> to vector<8x128xf32>
    %275 = arith.addf %273, %274 : vector<8x128xf32>
    %276 = arith.negf %275 : vector<8x128xf32>
    %277 = math.exp %276 : vector<8x128xf32>
    %cst_41 = arith.constant 1.000000e+00 : f32
    %278 = vector.broadcast %cst_41 : f32 to vector<8x128xf32>
    %279 = arith.addf %278, %277 : vector<8x128xf32>
    %280 = arith.divf %278, %279 : vector<8x128xf32>
    %281 = vector.extract_strided_slice %267 {offsets = [0, 128], sizes = [8, 128], strides = [1, 1]} : vector<8x384xf32> to vector<8x128xf32>
    %282 = vector.extract_strided_slice %272 {offsets = [0, 128], sizes = [8, 128], strides = [1, 1]} : vector<8x384xf32> to vector<8x128xf32>
    %283 = arith.addf %281, %282 : vector<8x128xf32>
    %284 = arith.negf %283 : vector<8x128xf32>
    %285 = math.exp %284 : vector<8x128xf32>
    %cst_42 = arith.constant 1.000000e+00 : f32
    %286 = vector.broadcast %cst_42 : f32 to vector<8x128xf32>
    %287 = arith.addf %286, %285 : vector<8x128xf32>
    %288 = arith.divf %286, %287 : vector<8x128xf32>
    %289 = vector.extract_strided_slice %267 {offsets = [0, 256], sizes = [8, 128], strides = [1, 1]} : vector<8x384xf32> to vector<8x128xf32>
    %290 = vector.extract_strided_slice %272 {offsets = [0, 256], sizes = [8, 128], strides = [1, 1]} : vector<8x384xf32> to vector<8x128xf32>
    %291 = arith.mulf %280, %290 : vector<8x128xf32>
    %292 = arith.addf %289, %291 : vector<8x128xf32>
    %293 = math.tanh %292 : vector<8x128xf32>
    %cst_43 = arith.constant 1.000000e+00 : f32
    %294 = vector.broadcast %cst_43 : f32 to vector<8x128xf32>
    %295 = arith.subf %294, %288 : vector<8x128xf32>
    %296 = arith.mulf %295, %293 : vector<8x128xf32>
    %297 = arith.mulf %288, %266 : vector<8x128xf32>
    %298 = arith.addf %296, %297 : vector<8x128xf32>
    %299 = vector.shape_cast %269 : vector<8x1xi1> to vector<8x1xi1>
    %300 = vector.broadcast %299 : vector<8x1xi1> to vector<8x128xi1>
    %301 = arith.select %300, %298, %266 : vector<8x128xi1>, vector<8x128xf32>
    %302 = vector.extract_strided_slice %18 {offsets = [64, 0], sizes = [8, 384], strides = [1, 1]} : vector<96x384xf32> to vector<8x384xf32>
    %c8_i32 = arith.constant 8 : i32
    %303 = vector.broadcast %c8_i32 : i32 to vector<8x1xi32>
    %304 = arith.cmpi sgt, %5, %303 : vector<8x1xi32>
    %cst_44 = arith.constant dense<0.000000e+00> : vector<8x384xf32>
    %305 = tpu.matmul %301, %19, %cst_44 {dimension_numbers = #tpu.dot_dimension_numbers<[1], [0], [0], [1], [0, 0, 1, 1], [], []>} : vector<8x128xf32>, vector<128x384xf32>, vector<8x384xf32> -> vector<8x384xf32>
    %306 = vector.broadcast %20 : vector<1x384xf32> to vector<8x384xf32>
    %307 = arith.addf %305, %306 : vector<8x384xf32>
    %308 = vector.extract_strided_slice %302 {offsets = [0, 0], sizes = [8, 128], strides = [1, 1]} : vector<8x384xf32> to vector<8x128xf32>
    %309 = vector.extract_strided_slice %307 {offsets = [0, 0], sizes = [8, 128], strides = [1, 1]} : vector<8x384xf32> to vector<8x128xf32>
    %310 = arith.addf %308, %309 : vector<8x128xf32>
    %311 = arith.negf %310 : vector<8x128xf32>
    %312 = math.exp %311 : vector<8x128xf32>
    %cst_45 = arith.constant 1.000000e+00 : f32
    %313 = vector.broadcast %cst_45 : f32 to vector<8x128xf32>
    %314 = arith.addf %313, %312 : vector<8x128xf32>
    %315 = arith.divf %313, %314 : vector<8x128xf32>
    %316 = vector.extract_strided_slice %302 {offsets = [0, 128], sizes = [8, 128], strides = [1, 1]} : vector<8x384xf32> to vector<8x128xf32>
    %317 = vector.extract_strided_slice %307 {offsets = [0, 128], sizes = [8, 128], strides = [1, 1]} : vector<8x384xf32> to vector<8x128xf32>
    %318 = arith.addf %316, %317 : vector<8x128xf32>
    %319 = arith.negf %318 : vector<8x128xf32>
    %320 = math.exp %319 : vector<8x128xf32>
    %cst_46 = arith.constant 1.000000e+00 : f32
    %321 = vector.broadcast %cst_46 : f32 to vector<8x128xf32>
    %322 = arith.addf %321, %320 : vector<8x128xf32>
    %323 = arith.divf %321, %322 : vector<8x128xf32>
    %324 = vector.extract_strided_slice %302 {offsets = [0, 256], sizes = [8, 128], strides = [1, 1]} : vector<8x384xf32> to vector<8x128xf32>
    %325 = vector.extract_strided_slice %307 {offsets = [0, 256], sizes = [8, 128], strides = [1, 1]} : vector<8x384xf32> to vector<8x128xf32>
    %326 = arith.mulf %315, %325 : vector<8x128xf32>
    %327 = arith.addf %324, %326 : vector<8x128xf32>
    %328 = math.tanh %327 : vector<8x128xf32>
    %cst_47 = arith.constant 1.000000e+00 : f32
    %329 = vector.broadcast %cst_47 : f32 to vector<8x128xf32>
    %330 = arith.subf %329, %323 : vector<8x128xf32>
    %331 = arith.mulf %330, %328 : vector<8x128xf32>
    %332 = arith.mulf %323, %301 : vector<8x128xf32>
    %333 = arith.addf %331, %332 : vector<8x128xf32>
    %334 = vector.shape_cast %304 : vector<8x1xi1> to vector<8x1xi1>
    %335 = vector.broadcast %334 : vector<8x1xi1> to vector<8x128xi1>
    %336 = arith.select %335, %333, %301 : vector<8x128xi1>, vector<8x128xf32>
    %337 = vector.extract_strided_slice %18 {offsets = [72, 0], sizes = [8, 384], strides = [1, 1]} : vector<96x384xf32> to vector<8x384xf32>
    %c9_i32 = arith.constant 9 : i32
    %338 = vector.broadcast %c9_i32 : i32 to vector<8x1xi32>
    %339 = arith.cmpi sgt, %5, %338 : vector<8x1xi32>
    %cst_48 = arith.constant dense<0.000000e+00> : vector<8x384xf32>
    %340 = tpu.matmul %336, %19, %cst_48 {dimension_numbers = #tpu.dot_dimension_numbers<[1], [0], [0], [1], [0, 0, 1, 1], [], []>} : vector<8x128xf32>, vector<128x384xf32>, vector<8x384xf32> -> vector<8x384xf32>
    %341 = vector.broadcast %20 : vector<1x384xf32> to vector<8x384xf32>
    %342 = arith.addf %340, %341 : vector<8x384xf32>
    %343 = vector.extract_strided_slice %337 {offsets = [0, 0], sizes = [8, 128], strides = [1, 1]} : vector<8x384xf32> to vector<8x128xf32>
    %344 = vector.extract_strided_slice %342 {offsets = [0, 0], sizes = [8, 128], strides = [1, 1]} : vector<8x384xf32> to vector<8x128xf32>
    %345 = arith.addf %343, %344 : vector<8x128xf32>
    %346 = arith.negf %345 : vector<8x128xf32>
    %347 = math.exp %346 : vector<8x128xf32>
    %cst_49 = arith.constant 1.000000e+00 : f32
    %348 = vector.broadcast %cst_49 : f32 to vector<8x128xf32>
    %349 = arith.addf %348, %347 : vector<8x128xf32>
    %350 = arith.divf %348, %349 : vector<8x128xf32>
    %351 = vector.extract_strided_slice %337 {offsets = [0, 128], sizes = [8, 128], strides = [1, 1]} : vector<8x384xf32> to vector<8x128xf32>
    %352 = vector.extract_strided_slice %342 {offsets = [0, 128], sizes = [8, 128], strides = [1, 1]} : vector<8x384xf32> to vector<8x128xf32>
    %353 = arith.addf %351, %352 : vector<8x128xf32>
    %354 = arith.negf %353 : vector<8x128xf32>
    %355 = math.exp %354 : vector<8x128xf32>
    %cst_50 = arith.constant 1.000000e+00 : f32
    %356 = vector.broadcast %cst_50 : f32 to vector<8x128xf32>
    %357 = arith.addf %356, %355 : vector<8x128xf32>
    %358 = arith.divf %356, %357 : vector<8x128xf32>
    %359 = vector.extract_strided_slice %337 {offsets = [0, 256], sizes = [8, 128], strides = [1, 1]} : vector<8x384xf32> to vector<8x128xf32>
    %360 = vector.extract_strided_slice %342 {offsets = [0, 256], sizes = [8, 128], strides = [1, 1]} : vector<8x384xf32> to vector<8x128xf32>
    %361 = arith.mulf %350, %360 : vector<8x128xf32>
    %362 = arith.addf %359, %361 : vector<8x128xf32>
    %363 = math.tanh %362 : vector<8x128xf32>
    %cst_51 = arith.constant 1.000000e+00 : f32
    %364 = vector.broadcast %cst_51 : f32 to vector<8x128xf32>
    %365 = arith.subf %364, %358 : vector<8x128xf32>
    %366 = arith.mulf %365, %363 : vector<8x128xf32>
    %367 = arith.mulf %358, %336 : vector<8x128xf32>
    %368 = arith.addf %366, %367 : vector<8x128xf32>
    %369 = vector.shape_cast %339 : vector<8x1xi1> to vector<8x1xi1>
    %370 = vector.broadcast %369 : vector<8x1xi1> to vector<8x128xi1>
    %371 = arith.select %370, %368, %336 : vector<8x128xi1>, vector<8x128xf32>
    %372 = vector.extract_strided_slice %18 {offsets = [80, 0], sizes = [8, 384], strides = [1, 1]} : vector<96x384xf32> to vector<8x384xf32>
    %c10_i32 = arith.constant 10 : i32
    %373 = vector.broadcast %c10_i32 : i32 to vector<8x1xi32>
    %374 = arith.cmpi sgt, %5, %373 : vector<8x1xi32>
    %cst_52 = arith.constant dense<0.000000e+00> : vector<8x384xf32>
    %375 = tpu.matmul %371, %19, %cst_52 {dimension_numbers = #tpu.dot_dimension_numbers<[1], [0], [0], [1], [0, 0, 1, 1], [], []>} : vector<8x128xf32>, vector<128x384xf32>, vector<8x384xf32> -> vector<8x384xf32>
    %376 = vector.broadcast %20 : vector<1x384xf32> to vector<8x384xf32>
    %377 = arith.addf %375, %376 : vector<8x384xf32>
    %378 = vector.extract_strided_slice %372 {offsets = [0, 0], sizes = [8, 128], strides = [1, 1]} : vector<8x384xf32> to vector<8x128xf32>
    %379 = vector.extract_strided_slice %377 {offsets = [0, 0], sizes = [8, 128], strides = [1, 1]} : vector<8x384xf32> to vector<8x128xf32>
    %380 = arith.addf %378, %379 : vector<8x128xf32>
    %381 = arith.negf %380 : vector<8x128xf32>
    %382 = math.exp %381 : vector<8x128xf32>
    %cst_53 = arith.constant 1.000000e+00 : f32
    %383 = vector.broadcast %cst_53 : f32 to vector<8x128xf32>
    %384 = arith.addf %383, %382 : vector<8x128xf32>
    %385 = arith.divf %383, %384 : vector<8x128xf32>
    %386 = vector.extract_strided_slice %372 {offsets = [0, 128], sizes = [8, 128], strides = [1, 1]} : vector<8x384xf32> to vector<8x128xf32>
    %387 = vector.extract_strided_slice %377 {offsets = [0, 128], sizes = [8, 128], strides = [1, 1]} : vector<8x384xf32> to vector<8x128xf32>
    %388 = arith.addf %386, %387 : vector<8x128xf32>
    %389 = arith.negf %388 : vector<8x128xf32>
    %390 = math.exp %389 : vector<8x128xf32>
    %cst_54 = arith.constant 1.000000e+00 : f32
    %391 = vector.broadcast %cst_54 : f32 to vector<8x128xf32>
    %392 = arith.addf %391, %390 : vector<8x128xf32>
    %393 = arith.divf %391, %392 : vector<8x128xf32>
    %394 = vector.extract_strided_slice %372 {offsets = [0, 256], sizes = [8, 128], strides = [1, 1]} : vector<8x384xf32> to vector<8x128xf32>
    %395 = vector.extract_strided_slice %377 {offsets = [0, 256], sizes = [8, 128], strides = [1, 1]} : vector<8x384xf32> to vector<8x128xf32>
    %396 = arith.mulf %385, %395 : vector<8x128xf32>
    %397 = arith.addf %394, %396 : vector<8x128xf32>
    %398 = math.tanh %397 : vector<8x128xf32>
    %cst_55 = arith.constant 1.000000e+00 : f32
    %399 = vector.broadcast %cst_55 : f32 to vector<8x128xf32>
    %400 = arith.subf %399, %393 : vector<8x128xf32>
    %401 = arith.mulf %400, %398 : vector<8x128xf32>
    %402 = arith.mulf %393, %371 : vector<8x128xf32>
    %403 = arith.addf %401, %402 : vector<8x128xf32>
    %404 = vector.shape_cast %374 : vector<8x1xi1> to vector<8x1xi1>
    %405 = vector.broadcast %404 : vector<8x1xi1> to vector<8x128xi1>
    %406 = arith.select %405, %403, %371 : vector<8x128xi1>, vector<8x128xf32>
    %407 = vector.extract_strided_slice %18 {offsets = [88, 0], sizes = [8, 384], strides = [1, 1]} : vector<96x384xf32> to vector<8x384xf32>
    %c11_i32 = arith.constant 11 : i32
    %408 = vector.broadcast %c11_i32 : i32 to vector<8x1xi32>
    %409 = arith.cmpi sgt, %5, %408 : vector<8x1xi32>
    %cst_56 = arith.constant dense<0.000000e+00> : vector<8x384xf32>
    %410 = tpu.matmul %406, %19, %cst_56 {dimension_numbers = #tpu.dot_dimension_numbers<[1], [0], [0], [1], [0, 0, 1, 1], [], []>} : vector<8x128xf32>, vector<128x384xf32>, vector<8x384xf32> -> vector<8x384xf32>
    %411 = vector.broadcast %20 : vector<1x384xf32> to vector<8x384xf32>
    %412 = arith.addf %410, %411 : vector<8x384xf32>
    %413 = vector.extract_strided_slice %407 {offsets = [0, 0], sizes = [8, 128], strides = [1, 1]} : vector<8x384xf32> to vector<8x128xf32>
    %414 = vector.extract_strided_slice %412 {offsets = [0, 0], sizes = [8, 128], strides = [1, 1]} : vector<8x384xf32> to vector<8x128xf32>
    %415 = arith.addf %413, %414 : vector<8x128xf32>
    %416 = arith.negf %415 : vector<8x128xf32>
    %417 = math.exp %416 : vector<8x128xf32>
    %cst_57 = arith.constant 1.000000e+00 : f32
    %418 = vector.broadcast %cst_57 : f32 to vector<8x128xf32>
    %419 = arith.addf %418, %417 : vector<8x128xf32>
    %420 = arith.divf %418, %419 : vector<8x128xf32>
    %421 = vector.extract_strided_slice %407 {offsets = [0, 128], sizes = [8, 128], strides = [1, 1]} : vector<8x384xf32> to vector<8x128xf32>
    %422 = vector.extract_strided_slice %412 {offsets = [0, 128], sizes = [8, 128], strides = [1, 1]} : vector<8x384xf32> to vector<8x128xf32>
    %423 = arith.addf %421, %422 : vector<8x128xf32>
    %424 = arith.negf %423 : vector<8x128xf32>
    %425 = math.exp %424 : vector<8x128xf32>
    %cst_58 = arith.constant 1.000000e+00 : f32
    %426 = vector.broadcast %cst_58 : f32 to vector<8x128xf32>
    %427 = arith.addf %426, %425 : vector<8x128xf32>
    %428 = arith.divf %426, %427 : vector<8x128xf32>
    %429 = vector.extract_strided_slice %407 {offsets = [0, 256], sizes = [8, 128], strides = [1, 1]} : vector<8x384xf32> to vector<8x128xf32>
    %430 = vector.extract_strided_slice %412 {offsets = [0, 256], sizes = [8, 128], strides = [1, 1]} : vector<8x384xf32> to vector<8x128xf32>
    %431 = arith.mulf %420, %430 : vector<8x128xf32>
    %432 = arith.addf %429, %431 : vector<8x128xf32>
    %433 = math.tanh %432 : vector<8x128xf32>
    %cst_59 = arith.constant 1.000000e+00 : f32
    %434 = vector.broadcast %cst_59 : f32 to vector<8x128xf32>
    %435 = arith.subf %434, %428 : vector<8x128xf32>
    %436 = arith.mulf %435, %433 : vector<8x128xf32>
    %437 = arith.mulf %428, %406 : vector<8x128xf32>
    %438 = arith.addf %436, %437 : vector<8x128xf32>
    %439 = vector.shape_cast %409 : vector<8x1xi1> to vector<8x1xi1>
    %440 = vector.broadcast %439 : vector<8x1xi1> to vector<8x128xi1>
    %441 = arith.select %440, %438, %406 : vector<8x128xi1>, vector<8x128xf32>
    %c0_60 = arith.constant 0 : index
    %c0_61 = arith.constant 0 : index
    %442 = vector.load %arg6[%c0_60, %c0_61] : memref<8x128xf32, #tpu.memory_space<vmem>>, vector<8x128xf32>
    tpu.vector_store %arg6[%c0_60, %c0_61], %441 {strides = array<i32>} : memref<8x128xf32, #tpu.memory_space<vmem>>, vector<8x128xf32>,
    return
  }
  func.func @transform_0(%arg0: i32) -> (i32, i32) {
    %c0_i32 = arith.constant 0 : i32
    %c0_i32_0 = arith.constant 0 : i32
    return %arg0, %c0_i32 : i32, i32
  }
  func.func @transform_1(%arg0: i32) -> (i32, i32) {
    %c0_i32 = arith.constant 0 : i32
    %c0_i32_0 = arith.constant 0 : i32
    %c0_i32_1 = arith.constant 0 : i32
    return %c0_i32, %c0_i32_0 : i32, i32
  }
  func.func @transform_2(%arg0: i32) -> (i32, i32) {
    %c0_i32 = arith.constant 0 : i32
    %c0_i32_0 = arith.constant 0 : i32
    %c0_i32_1 = arith.constant 0 : i32
    return %c0_i32, %c0_i32_0 : i32, i32
  }
  func.func @transform_3(%arg0: i32) -> (i32, i32) {
    %c0_i32 = arith.constant 0 : i32
    %c0_i32_0 = arith.constant 0 : i32
    %c0_i32_1 = arith.constant 0 : i32
    return %c0_i32, %c0_i32_0 : i32, i32
  }
  func.func @transform_4(%arg0: i32) -> (i32, i32) {
    %c0_i32 = arith.constant 0 : i32
    %c0_i32_0 = arith.constant 0 : i32
    %c0_i32_1 = arith.constant 0 : i32
    return %c0_i32, %c0_i32_0 : i32, i32
  }
  func.func @transform_5(%arg0: i32) -> (i32, i32) {
    %c0_i32 = arith.constant 0 : i32
    %c0_i32_0 = arith.constant 0 : i32
    return %arg0, %c0_i32 : i32, i32
  }
}

</mosaic_0001>

<bundles_post_ra>
// kernel: tpu_custom_call.1
= control target key start
LH: loop header
LB: loop body
LE: loop exit
PB: predicated region body
PF: predicated region fallthrough
CT: control target
= control target key end

     0   :  { %10 = vsyncpa [#allocation3], 0  ;;  %s3601_s0 = inlined_call_operand.hbm [shape: s32[8,12], index: 0, kind: input, shape index: {}]   ;;  %s3602_s1 = inlined_call_operand.hbm [shape: f32[40,384], index: 1, kind: input, shape index: {}]   ;;  %s3603_s2 = inlined_call_operand.hbm [shape: f32[128,384], index: 2, kind: input, shape index: {}]   ;;  %s3604_s3 = inlined_call_operand.hbm [shape: f32[1,384], index: 3, kind: input, shape index: {}]   ;;  %s3605_s4 = inlined_call_operand.vmem [shape: f32[1,384], index: 4, kind: input, shape index: {}]   ;;  %s3606_s5 = inlined_call_operand.hbm [shape: f32[8,128], index: 5, kind: output, shape index: {}]  }
   0x1   :  { %11 = vsyncpa [#allocation6], 0 }
   0x2   :  { %12 = vsyncpa [#allocation9], 0  ;;  %s29_s20 = sshll.u32 %s3602_s1, 4  ;;  %s30_s20 = int_to_ptr.hbm [resolvable:$true] %s29_s20 }
   0x3   :  { %13 = vsyncpa [#allocation4], 0  ;;  %s2314_s21 = smov [#allocation5]   ;;  %s19_s25 = sshll.u32 %s3601_s0, 4  ;;  %s20_s25 = int_to_ptr.hbm [resolvable:$true] %s19_s25 }
   0x4   :  { %s31_s22 = sshll.u32 %s2314_s21, 4  ;;  %s2315_s26 = smov 384   ;;  %s32_s22 = int_to_ptr.vmem [resolvable:$true] %s31_s22 }
   0x5   :  { %s2316_s27 = smov 24   ;;  %s2317_s28 = smov [#allocation2]  }
   0x6   :  { %37 = dma.hbm_to_vmem [thread:$0]  %s30_s20, 1920, %s32_s22, [#allocation6], %s2315_s26, %s2315_s26, %s2316_s27  }
   0x7   :  { %s21_s29 = sshll.u32 %s2317_s28, 4  ;;  %s42_s7 = sshll.u32 %s3603_s2, 4  ;;  %s22_s29 = int_to_ptr.vmem [resolvable:$true] %s21_s29  ;;  %s43_s7 = int_to_ptr.hbm [resolvable:$true] %s42_s7 }
   0x8   :  { %24 = dma.hbm_to_vmem [thread:$0]  %s20_s25, 128, %s22_s29, [#allocation3]  }
   0x9   :  { %s56_s9 = sshll.u32 %s3604_s3, 4  ;;  %s2318_s10 = smov [#allocation7]   ;;  %s57_s9 = int_to_ptr.hbm [resolvable:$true] %s56_s9 }
   0xa   :  { %s44_s11 = sshll.u32 %s2318_s10, 4  ;;  %s2319_s0 = smov [#allocation8]   ;;  %s45_s11 = int_to_ptr.vmem [resolvable:$true] %s44_s11 }
   0xb   :  { %50 = dma.hbm_to_vmem [thread:$0]  %s43_s7, 6144, %s45_s11, [#allocation6], %s2315_s26, %s2315_s26, %s2316_s27  }
   0xc   :  { %s58_s12 = sshll.u32 %s2319_s0, 4  ;;  %s59_s12 = int_to_ptr.vmem [resolvable:$true] %s58_s12 }
   0xd   :  { %61 = dma.hbm_to_vmem [thread:$0]  %s57_s9, 48, %s59_s12, [#allocation9]  }
   0xe   :  { %2306 = dma.done.wait [#allocation3], 128  }
   0xf   :  { %2307 = vsyncadd [#allocation3], 4294967168 }
  0x10   :  { %2308 = dma.done.wait [#allocation6], 8064  }
  0x11   :  { %2309 = vsyncadd [#allocation6], 4294959232 }
  0x12   :  { %2310 = dma.done.wait [#allocation9], 48  }
  0x13   :  { %2311 = vsyncadd [#allocation9], 4294967248  ;;  %v129_v0 = vlaneseq  ;;  %v2366_v2 = vld [vmem:[#allocation2] sm:$0xff]  ;;  %v2369_v10 = vld [vmem:[#allocation7 + $0x168] sm:$0xff]  ;;  %v2320_v36 = vmov 0.0   ;;  %vm274_vm0 = vcmask 326656  }
  0x14   :  { %97 = vxpose.xlu0.b32.start.end [1/1] (short) (narrow) %v2366_v2, 16  ;;  %v2371_v11 = vld [vmem:[#allocation7 + $0x150] sm:$0xff]  ;;  %527 = vmatpush.msra.mxu3 %v2369_v10  ;;  %v2374_v12 = vld [vmem:[#allocation7 + $0x138] sm:$0xff]  ;;  %v2377_v13 = vld [vmem:[#allocation7 + $0x120] sm:$0xff]  ;;  %vm81_vm7 = vcmp.ne.s32.totalorder %v2366_v2, 0  ;;  %v2321_v2 = vmov 0  }
  0x15   :  { %v133_v1 = vshrl.u32 %v129_v0, 7  ;;  %v2380_v16 = vld [vmem:[#allocation7 + $0x108] sm:$0xff]  ;;  %v2383_v17 = vld [vmem:[#allocation7 + $0xf0] sm:$0xff]  ;;  %v2386_v18 = vld [vmem:[#allocation7 + $0xd8] sm:$0xff]  ;;  %vm83_vm9 = vcmask 97280   ;;  %s1866_s16 = sshll.u32 %s3606_s5, 4  ;;  %s1867_s16 = int_to_ptr.hbm [resolvable:$true] %s1866_s16 }
  0x16   :  { %528 = vmatpush.msra.mxu3 %v2371_v11  ;;  %v2389_v19 = vld [vmem:[#allocation7 + $0xc0] sm:$0xff]  ;;  %v2392_v22 = vld [vmem:[#allocation7 + $0xa8] sm:$0xff]  ;;  %v2395_v23 = vld [vmem:[#allocation7 + $0x90] sm:$0xff] }
  0x17   :  { %1969 = vset.pattern.permute.xlu2 %v133_v1  ;;  %1968 = vset.pattern.permute.xlu1 %v133_v1  ;;  %v2398_v24 = vld [vmem:[#allocation7 + $0x78] sm:$0xff]  ;;  %v2401_v25 = vld [vmem:[#allocation7 + $0x60] sm:$0xff]  ;;  %v2404_v28 = vld [vmem:[#allocation7 + $0x48] sm:$0xff] }
  0x18   :  { %529 = vmatpush.msra.mxu3 %v2374_v12  ;;  %v2407_v29 = vld [vmem:[#allocation7 + $0x30] sm:$0xff]  ;;  %v2410_v30 = vld [vmem:[#allocation7 + $0x18] sm:$0xff]  ;;  %v2413_v31 = vld [vmem:[#allocation7] sm:$0xff] }
  0x19   :  { %3648 = vst [vmem:[#allocation15_spill] sm:$0xff] %v2410_v30  ;;  %v2416_v32 = vld [vmem:[#allocation7 + $0x170] sm:$0xff]  ;;  %v2419_v34 = vld [vmem:[#allocation7 + $0x158] sm:$0xff]  ;;  %v2422_v35 = vld [vmem:[#allocation7 + $0x140] sm:$0xff] }
  0x1a   :  { %530 = vmatpush.msra.mxu3 %v2377_v13  ;;  %3649 = vst [vmem:[#allocation16_spill] sm:$0xff] %v2413_v31  ;;  %v2426_v37 = vld [vmem:[#allocation7 + $0x128] sm:$0xff]  ;;  %v2429_v38 = vld [vmem:[#allocation7 + $0x110] sm:$0xff]  ;;  %v2432_v39 = vld [vmem:[#allocation7 + $0xf8] sm:$0xff] }
  0x1b   :  { %v2436_v40 = vld [vmem:[#allocation7 + $0xe0] sm:$0xff]  ;;  %v2439_v41 = vld [vmem:[#allocation7 + $0xc8] sm:$0xff]  ;;  %v2441_v42 = vld [vmem:[#allocation7 + $0xb0] sm:$0xff] }
  0x1c   :  { %531 = vmatpush.msra.mxu3 %v2380_v16  ;;  %v2444_v43 = vld [vmem:[#allocation7 + $0x98] sm:$0xff]  ;;  %v2448_v44 = vld [vmem:[#allocation7 + $0x80] sm:$0xff]  ;;  %v2451_v45 = vld [vmem:[#allocation7 + $0x68] sm:$0xff] }
  0x1d   :  { %v2453_v46 = vld [vmem:[#allocation7 + $0x50] sm:$0xff]  ;;  %v2456_v47 = vld [vmem:[#allocation7 + $0x38] sm:$0xff]  ;;  %v2460_v48 = vld [vmem:[#allocation7 + $0x20] sm:$0xff] }
  0x1e   :  { %532 = vmatpush.msra.mxu3 %v2383_v17  ;;  %3650 = vst [vmem:[#allocation17_spill] sm:$0xff] %v2456_v47  ;;  %v263_v49 = vld [vmem:[#allocation5 + $0x60] sm:$0xff]  ;;  %v265_v50 = vld [vmem:[#allocation5 + $0x70] sm:$0xff]  ;;  %v260_v52 = vld [vmem:[#allocation5 + $0x48] sm:$0xff] }
  0x1f   :  { %3651 = vst [vmem:[#allocation18_spill] sm:$0xff] %v2460_v48  ;;  %v2463_v51 = vld [vmem:[#allocation7 + $0x8] sm:$0xff]  ;;  %322 = vmatpush.msra.mxu0 %v263_v49  ;;  %428 = vmatpush.msra.mxu2 %v265_v50  ;;  %v262_v53 = vld [vmem:[#allocation5 + $0x58] sm:$0xff]  ;;  %v2465_v54 = vld [vmem:[#allocation7 + $0x178] sm:$0xff] }
  0x20   :  { %533 = vmatpush.msra.mxu3 %v2386_v18  ;;  %3652 = vst [vmem:[#allocation19_spill] sm:$0xff] %v2463_v51  ;;  %v257_v55 = vld [vmem:[#allocation5 + $0x30] sm:$0xff]  ;;  %v259_v56 = vld [vmem:[#allocation5 + $0x40] sm:$0xff]  ;;  %1953 = vmatpush.msra.mxu1 %v263_v49  ;;  %v2468_v57 = vld [vmem:[#allocation7 + $0x160] sm:$0xff] }
  0x21   :  { %323 = vmatpush.msra.mxu0 %v260_v52  ;;  %429 = vmatpush.msra.mxu2 %v262_v53  ;;  %v254_v58 = vld [vmem:[#allocation5 + $0x18] sm:$0xff]  ;;  %v256_v59 = vld [vmem:[#allocation5 + $0x28] sm:$0xff]  ;;  %v2471_v60 = vld [vmem:[#allocation7 + $0x148] sm:$0xff] }
  0x22   :  { %534 = vmatpush.msra.mxu3 %v2389_v19  ;;  %1954 = vmatpush.msra.mxu1 %v260_v52  ;;  %v251_v61 = vld [vmem:[#allocation5] sm:$0xff]  ;;  %v253_v62 = vld [vmem:[#allocation5 + $0x10] sm:$0xff]  ;;  %v2475_v63 = vld [vmem:[#allocation7 + $0x130] sm:$0xff]  ;;  %v2544_v52 = vand.u32 127, %v129_v0 }
  0x23   :  { %324 = vmatpush.msra.mxu0 %v257_v55  ;;  %430 = vmatpush.msra.mxu2 %v259_v56  ;;  %v2526_v49 = vld [vmem:[#allocation7 + $0x28] sm:$0xff]  ;;  %v2533_v50 = vld [vmem:[#allocation7 + $0x10] sm:$0xff] }
  0x24   :  { %535 = vmatpush.msra.mxu3 %v2392_v22  ;;  %1955 = vmatpush.msra.mxu1 %v257_v55  ;;  %3653 = vst [vmem:[#allocation20_spill] sm:$0xff] %v2526_v49 }
  0x25   :  { %325 = vmatpush.msra.mxu0 %v254_v58  ;;  %431 = vmatpush.msra.mxu2 %v256_v59  ;;  %3654 = vst [vmem:[#allocation21_spill] sm:$0xff] %v2533_v50 }
  0x26   :  { %536 = vmatpush.msra.mxu3 %v2395_v23  ;;  %1956 = vmatpush.msra.mxu1 %v254_v58 }
  0x27   :  { %326 = vmatpush.msra.mxu0 %v251_v61  ;;  %432 = vmatpush.msra.mxu2 %v253_v62 }
  0x28   :  { %537 = vmatpush.msra.mxu3 %v2398_v24  ;;  %1957 = vmatpush.msra.mxu1 %v251_v61 }
  0x29   :  { %638 = vmatpush.msrb.mxu0 %v2369_v10  ;;  %678 = vmatpush.msrb.mxu2 %v2465_v54 }
  0x2a   :  { %538 = vmatpush.msra.mxu3 %v2401_v25 }
  0x2b   :  { %639 = vmatpush.msrb.mxu0 %v2371_v11  ;;  %679 = vmatpush.msrb.mxu2 %v2468_v57 }
  0x2c   :  { %539 = vmatpush.msra.mxu3 %v2404_v28 }
  0x2d   :  { %640 = vmatpush.msrb.mxu0 %v2374_v12  ;;  %680 = vmatpush.msrb.mxu2 %v2471_v60 }
  0x2e   :  { %540 = vmatpush.msra.mxu3 %v2407_v29 }
  0x2f   :  { %641 = vmatpush.msrb.mxu0 %v2377_v13  ;;  %681 = vmatpush.msrb.mxu2 %v2475_v63 }
  0x30   :  { %541 = vmatpush.msra.mxu3 %v2410_v30 }
  0x31   :  { %642 = vmatpush.msrb.mxu0 %v2380_v16 }
  0x32   :  { %542 = vmatpush.msra.mxu3 %v2413_v31 }
  0x33   :  { %543 = vmatmul.f32.vlgmr.msra.gmra.mxu3 %v2320_v36  ;;  %643 = vmatpush.msrb.mxu0 %v2383_v17 }
  0x34   :  { %547 = vmatpush.msrb.mxu3 %v2416_v32 }
  0x35   :  { %644 = vmatpush.msrb.mxu0 %v2386_v18 }
  0x36   :  { %548 = vmatpush.msrb.mxu3 %v2419_v34 }
  0x37   :  { %645 = vmatpush.msrb.mxu0 %v2389_v19 }
  0x38   :  { %549 = vmatpush.msrb.mxu3 %v2422_v35 }
  0x39   :  { %646 = vmatpush.msrb.mxu0 %v2392_v22 }
  0x3a   :  { %550 = vmatpush.msrb.mxu3 %v2426_v37 }
  0x3b   :  { %647 = vmatpush.msrb.mxu0 %v2395_v23 }
  0x3c   :  { %551 = vmatpush.msrb.mxu3 %v2429_v38 }
  0x3d   :  { %648 = vmatpush.msrb.mxu0 %v2398_v24 }
  0x3e   :  { %552 = vmatpush.msrb.mxu3 %v2432_v39 }
  0x3f   :  { %649 = vmatpush.msrb.mxu0 %v2401_v25 }
  0x40   :  { %553 = vmatpush.msrb.mxu3 %v2436_v40 }
  0x41   :  { %650 = vmatpush.msrb.mxu0 %v2404_v28 }
  0x42   :  { %554 = vmatpush.msrb.mxu3 %v2439_v41 }
  0x43   :  { %651 = vmatpush.msrb.mxu0 %v2407_v29 }
  0x44   :  { %555 = vmatpush.msrb.mxu3 %v2441_v42 }
  0x45   :  { %652 = vmatpush.msrb.mxu0 %v2410_v30 }
  0x46   :  { %556 = vmatpush.msrb.mxu3 %v2444_v43 }
  0x47   :  { %653 = vmatpush.msrb.mxu0 %v2413_v31 }
  0x48   :  { %557 = vmatpush.msrb.mxu3 %v2448_v44 }
  0x4a   :  { %558 = vmatpush.msrb.mxu3 %v2451_v45 }
  0x4c   :  { %559 = vmatpush.msrb.mxu3 %v2453_v46 }
  0x4e   :  { %560 = vmatpush.msrb.mxu3 %v2456_v47 }
  0x50   :  { %561 = vmatpush.msrb.mxu3 %v2460_v48 }
  0x52   :  { %562 = vmatpush.msrb.mxu3 %v2463_v51 }
  0x53   :  { %563 = vmatmul.f32.vlgmr.msrb.gmra.mxu3 %v2320_v36 }
  0x54   :  { %567 = vmatpush.msra.mxu3 %v2465_v54 }
  0x56   :  { %568 = vmatpush.msra.mxu3 %v2468_v57 }
  0x58   :  { %569 = vmatpush.msra.mxu3 %v2471_v60 }
  0x5a   :  { %570 = vmatpush.msra.mxu3 %v2475_v63 }
  0x7b   :  { %1967 = vset.pattern.permute.xlu0 %v133_v1  ;;  %v2477_v1 = vld [vmem:[#allocation7 + $0x118] sm:$0xff] }
  0x7c   :  { %571 = vmatpush.msra.mxu3 %v2477_v1  ;;  %682 = vmatpush.msrb.mxu2 %v2477_v1 }
  0xb8   :  { %v113_v3 = vpop.trf.xlu0 }
  0xb9   :  { %v138_v4 = vperm.slane %v113_v3, 1  ;;  %v131_v5 = vperm.slane %v113_v3, 0  ;;  %v145_v7 = vperm.slane %v113_v3, 2  ;;  %v159_v14 = vperm.slane %v113_v3, 4 }
  0xba   :  { %v152_v15 = vperm.slane %v113_v3, 3  ;;  %v173_v20 = vperm.slane %v113_v3, 6  ;;  %v166_v21 = vperm.slane %v113_v3, 5  ;;  %v180_v26 = vperm.slane %v113_v3, 7  ;;  %v2480_v3 = vld [vmem:[#allocation7 + $0x100] sm:$0xff] }
  0xbb   :  { %143 = vperm.xlu2 %1969, %v138_v4   ;;  %136 = vperm.xlu1 %1968, %v131_v5   ;;  %v2486_v4 = vld [vmem:[#allocation7 + $0xe8] sm:$0xff]  ;;  %v2493_v5 = vld [vmem:[#allocation7 + $0xd0] sm:$0xff] }
  0xbc   :  { %572 = vmatpush.msra.mxu3 %v2480_v3  ;;  %683 = vmatpush.msrb.mxu2 %v2480_v3 }
  0xbe   :  { %573 = vmatpush.msra.mxu3 %v2486_v4  ;;  %684 = vmatpush.msrb.mxu2 %v2486_v4 }
  0xc0   :  { %v114_v6 = vpop.trf.xlu0  ;;  %574 = vmatpush.msra.mxu3 %v2493_v5  ;;  %685 = vmatpush.msrb.mxu2 %v2493_v5 }
  0xc1   :  { %v208_v8 = vperm.slane %v114_v6, 3  ;;  %v201_v9 = vperm.slane %v114_v6, 2  ;;  %v187_v27 = vperm.slane %v114_v6, 0  ;;  %v194_v33 = vperm.slane %v114_v6, 1  ;;  %v264_v6 = vld [vmem:[#allocation5 + $0x68] sm:$0xff] }
  0xc2   :  { %375 = vmatpush.msrb.mxu1 %v264_v6 }
  0xc3   :  { %150 = vperm.xlu2 %1969, %v145_v7   ;;  %213 = vperm.xlu1 %1968, %v208_v8   ;;  %v2498_v7 = vld [vmem:[#allocation7 + $0xb8] sm:$0xff]  ;;  %v2501_v8 = vld [vmem:[#allocation7 + $0xa0] sm:$0xff] }
  0xc4   :  { %206 = vperm.xlu0 %1967, %v201_v9   ;;  %v261_v9 = vld [vmem:[#allocation5 + $0x50] sm:$0xff]  ;;  %575 = vmatpush.msra.mxu3 %v2498_v7 }
  0xc5   :  { %376 = vmatpush.msrb.mxu1 %v261_v9  ;;  %686 = vmatpush.msrb.mxu2 %v2498_v7 }
  0xc6   :  { %576 = vmatpush.msra.mxu3 %v2501_v8 }
  0xc7   :  { %687 = vmatpush.msrb.mxu2 %v2501_v8 }
  0xcb   :  { %164 = vperm.xlu2 %1969, %v159_v14   ;;  %157 = vperm.xlu1 %1968, %v152_v15   ;;  %v2506_v14 = vld [vmem:[#allocation7 + $0x88] sm:$0xff]  ;;  %v258_v15 = vld [vmem:[#allocation5 + $0x38] sm:$0xff] }
  0xcc   :  { %577 = vmatpush.msra.mxu3 %v2506_v14  ;;  %377 = vmatpush.msrb.mxu1 %v258_v15 }
  0xcd   :  { %688 = vmatpush.msrb.mxu2 %v2506_v14 }
  0xd3   :  { %178 = vperm.xlu2 %1969, %v173_v20   ;;  %171 = vperm.xlu1 %1968, %v166_v21   ;;  %v2513_v20 = vld [vmem:[#allocation7 + $0x70] sm:$0xff]  ;;  %v2518_v21 = vld [vmem:[#allocation7 + $0x58] sm:$0xff] }
  0xd4   :  { %578 = vmatpush.msra.mxu3 %v2513_v20  ;;  %689 = vmatpush.msrb.mxu2 %v2513_v20 }
  0xd6   :  { %579 = vmatpush.msra.mxu3 %v2518_v21  ;;  %690 = vmatpush.msrb.mxu2 %v2518_v21 }
  0xdb   :  { %185 = vperm.xlu1 %1968, %v180_v26   ;;  %192 = vperm.xlu2 %1969, %v187_v27   ;;  %v255_v26 = vld [vmem:[#allocation5 + $0x20] sm:$0xff]  ;;  %v2521_v27 = vld [vmem:[#allocation7 + $0x40] sm:$0xff] }
  0xdc   :  { %378 = vmatpush.msrb.mxu1 %v255_v26  ;;  %580 = vmatpush.msra.mxu3 %v2521_v27 }
  0xdd   :  { %691 = vmatpush.msrb.mxu2 %v2521_v27 }
  0xde   :  { %581 = vmatpush.msra.mxu3 %v2526_v49 }
  0xdf   :  { %692 = vmatpush.msrb.mxu2 %v2526_v49 }
  0xe0   :  { %582 = vmatpush.msra.mxu3 %v2533_v50 }
  0xe1   :  { %583 = vmatmul.f32.vlgmr.msra.gmra.mxu3 %v2320_v36  ;;  %693 = vmatpush.msrb.mxu2 %v2533_v50 }
  0xe2   :  { %749 = vmatpush.msrb.mxu3 %v2369_v10 }
  0xe3   :  { %199 = vperm.xlu1 %1968, %v194_v33   ;;  %v252_v33 = vld [vmem:[#allocation5 + $0x8] sm:$0xff] }
  0xe4   :  { %379 = vmatpush.msrb.mxu1 %v252_v33  ;;  %750 = vmatpush.msrb.mxu3 %v2371_v11 }
  0xe6   :  { %751 = vmatpush.msrb.mxu3 %v2374_v12 }
  0xe8   :  { %752 = vmatpush.msrb.mxu3 %v2377_v13 }
  0xea   :  { %753 = vmatpush.msrb.mxu3 %v2380_v16 }
  0xec   :  { %754 = vmatpush.msrb.mxu3 %v2383_v17 }
  0xee   :  { %755 = vmatpush.msrb.mxu3 %v2386_v18 }
  0xf0   :  { %756 = vmatpush.msrb.mxu3 %v2389_v19 }
  0xf2   :  { %757 = vmatpush.msrb.mxu3 %v2392_v22 }
  0xf4   :  { %758 = vmatpush.msrb.mxu3 %v2395_v23 }
  0xf6   :  { %759 = vmatpush.msrb.mxu3 %v2398_v24 }
  0xf8   :  { %760 = vmatpush.msrb.mxu3 %v2401_v25 }
  0xfa   :  { %761 = vmatpush.msrb.mxu3 %v2404_v28 }
  0xfc   :  { %762 = vmatpush.msrb.mxu3 %v2407_v29 }
  0xfe   :  { %763 = vmatpush.msrb.mxu3 %v2410_v30 }
 0x100   :  { %764 = vmatpush.msrb.mxu3 %v2413_v31 }
 0x102   :  { %880 = vmatpush.msra.mxu3 %v2416_v32 }
 0x104   :  { %881 = vmatpush.msra.mxu3 %v2419_v34 }
 0x106   :  { %882 = vmatpush.msra.mxu3 %v2422_v35 }
 0x108   :  { %883 = vmatpush.msra.mxu3 %v2426_v37 }
 0x10a   :  { %884 = vmatpush.msra.mxu3 %v2429_v38 }
 0x10c   :  { %885 = vmatpush.msra.mxu3 %v2432_v39 }
 0x10e   :  { %886 = vmatpush.msra.mxu3 %v2436_v40 }
 0x110   :  { %887 = vmatpush.msra.mxu3 %v2439_v41 }
 0x112   :  { %888 = vmatpush.msra.mxu3 %v2441_v42 }
 0x114   :  { %889 = vmatpush.msra.mxu3 %v2444_v43 }
 0x115   :  { %v144_v55 = vpop.permute.xlu2 %143 }
 0x116   :  { %vm216_vm2 = vcmp.eq.s32.totalorder %v144_v55, %v2544_v52  ;;  %890 = vmatpush.msra.mxu3 %v2448_v44 }
 0x117   :  { %v2572_v58 = vsel %vm216_vm2, 1.0, %v2320_v36 }
 0x118   :  { %891 = vmatpush.msra.mxu3 %v2451_v45 }
 0x11a   :  { %892 = vmatpush.msra.mxu3 %v2453_v46 }
 0x11c   :  { %893 = vmatpush.msra.mxu3 %v2456_v47 }
 0x11d   :  { %v151_v62 = vpop.permute.xlu2 %150 }
 0x11e   :  { %vm217_vm4 = vcmp.eq.s32.totalorder %v151_v62, %v2544_v52  ;;  %894 = vmatpush.msra.mxu3 %v2460_v48 }
 0x11f   :  { %v2599_v6 = vsel %vm217_vm4, 1.0, %v2320_v36 }
 0x120   :  { %895 = vmatpush.msra.mxu3 %v2463_v51 }
 0x125   :  { %v165_v33 = vpop.permute.xlu2 %164 }
 0x126   :  { %vm219_vm8 = vcmp.eq.s32.totalorder %v165_v33, %v2544_v52 }
 0x12d   :  { %v137_v53 = vpop.permute.xlu1 %136 }
 0x12e   :  { %vm215_vm1 = vcmp.eq.s32.totalorder %v137_v53, %v2544_v52  ;;  %v82_v53 = vsel %vm81_vm7, 1, %v2321_v2  ;;  %v179_v2 = vpop.permute.xlu2 %178 }
 0x12f   :  { %v2552_v56 = vsel %vm215_vm1, 1.0, %v2320_v36  ;;  %v84_v55 = vsel %vm83_vm9, %v82_v53, 0  ;;  %vm221_vm11 = vcmp.eq.s32.totalorder %v179_v2, %v2544_v52 }
 0x130   :  { %1890 = vmatmul.msk.f32.vlgmr.msra.gmra.mxu0 %vm274_vm0, %v2552_v56  ;;  %1914 = vmatmul.msk.f32.vlgmr.msra.gmra.mxu2 %vm274_vm0, %v2552_v56  ;;  %v85_v62 = vand.u32 65535, %v84_v55 }
 0x131   :  { %769 = vmatpush.msra.mxu0 %v2416_v32  ;;  %860 = vmatpush.msra.mxu2 %v2369_v10 }
 0x132   :  { %v87_v33 = vcvt.s32.f32 %v85_v62 }
 0x133   :  { %770 = vmatpush.msra.mxu0 %v2419_v34  ;;  %861 = vmatpush.msra.mxu2 %v2371_v11 }
 0x134   :  { %89 = vadd.xlane.f32.xlu1 %v87_v33 }
 0x135   :  { %771 = vmatpush.msra.mxu0 %v2422_v35  ;;  %v214_v59 = vpop.permute.xlu1 %213  ;;  %862 = vmatpush.msra.mxu2 %v2374_v12 }
 0x136   :  { %v207_v0 = vpop.permute.xlu0 %206  ;;  %vm226_vm5 = vcmp.eq.s32.totalorder %v214_v59, %v2544_v52 }
 0x137   :  { %vm225_vm3 = vcmp.eq.s32.totalorder %v207_v0, %v2544_v52  ;;  %772 = vmatpush.msra.mxu0 %v2426_v37  ;;  %863 = vmatpush.msra.mxu2 %v2377_v13  ;;  %v2604_v9 = vsel %vm226_vm5, 1.0, %v2320_v36  ;;  %v1882_v0 = vsel %vm219_vm8, 1.0, %v2320_v36 }
 0x138   :  { %v2577_v61 = vsel %vm225_vm3, 1.0, %v2320_v36  ;;  %1891 = vmatmul.msk.f32.gmra.mxu0 %vm274_vm0, %v2572_v58  ;;  %1915 = vmatmul.msk.f32.gmra.mxu2 %vm274_vm0, %v2572_v58 }
 0x139   :  { %1900 = vmatmul.msk.f32.vlgmr.msra.gmra.mxu1 %vm274_vm0, %v2577_v61  ;;  %773 = vmatpush.msra.mxu0 %v2429_v38 }
 0x13a   :  { %658 = vmatpush.msra.mxu1 %v2416_v32  ;;  %864 = vmatpush.msra.mxu2 %v2380_v16 }
 0x13b   :  { %774 = vmatpush.msra.mxu0 %v2432_v39 }
 0x13c   :  { %659 = vmatpush.msra.mxu1 %v2419_v34  ;;  %865 = vmatpush.msra.mxu2 %v2383_v17 }
 0x13d   :  { %775 = vmatpush.msra.mxu0 %v2436_v40  ;;  %v158_v15 = vpop.permute.xlu1 %157 }
 0x13e   :  { %660 = vmatpush.msra.mxu1 %v2422_v35  ;;  %866 = vmatpush.msra.mxu2 %v2386_v18  ;;  %vm218_vm6 = vcmp.eq.s32.totalorder %v158_v15, %v2544_v52 }
 0x13f   :  { %776 = vmatpush.msra.mxu0 %v2439_v41  ;;  %v2626_v26 = vsel %vm218_vm6, 1.0, %v2320_v36 }
 0x140   :  { %1892 = vmatmul.msk.f32.gmra.mxu0 %vm274_vm0, %v2599_v6  ;;  %1916 = vmatmul.msk.f32.gmra.mxu2 %vm274_vm0, %v2599_v6 }
 0x141   :  { %1901 = vmatmul.msk.f32.gmra.mxu1 %vm274_vm0, %v2604_v9  ;;  %777 = vmatpush.msra.mxu0 %v2441_v42 }
 0x142   :  { %661 = vmatpush.msra.mxu1 %v2426_v37  ;;  %867 = vmatpush.msra.mxu2 %v2389_v19 }
 0x143   :  { %778 = vmatpush.msra.mxu0 %v2444_v43 }
 0x144   :  { %662 = vmatpush.msra.mxu1 %v2429_v38  ;;  %868 = vmatpush.msra.mxu2 %v2392_v22 }
 0x145   :  { %779 = vmatpush.msra.mxu0 %v2448_v44  ;;  %v172_v15 = vpop.permute.xlu1 %171 }
 0x146   :  { %663 = vmatpush.msra.mxu1 %v2432_v39  ;;  %869 = vmatpush.msra.mxu2 %v2395_v23  ;;  %vm220_vm10 = vcmp.eq.s32.totalorder %v172_v15, %v2544_v52  ;;  %v544_v15 = vpop.f32.mrf.mxu3 }
 0x147   :  { %780 = vmatpush.msra.mxu0 %v2451_v45 }
 0x148   :  { %1893 = vmatmul.msk.f32.gmra.mxu0 %vm274_vm0, %v2626_v26  ;;  %1917 = vmatmul.msk.f32.gmra.mxu2 %vm274_vm0, %v2626_v26 }
 0x149   :  { %1902 = vmatmul.msk.f32.vlgmr.msrb.gmra.mxu1 %vm274_vm0, %v2552_v56  ;;  %781 = vmatpush.msra.mxu0 %v2453_v46  ;;  %v86_v56 = vshrl.u32 %v84_v55, 16 }
 0x14a   :  { %664 = vmatpush.msra.mxu1 %v2436_v40  ;;  %870 = vmatpush.msra.mxu2 %v2398_v24 }
 0x14b   :  { %782 = vmatpush.msra.mxu0 %v2456_v47  ;;  %v88_v59 = vcvt.s32.f32 %v86_v56 }
 0x14c   :  { %665 = vmatpush.msra.mxu1 %v2439_v41  ;;  %871 = vmatpush.msra.mxu2 %v2401_v25 }
 0x14d   :  { %783 = vmatpush.msra.mxu0 %v2460_v48  ;;  %91 = vadd.xlane.f32.xlu2 %v88_v59  ;;  %v186_v53 = vpop.permute.xlu1 %185 }
 0x14e   :  { %666 = vmatpush.msra.mxu1 %v2441_v42  ;;  %872 = vmatpush.msra.mxu2 %v2404_v28  ;;  %vm222_vm12 = vcmp.eq.s32.totalorder %v186_v53, %v2544_v52 }
 0x14f   :  { %784 = vmatpush.msra.mxu0 %v2463_v51  ;;  %v1885_v55 = vsel %vm222_vm12, 1.0, %v2320_v36 }
 0x150   :  { %1894 = vmatmul.msk.f32.gmra.mxu0 %vm274_vm0, %v1882_v0  ;;  %1918 = vmatmul.msk.f32.gmra.mxu2 %vm274_vm0, %v1882_v0 }
 0x151   :  { %1903 = vmatmul.msk.f32.gmra.mxu1 %vm274_vm0, %v2572_v58  ;;  %v1883_v58 = vsel %vm220_vm10, 1.0, %v2320_v36  ;;  %873 = vmatpush.msra.mxu2 %v2407_v29 }
 0x152   :  { %667 = vmatpush.msra.mxu1 %v2444_v43 }
 0x153   :  { %874 = vmatpush.msra.mxu2 %v2410_v30 }
 0x154   :  { %668 = vmatpush.msra.mxu1 %v2448_v44 }
 0x155   :  { %875 = vmatpush.msra.mxu2 %v2413_v31  ;;  %v564_v31 = vpop.f32.mrf.mxu3 }
 0x156   :  { %669 = vmatpush.msra.mxu1 %v2451_v45 }
 0x158   :  { %1895 = vmatmul.msk.f32.gmra.mxu0 %vm274_vm0, %v1883_v58  ;;  %1919 = vmatmul.msk.f32.gmra.mxu2 %vm274_vm0, %v1883_v58 }
 0x159   :  { %1904 = vmatmul.msk.f32.gmra.mxu1 %vm274_vm0, %v2599_v6  ;;  %v1884_v6 = vsel %vm221_vm11, 1.0, %v2320_v36 }
 0x15a   :  { %670 = vmatpush.msra.mxu1 %v2453_v46 }
 0x15c   :  { %671 = vmatpush.msra.mxu1 %v2456_v47 }
 0x15e   :  { %672 = vmatpush.msra.mxu1 %v2460_v48 }
 0x160   :  { %1896 = vmatmul.msk.f32.gmra.mxu0 %vm274_vm0, %v1884_v6  ;;  %1920 = vmatmul.msk.f32.gmra.mxu2 %vm274_vm0, %v1884_v6 }
 0x161   :  { %1905 = vmatmul.msk.f32.gmra.mxu1 %vm274_vm0, %v2626_v26  ;;  %v193_v26 = vpop.permute.xlu2 %192 }
 0x162   :  { %673 = vmatpush.msra.mxu1 %v2463_v51  ;;  %vm223_vm13 = vcmp.eq.s32.totalorder %v193_v26, %v2544_v52 }
 0x163   :  { %v1886_v56 = vsel %vm223_vm13, 1.0, %v2320_v36 }
 0x164   :  { %789 = vmatpush.msrb.mxu1 %v2465_v54  ;;  %v584_v30 = vpop.f32.mrf.mxu3 }
 0x166   :  { %790 = vmatpush.msrb.mxu1 %v2468_v57 }
 0x168   :  { %791 = vmatpush.msrb.mxu1 %v2471_v60  ;;  %1897 = vmatmul.msk.f32.gmra.mxu0 %vm274_vm0, %v1885_v55 }
 0x169   :  { %1921 = vmatmul.msk.f32.gmra.mxu2 %vm274_vm0, %v1885_v55  ;;  %1906 = vmatmul.msk.f32.gmra.mxu1 %vm274_vm0, %v1882_v0  ;;  %v200_v0 = vpop.permute.xlu1 %199 }
 0x16a   :  { %792 = vmatpush.msrb.mxu1 %v2475_v63  ;;  %vm224_vm14 = vcmp.eq.s32.totalorder %v200_v0, %v2544_v52  ;;  %v266_v52 = vld [vmem:[#allocation8] sm:$0x7] }
 0x16b   :  { %v1887_v59 = vsel %vm224_vm14, 1.0, %v2320_v36  ;;  %v518_v36 = vld [vmem:[%s3605_s4] sm:$0x7]  ;;  %v2743_v33 = vperm.slane %v266_v52, 0  ;;  %v2753_v51 = vperm.slane %v266_v52, 1  ;;  %s2322_s4 = smov [#allocation10]  }
 0x16c   :  { %793 = vmatpush.msrb.mxu1 %v2477_v1  ;;  %v2741_v62 = vperm.slane %v518_v36, 0  ;;  %v2751_v0 = vperm.slane %v518_v36, 1  ;;  %s1864_s13 = sshll.u32 %s2322_s4, 4  ;;  %s1865_s13 = int_to_ptr.vmem [resolvable:$true] %s1864_s13 }
 0x16d   :  { %3656 = vst [vmem:[#allocation23_spill] sm:$0xff] %v2743_v33 }
 0x16e   :  { %794 = vmatpush.msrb.mxu1 %v2480_v3  ;;  %3655 = vst [vmem:[#allocation22_spill] sm:$0xff] %v2741_v62 }
 0x16f   :  { %3659 = vst [vmem:[#allocation26_spill] sm:$0xff] %v2751_v0 }
 0x170   :  { %1898 = vmatmul.msk.f32.gmra.mxu0 %vm274_vm0, %v1886_v56  ;;  %795 = vmatpush.msrb.mxu1 %v2486_v4  ;;  %3660 = vst [vmem:[#allocation27_spill] sm:$0xff] %v2753_v51 }
 0x171   :  { %1922 = vmatmul.msk.f32.gmra.mxu2 %vm274_vm0, %v1886_v56  ;;  %1907 = vmatmul.msk.f32.gmra.mxu1 %vm274_vm0, %v1883_v58  ;;  %v545_v58 = vadd.f32 %v544_v15, %v2741_v62  ;;  %v565_v62 = vadd.f32 %v564_v31, %v2751_v0 }
 0x172   :  { %796 = vmatpush.msrb.mxu1 %v2493_v5 }
 0x174   :  { %797 = vmatpush.msrb.mxu1 %v2498_v7 }
 0x176   :  { %798 = vmatpush.msrb.mxu1 %v2501_v8 }
 0x178   :  { %1899 = vmatmul.msk.f32.gmra.mxu0 %vm274_vm0, %v1887_v59  ;;  %799 = vmatpush.msrb.mxu1 %v2506_v14 }
 0x179   :  { %1923 = vmatmul.msk.f32.gmra.mxu2 %vm274_vm0, %v1887_v59  ;;  %1908 = vmatmul.msk.f32.gmra.mxu1 %vm274_vm0, %v1884_v6 }
 0x17a   :  { %800 = vmatpush.msrb.mxu1 %v2513_v20 }
 0x17c   :  { %801 = vmatpush.msrb.mxu1 %v2518_v21 }
 0x17e   :  { %802 = vmatpush.msrb.mxu1 %v2521_v27 }
 0x180   :  { %803 = vmatpush.msrb.mxu1 %v2526_v49 }
 0x181   :  { %1924 = vmatmul.msk.f32.gmra.mxu2 %vm274_vm0, %v2577_v61  ;;  %1909 = vmatmul.msk.f32.gmra.mxu1 %vm274_vm0, %v1885_v55 }
 0x182   :  { %804 = vmatpush.msrb.mxu1 %v2533_v50 }
 0x189   :  { %1925 = vmatmul.msk.f32.gmra.mxu2 %vm274_vm0, %v2604_v9  ;;  %1910 = vmatmul.msk.f32.gmra.mxu1 %vm274_vm0, %v1886_v56 }
 0x191   :  { %1911 = vmatmul.msk.f32.gmra.mxu1 %vm274_vm0, %v1887_v59 }
 0x199   :  { %1912 = vmatmul.msk.f32.gmra.mxu1 %vm274_vm0, %v2577_v61 }
 0x1a1   :  { %1913 = vmatmul.msk.f32.gmra.mxu1 %vm274_vm0, %v2604_v9 }
 0x1ad   :  { %v328_v2 = vpop.f32.mrf.mxu0 }
 0x1ae   :  { %v329_v6 = vadd.f32 %v328_v2, %v2743_v33  ;;  %v2757_v33 = vperm.slane %v518_v36, 2 }
 0x1b0   :  { %v587_v53 = vadd.f32 %v545_v58, %v329_v6 }
 0x1b2   :  { %v1926_v61 = vmul.f32 -1.442695, %v587_v53 }
 0x1b4   :  { %1970 = vpow2.f32 %v1926_v61 }
 0x1b6   :  { %v2747_v55 = vpop.f32.mrf.mxu1 }
 0x1b7   :  { %3657 = vst [vmem:[#allocation24_spill] sm:$0xff] %v2747_v55 }
 0x1ba   :  { %v1971_v9 = vpop.eup %1970 }
 0x1bb   :  { %v591_v26 = vadd.f32 1.0, %v1971_v9 }
 0x1bd   :  { %1972 = vrcp.f32 %v591_v26  ;;  %vm597_vm0 = vweird.f32 %v591_v26  ;;  %v601_v50 = vand.u32 2147483647, %v591_v26 }
 0x1be   :  { %v2749_v56 = vpop.f32.mrf.mxu1 }
 0x1bf   :  { %3658 = vst [vmem:[#allocation25_spill] sm:$0xff] %v2749_v56  ;;  %v603_v56 = vand.u32 2147483648, %v591_v26  ;;  %vm602_vm2 = vcmp.eq.f32.partialorder %v601_v50, 8.507059e+37 }
 0x1c1   :  { %v604_v0 = vor.u32 1.1754944e-38, %v603_v56 }
 0x1c3   :  { %v1973_v59 = vpop.eup %1972 }
 0x1c4   :  { %v593_v15 = vmul.f32 %v1973_v59, %v591_v26  ;;  %vm598_vm15 = vweird.f32 %v1973_v59 }
 0x1c5   :  { %vm599_vm1 = vmor %vm597_vm0, %vm598_vm15 }
 0x1c6   :  { %v381_v2 = vpop.f32.mrf.mxu1  ;;  %v594_v6 = vsub.f32 1.0, %v593_v15  ;;  %v585_v15 = vadd.f32 %v584_v30, %v2757_v33 }
 0x1c7   :  { %v382_v58 = vadd.f32 %v381_v2, %v2753_v51  ;;  %v2760_v2 = vperm.slane %v266_v52, 2 }
 0x1c8   :  { %v595_v55 = vmul.f32 %v1973_v59, %v594_v6  ;;  %v92_v6 = vpop.xlane.xlu2 %91 }
 0x1c9   :  { %v607_v53 = vadd.f32 %v565_v62, %v382_v58  ;;  %v94_v51 = vcvt.f32.s32 %v92_v6 }
 0x1ca   :  { %v596_v9 = vadd.f32 %v1973_v59, %v595_v55  ;;  %v434_v55 = vpop.f32.mrf.mxu2 }
 0x1cb   :  { %v1927_v61 = vmul.f32 -1.442695, %v607_v53  ;;  %v435_v53 = vadd.f32 %v434_v55, %v2760_v2  ;;  %v95_v30 = vshll.u32 %v94_v51, 16 }
 0x1cc   :  { %v600_v31 = vsel %vm599_vm1, %v1973_v59, %v596_v9 }
 0x1cd   :  { %1974 = vpow2.f32 %v1927_v61  ;;  %v605_v62 = vsel %vm602_vm2, %v604_v0, %v600_v31 }
 0x1ce   :  { %v627_v58 = vmul.f32 %v605_v62, %v585_v15 }
 0x1d0   :  { %v628_v61 = vadd.f32 %v627_v58, %v435_v53 }
 0x1d3   :  { %v1975_v48 = vpop.eup %1974 }
 0x1d4   :  { %v611_v49 = vadd.f32 1.0, %v1975_v48  ;;  %v90_v48 = vpop.xlane.xlu1 %89 }
 0x1d5   :  { %v93_v50 = vcvt.f32.s32 %v90_v48 }
 0x1d6   :  { %1976 = vrcp.f32 %v611_v49  ;;  %v623_v59 = vand.u32 2147483648, %v611_v49  ;;  %v621_v9 = vand.u32 2147483647, %v611_v49  ;;  %vm617_vm4 = vweird.f32 %v611_v49 }
 0x1d7   :  { %1978 = vtanh.f32 %v628_v61  ;;  %v2763_v15 = vadd.s32 %v95_v30, %v93_v50 }
 0x1d8   :  { %v624_v0 = vor.u32 1.1754944e-38, %v623_v59  ;;  %vm622_vm6 = vcmp.eq.f32.partialorder %v621_v9, 8.507059e+37 }
 0x1d9   :  { %vm519_vm7 = vcmp.gt.s32.totalorder %v2763_v15, 0  ;;  %vm637_vm0 = vcmp.gt.s32.totalorder %v2763_v15, 1 }
 0x1dc   :  { %v1977_v36 = vpop.eup %1976 }
 0x1dd   :  { %v613_v26 = vmul.f32 %v1977_v36, %v611_v49  ;;  %vm618_vm3 = vweird.f32 %v1977_v36  ;;  %v1979_v58 = vpop.eup %1978 }
 0x1de   :  { %vm619_vm5 = vmor %vm617_vm4, %vm618_vm3 }
 0x1df   :  { %v614_v47 = vsub.f32 1.0, %v613_v26 }
 0x1e1   :  { %v615_v56 = vmul.f32 %v1977_v36, %v614_v47 }
 0x1e3   :  { %v616_v52 = vadd.f32 %v1977_v36, %v615_v56 }
 0x1e5   :  { %v620_v31 = vsel %vm619_vm5, %v1977_v36, %v616_v52 }
 0x1e6   :  { %v625_v62 = vsel %vm622_vm6, %v624_v0, %v620_v31  ;;  %v3688_v0 = vld [vmem:[#allocation23_spill] sm:$0xff] }
 0x1e7   :  { %v630_v55 = vsub.f32 1.0, %v625_v62  ;;  %v632_v53 = vmul.f32 0.0, %v625_v62  ;;  %v3689_v62 = vld [vmem:[#allocation27_spill] sm:$0xff] }
 0x1e9   :  { %v631_v6 = vmul.f32 %v1979_v58, %v630_v55  ;;  %v3690_v58 = vld [vmem:[#allocation22_spill] sm:$0xff] }
 0x1eb   :  { %v633_v47 = vadd.f32 %v632_v53, %v631_v6  ;;  %v3691_v53 = vld [vmem:[#allocation26_spill] sm:$0xff] }
 0x1ed   :  { %v2766_v26 = vsel %vm519_vm7, %v633_v47, 0.0  ;;  %1928 = vmatmul.msk.f32.vlgmr.msrb.gmra.mxu0 %vm519_vm7, %v633_v47  ;;  %1929 = vmatmul.msk.f32.vlgmr.msra.gmra.mxu1 %vm519_vm7, %v633_v47 }
 0x1ee   :  { %1930 = vmatmul.msk.f32.vlgmr.msrb.gmra.mxu2 %vm519_vm7, %v633_v47  ;;  %900 = vmatpush.msrb.mxu0 %v2465_v54 }
 0x1ef   :  { %971 = vmatpush.msra.mxu1 %v2369_v10  ;;  %991 = vmatpush.msrb.mxu2 %v2416_v32  ;;  %v384_v10 = vpop.f32.mrf.mxu1 }
 0x1f0   :  { %901 = vmatpush.msrb.mxu0 %v2468_v57  ;;  %v385_v55 = vadd.f32 %v384_v10, %v3689_v62 }
 0x1f1   :  { %972 = vmatpush.msra.mxu1 %v2371_v11  ;;  %992 = vmatpush.msrb.mxu2 %v2419_v34 }
 0x1f2   :  { %902 = vmatpush.msrb.mxu0 %v2471_v60 }
 0x1f3   :  { %973 = vmatpush.msra.mxu1 %v2374_v12  ;;  %993 = vmatpush.msrb.mxu2 %v2422_v35  ;;  %v3661_v12 = vld [vmem:[#allocation17_spill] sm:$0xff] }
 0x1f4   :  { %903 = vmatpush.msrb.mxu0 %v2475_v63 }
 0x1f5   :  { %974 = vmatpush.msra.mxu1 %v2377_v13  ;;  %994 = vmatpush.msrb.mxu2 %v2426_v37  ;;  %v3662_v13 = vld [vmem:[#allocation20_spill] sm:$0xff] }
 0x1f6   :  { %904 = vmatpush.msrb.mxu0 %v2477_v1 }
 0x1f7   :  { %975 = vmatpush.msra.mxu1 %v2380_v16  ;;  %995 = vmatpush.msrb.mxu2 %v2429_v38  ;;  %v2807_v11 = vpop.f32.mrf.mxu1  ;;  %v3663_v16 = vld [vmem:[#allocation15_spill] sm:$0xff] }
 0x1f8   :  { %905 = vmatpush.msrb.mxu0 %v2480_v3 }
 0x1f9   :  { %976 = vmatpush.msra.mxu1 %v2383_v17  ;;  %996 = vmatpush.msrb.mxu2 %v2432_v39  ;;  %v3664_v17 = vld [vmem:[#allocation18_spill] sm:$0xff] }
 0x1fa   :  { %906 = vmatpush.msrb.mxu0 %v2486_v4 }
 0x1fb   :  { %977 = vmatpush.msra.mxu1 %v2386_v18  ;;  %997 = vmatpush.msrb.mxu2 %v2436_v40  ;;  %v3665_v18 = vld [vmem:[#allocation21_spill] sm:$0xff] }
 0x1fc   :  { %907 = vmatpush.msrb.mxu0 %v2493_v5 }
 0x1fd   :  { %978 = vmatpush.msra.mxu1 %v2389_v19  ;;  %998 = vmatpush.msrb.mxu2 %v2439_v41  ;;  %v3666_v19 = vld [vmem:[#allocation16_spill] sm:$0xff] }
 0x1fe   :  { %908 = vmatpush.msrb.mxu0 %v2498_v7 }
 0x1ff   :  { %979 = vmatpush.msra.mxu1 %v2392_v22  ;;  %999 = vmatpush.msrb.mxu2 %v2441_v42  ;;  %v3667_v22 = vld [vmem:[#allocation19_spill] sm:$0xff] }
 0x200   :  { %909 = vmatpush.msrb.mxu0 %v2501_v8 }
 0x201   :  { %980 = vmatpush.msra.mxu1 %v2395_v23  ;;  %1000 = vmatpush.msrb.mxu2 %v2444_v43  ;;  %v331_v23 = vpop.f32.mrf.mxu0 }
 0x202   :  { %910 = vmatpush.msrb.mxu0 %v2506_v14  ;;  %v332_v31 = vadd.f32 %v331_v23, %v3688_v0 }
 0x203   :  { %981 = vmatpush.msra.mxu1 %v2398_v24  ;;  %1001 = vmatpush.msrb.mxu2 %v2448_v44  ;;  %v2818_v24 = vpop.f32.mrf.mxu1 }
 0x204   :  { %911 = vmatpush.msrb.mxu0 %v2513_v20 }
 0x205   :  { %982 = vmatpush.msra.mxu1 %v2401_v25  ;;  %1002 = vmatpush.msrb.mxu2 %v2451_v45  ;;  %v2820_v25 = vpop.f32.mrf.mxu2 }
 0x206   :  { %912 = vmatpush.msrb.mxu0 %v2518_v21 }
 0x207   :  { %983 = vmatpush.msra.mxu1 %v2404_v28  ;;  %1003 = vmatpush.msrb.mxu2 %v2453_v46 }
 0x208   :  { %913 = vmatpush.msrb.mxu0 %v2521_v27 }
 0x209   :  { %984 = vmatpush.msra.mxu1 %v2407_v29  ;;  %1004 = vmatpush.msrb.mxu2 %v3661_v12  ;;  %v2822_v28 = vpop.f32.mrf.mxu0 }
 0x20a   :  { %914 = vmatpush.msrb.mxu0 %v3662_v13 }
 0x20b   :  { %985 = vmatpush.msra.mxu1 %v3663_v16  ;;  %1005 = vmatpush.msrb.mxu2 %v3664_v17  ;;  %v2824_v29 = vpop.f32.mrf.mxu1 }
 0x20c   :  { %915 = vmatpush.msrb.mxu0 %v3665_v18  ;;  %3668 = vst [vmem:[#allocation17_spill] sm:$0xff] %v2824_v29 }
 0x20d   :  { %986 = vmatpush.msra.mxu1 %v3666_v19  ;;  %1006 = vmatpush.msrb.mxu2 %v3667_v22  ;;  %v2826_v32 = vpop.f32.mrf.mxu2 }
 0x211   :  { %v2828_v34 = vpop.f32.mrf.mxu0 }
 0x213   :  { %v2830_v35 = vpop.f32.mrf.mxu1 }
 0x214   :  { %3669 = vst [vmem:[#allocation20_spill] sm:$0xff] %v2830_v35 }
 0x215   :  { %v2832_v37 = vpop.f32.mrf.mxu2 }
 0x219   :  { %v2834_v38 = vpop.f32.mrf.mxu0 }
 0x21a   :  { %3670 = vst [vmem:[#allocation15_spill] sm:$0xff] %v2834_v38 }
 0x21b   :  { %v2836_v39 = vpop.f32.mrf.mxu1 }
 0x21c   :  { %3671 = vst [vmem:[#allocation18_spill] sm:$0xff] %v2836_v39 }
 0x21d   :  { %v2838_v40 = vpop.f32.mrf.mxu2 }
 0x21e   :  { %3672 = vst [vmem:[#allocation21_spill] sm:$0xff] %v2838_v40 }
 0x221   :  { %v2840_v41 = vpop.f32.mrf.mxu0 }
 0x222   :  { %3673 = vst [vmem:[#allocation16_spill] sm:$0xff] %v2840_v41 }
 0x223   :  { %v2842_v42 = vpop.f32.mrf.mxu1 }
 0x224   :  { %3674 = vst [vmem:[#allocation19_spill] sm:$0xff] %v2842_v42 }
 0x225   :  { %v2844_v43 = vpop.f32.mrf.mxu2 }
 0x226   :  { %3675 = vst [vmem:[#allocation28_spill] sm:$0xff] %v2844_v43 }
 0x229   :  { %v2846_v44 = vpop.f32.mrf.mxu0 }
 0x22a   :  { %3676 = vst [vmem:[#allocation29_spill] sm:$0xff] %v2846_v44 }
 0x22b   :  { %v2848_v45 = vpop.f32.mrf.mxu1 }
 0x22c   :  { %3677 = vst [vmem:[#allocation30_spill] sm:$0xff] %v2848_v45 }
 0x22d   :  { %v2850_v46 = vpop.f32.mrf.mxu2 }
 0x22e   :  { %3678 = vst [vmem:[#allocation31_spill] sm:$0xff] %v2850_v46 }
 0x231   :  { %v2852_v51 = vpop.f32.mrf.mxu0 }
 0x232   :  { %3679 = vst [vmem:[#allocation32_spill] sm:$0xff] %v2852_v51 }
 0x233   :  { %v2854_v49 = vpop.f32.mrf.mxu1 }
 0x234   :  { %3680 = vst [vmem:[#allocation33_spill] sm:$0xff] %v2854_v49 }
 0x235   :  { %v2856_v36 = vpop.f32.mrf.mxu2 }
 0x236   :  { %3681 = vst [vmem:[#allocation34_spill] sm:$0xff] %v2856_v36 }
 0x239   :  { %v2858_v61 = vpop.f32.mrf.mxu0 }
 0x23a   :  { %3682 = vst [vmem:[#allocation35_spill] sm:$0xff] %v2858_v61 }
 0x23b   :  { %v2860_v48 = vpop.f32.mrf.mxu1 }
 0x23c   :  { %3683 = vst [vmem:[#allocation36_spill] sm:$0xff] %v2860_v48 }
 0x23d   :  { %v2862_v59 = vpop.f32.mrf.mxu2 }
 0x23e   :  { %3684 = vst [vmem:[#allocation37_spill] sm:$0xff] %v2862_v59 }
 0x241   :  { %v2864_v56 = vpop.f32.mrf.mxu0 }
 0x242   :  { %3685 = vst [vmem:[#allocation38_spill] sm:$0xff] %v2864_v56 }
 0x243   :  { %v2866_v9 = vpop.f32.mrf.mxu1 }
 0x244   :  { %3686 = vst [vmem:[#allocation39_spill] sm:$0xff] %v2866_v9 }
 0x245   :  { %v2868_v30 = vpop.f32.mrf.mxu2 }
 0x246   :  { %3687 = vst [vmem:[#allocation40_spill] sm:$0xff] %v2868_v30 }
 0x24d   :  { %v2874_v22 = vpop.f32.mrf.mxu2 }
 0x24e   :  { %3692 = vst [vmem:[#allocation41_spill] sm:$0xff] %v2874_v22 }
 0x255   :  { %v2876_v23 = vpop.f32.mrf.mxu2 }
 0x256   :  { %3693 = vst [vmem:[#allocation42_spill] sm:$0xff] %v2876_v23 }
 0x26a   :  { %v655_v50 = vpop.f32.mrf.mxu0  ;;  %v675_v52 = vpop.f32.mrf.mxu1 }
 0x26b   :  { %v656_v6 = vadd.f32 %v655_v50, %v3690_v58  ;;  %v676_v47 = vadd.f32 %v675_v52, %v3691_v53 }
 0x26d   :  { %v698_v12 = vadd.f32 %v656_v6, %v332_v31  ;;  %v718_v16 = vadd.f32 %v676_v47, %v385_v55 }
 0x26f   :  { %v1931_v17 = vmul.f32 -1.442695, %v698_v12  ;;  %v1932_v19 = vmul.f32 -1.442695, %v718_v16 }
 0x271   :  { %1980 = vpow2.f32 %v1931_v17 }
 0x272   :  { %1982 = vpow2.f32 %v1932_v19  ;;  %v695_v19 = vpop.f32.mrf.mxu2 }
 0x277   :  { %v1981_v9 = vpop.eup %1980 }
 0x278   :  { %v1983_v48 = vpop.eup %1982  ;;  %v702_v30 = vadd.f32 1.0, %v1981_v9 }
 0x279   :  { %v722_v49 = vadd.f32 1.0, %v1983_v48 }
 0x27a   :  { %1984 = vrcp.f32 %v702_v30  ;;  %v714_v6 = vand.u32 2147483648, %v702_v30  ;;  %v712_v16 = vand.u32 2147483647, %v702_v30  ;;  %vm708_vm10 = vweird.f32 %v702_v30 }
 0x27b   :  { %1986 = vrcp.f32 %v722_v49  ;;  %v734_v47 = vand.u32 2147483648, %v722_v49  ;;  %v732_v9 = vand.u32 2147483647, %v722_v49  ;;  %vm728_vm11 = vweird.f32 %v722_v49 }
 0x27c   :  { %v715_v23 = vor.u32 1.1754944e-38, %v714_v6  ;;  %vm713_vm14 = vcmp.eq.f32.partialorder %v712_v16, 8.507059e+37  ;;  %v2942_v16 = vld [vmem:[#allocation7 + $0xc8] sm:$0xff] }
 0x27d   :  { %v735_v59 = vor.u32 1.1754944e-38, %v734_v47  ;;  %vm733_vm15 = vcmp.eq.f32.partialorder %v732_v9, 8.507059e+37  ;;  %v2956_v9 = vld [vmem:[#allocation7 + $0x98] sm:$0xff] }
 0x280   :  { %v1985_v10 = vpop.eup %1984 }
 0x281   :  { %v1987_v50 = vpop.eup %1986  ;;  %v704_v56 = vmul.f32 %v1985_v10, %v702_v30  ;;  %vm709_vm8 = vweird.f32 %v1985_v10 }
 0x282   :  { %v724_v52 = vmul.f32 %v1987_v50, %v722_v49  ;;  %vm729_vm9 = vweird.f32 %v1987_v50  ;;  %vm710_vm12 = vmor %vm708_vm10, %vm709_vm8 }
 0x283   :  { %v705_v31 = vsub.f32 1.0, %v704_v56  ;;  %vm730_vm13 = vmor %vm728_vm11, %vm729_vm9  ;;  %v696_v56 = vadd.f32 %v695_v19, %v2757_v33  ;;  %v2949_v19 = vld [vmem:[#allocation7 + $0xb0] sm:$0xff]  ;;  %vm748_vm9 = vcmp.gt.s32.totalorder %v2763_v15, 2 }
 0x284   :  { %v725_v55 = vsub.f32 1.0, %v724_v52 }
 0x285   :  { %v706_v12 = vmul.f32 %v1985_v10, %v705_v31 }
 0x286   :  { %v726_v17 = vmul.f32 %v1987_v50, %v725_v55  ;;  %v438_v55 = vadd.f32 %v2820_v25, %v2760_v2  ;;  %v2890_v25 = vld [vmem:[#allocation7 + $0x168] sm:$0xff] }
 0x287   :  { %v707_v48 = vadd.f32 %v1985_v10, %v706_v12 }
 0x288   :  { %v727_v22 = vadd.f32 %v1987_v50, %v726_v17 }
 0x289   :  { %v711_v52 = vsel %vm710_vm12, %v1985_v10, %v707_v48  ;;  %v2963_v48 = vld [vmem:[#allocation7 + $0x80] sm:$0xff] }
 0x28a   :  { %v716_v45 = vsel %vm713_vm14, %v715_v23, %v711_v52  ;;  %v731_v31 = vsel %vm730_vm13, %v1987_v50, %v727_v22  ;;  %v2921_v22 = vld [vmem:[#allocation7 + $0x110] sm:$0xff]  ;;  %v2928_v23 = vld [vmem:[#allocation7 + $0xf8] sm:$0xff]  ;;  %v2935_v50 = vld [vmem:[#allocation7 + $0xe0] sm:$0xff] }
 0x28b   :  { %v736_v61 = vsel %vm733_vm15, %v735_v59, %v731_v31  ;;  %v738_v36 = vmul.f32 %v716_v45, %v696_v56  ;;  %v2893_v45 = vld [vmem:[#allocation7 + $0x170] sm:$0xff]  ;;  %v2914_v59 = vld [vmem:[#allocation7 + $0x128] sm:$0xff]  ;;  %v2984_v31 = vld [vmem:[#allocation7 + $0x38] sm:$0xff] }
 0x28c   :  { %v743_v30 = vmul.f32 %v736_v61, %v2766_v26  ;;  %v741_v6 = vsub.f32 1.0, %v736_v61  ;;  %v2907_v61 = vld [vmem:[#allocation7 + $0x140] sm:$0xff]  ;;  %v2970_v56 = vld [vmem:[#allocation7 + $0x68] sm:$0xff]  ;;  %v2977_v52 = vld [vmem:[#allocation7 + $0x50] sm:$0xff]  ;;  %3696 = vst [vmem:[#allocation45_spill] sm:$0xff] %v2984_v31 }
 0x28d   :  { %v739_v49 = vadd.f32 %v738_v36, %v438_v55  ;;  %v2900_v36 = vld [vmem:[#allocation7 + $0x158] sm:$0xff]  ;;  %3694 = vst [vmem:[#allocation43_spill] sm:$0xff] %v2977_v52  ;;  %v2991_v55 = vld [vmem:[#allocation7 + $0x20] sm:$0xff] }
 0x28e   :  { %3698 = vst [vmem:[#allocation47_spill] sm:$0xff] %v2991_v55 }
 0x28f   :  { %1988 = vtanh.f32 %v739_v49 }
 0x295   :  { %v1989_v12 = vpop.eup %1988 }
 0x296   :  { %v742_v17 = vmul.f32 %v1989_v12, %v741_v6 }
 0x298   :  { %v744_v47 = vadd.f32 %v743_v30, %v742_v17  ;;  %v2998_v30 = vld [vmem:[#allocation7 + $0x8] sm:$0xff] }
 0x299   :  { %3700 = vst [vmem:[#allocation49_spill] sm:$0xff] %v2998_v30 }
 0x29a   :  { %v2884_v10 = vsel %vm637_vm0, %v744_v47, %v2766_v26  ;;  %v2897_v26 = vld [vmem:[#allocation7 + $0x150] sm:$0xff] }
 0x29b   :  { %765 = vmatmul.f32.vlgmr.msrb.gmra.mxu3 %v2884_v10  ;;  %785 = vmatmul.f32.vlgmr.msra.gmra.mxu0 %v2884_v10 }
 0x29c   :  { %805 = vmatmul.f32.vlgmr.msrb.gmra.mxu1 %v2884_v10  ;;  %1011 = vmatpush.msrb.mxu3 %v2465_v54  ;;  %v2904_v54 = vld [vmem:[#allocation7 + $0x138] sm:$0xff] }
 0x29d   :  { %1082 = vmatpush.msra.mxu0 %v2890_v25  ;;  %1102 = vmatpush.msrb.mxu1 %v2893_v45 }
 0x29e   :  { %1012 = vmatpush.msrb.mxu3 %v2468_v57  ;;  %v2911_v57 = vld [vmem:[#allocation7 + $0x120] sm:$0xff] }
 0x29f   :  { %1083 = vmatpush.msra.mxu0 %v2897_v26  ;;  %1103 = vmatpush.msrb.mxu1 %v2900_v36 }
 0x2a0   :  { %1013 = vmatpush.msrb.mxu3 %v2471_v60  ;;  %v2918_v60 = vld [vmem:[#allocation7 + $0x108] sm:$0xff] }
 0x2a1   :  { %1084 = vmatpush.msra.mxu0 %v2904_v54  ;;  %1104 = vmatpush.msrb.mxu1 %v2907_v61 }
 0x2a2   :  { %1014 = vmatpush.msrb.mxu3 %v2475_v63  ;;  %v2925_v63 = vld [vmem:[#allocation7 + $0xf0] sm:$0xff] }
 0x2a3   :  { %1085 = vmatpush.msra.mxu0 %v2911_v57  ;;  %1105 = vmatpush.msrb.mxu1 %v2914_v59 }
 0x2a4   :  { %1015 = vmatpush.msrb.mxu3 %v2477_v1  ;;  %v2932_v1 = vld [vmem:[#allocation7 + $0xd8] sm:$0xff] }
 0x2a5   :  { %1086 = vmatpush.msra.mxu0 %v2918_v60  ;;  %1106 = vmatpush.msrb.mxu1 %v2921_v22 }
 0x2a6   :  { %1016 = vmatpush.msrb.mxu3 %v2480_v3  ;;  %v2939_v3 = vld [vmem:[#allocation7 + $0xc0] sm:$0xff] }
 0x2a7   :  { %1087 = vmatpush.msra.mxu0 %v2925_v63  ;;  %1107 = vmatpush.msrb.mxu1 %v2928_v23 }
 0x2a8   :  { %1017 = vmatpush.msrb.mxu3 %v2486_v4  ;;  %v2946_v4 = vld [vmem:[#allocation7 + $0xa8] sm:$0xff] }
 0x2a9   :  { %1088 = vmatpush.msra.mxu0 %v2932_v1  ;;  %1108 = vmatpush.msrb.mxu1 %v2935_v50 }
 0x2aa   :  { %1018 = vmatpush.msrb.mxu3 %v2493_v5  ;;  %v2953_v5 = vld [vmem:[#allocation7 + $0x90] sm:$0xff] }
 0x2ab   :  { %1089 = vmatpush.msra.mxu0 %v2939_v3  ;;  %1109 = vmatpush.msrb.mxu1 %v2942_v16 }
 0x2ac   :  { %1019 = vmatpush.msrb.mxu3 %v2498_v7  ;;  %v2960_v7 = vld [vmem:[#allocation7 + $0x78] sm:$0xff] }
 0x2ad   :  { %1090 = vmatpush.msra.mxu0 %v2946_v4  ;;  %1110 = vmatpush.msrb.mxu1 %v2949_v19 }
 0x2ae   :  { %1020 = vmatpush.msrb.mxu3 %v2501_v8  ;;  %v2967_v8 = vld [vmem:[#allocation7 + $0x60] sm:$0xff] }
 0x2af   :  { %1091 = vmatpush.msra.mxu0 %v2953_v5  ;;  %1111 = vmatpush.msrb.mxu1 %v2956_v9 }
 0x2b0   :  { %1021 = vmatpush.msrb.mxu3 %v2506_v14  ;;  %v2974_v14 = vld [vmem:[#allocation7 + $0x48] sm:$0xff] }
 0x2b1   :  { %1092 = vmatpush.msra.mxu0 %v2960_v7  ;;  %1112 = vmatpush.msrb.mxu1 %v2963_v48 }
 0x2b2   :  { %1022 = vmatpush.msrb.mxu3 %v2513_v20  ;;  %v2981_v20 = vld [vmem:[#allocation7 + $0x30] sm:$0xff] }
 0x2b3   :  { %1093 = vmatpush.msra.mxu0 %v2967_v8  ;;  %1113 = vmatpush.msrb.mxu1 %v2970_v56  ;;  %3695 = vst [vmem:[#allocation44_spill] sm:$0xff] %v2981_v20 }
 0x2b4   :  { %1023 = vmatpush.msrb.mxu3 %v2518_v21  ;;  %v2988_v21 = vld [vmem:[#allocation7 + $0x18] sm:$0xff] }
 0x2b5   :  { %1094 = vmatpush.msra.mxu0 %v2974_v14  ;;  %1114 = vmatpush.msrb.mxu1 %v2977_v52  ;;  %3697 = vst [vmem:[#allocation46_spill] sm:$0xff] %v2988_v21 }
 0x2b6   :  { %1024 = vmatpush.msrb.mxu3 %v2521_v27  ;;  %v2995_v27 = vld [vmem:[#allocation7] sm:$0xff] }
 0x2b7   :  { %1095 = vmatpush.msra.mxu0 %v2981_v20  ;;  %1115 = vmatpush.msrb.mxu1 %v2984_v31  ;;  %3699 = vst [vmem:[#allocation48_spill] sm:$0xff] %v2995_v27 }
 0x2b8   :  { %1025 = vmatpush.msrb.mxu3 %v3662_v13  ;;  %v388_v13 = vadd.f32 %v2807_v11, %v3689_v62 }
 0x2b9   :  { %1096 = vmatpush.msra.mxu0 %v2988_v21  ;;  %1116 = vmatpush.msrb.mxu1 %v2991_v55 }
 0x2ba   :  { %1026 = vmatpush.msrb.mxu3 %v3665_v18  ;;  %v335_v18 = vadd.f32 %v2822_v28, %v3688_v0 }
 0x2bb   :  { %1097 = vmatpush.msra.mxu0 %v2995_v27  ;;  %1117 = vmatpush.msrb.mxu1 %v2998_v30 }
 0x318   :  { %v786_v49 = vpop.f32.mrf.mxu0 }
 0x319   :  { %v787_v6 = vadd.f32 %v786_v49, %v3691_v53 }
 0x31b   :  { %v829_v12 = vadd.f32 %v787_v6, %v388_v13 }
 0x31d   :  { %v1934_v17 = vmul.f32 -1.442695, %v829_v12 }
 0x31e   :  { %v766_v47 = vpop.f32.mrf.mxu3 }
 0x31f   :  { %1990 = vpow2.f32 %v1934_v17  ;;  %v767_v42 = vadd.f32 %v766_v47, %v3690_v58 }
 0x321   :  { %v809_v51 = vadd.f32 %v767_v42, %v335_v18  ;;  %v806_v42 = vpop.f32.mrf.mxu1 }
 0x323   :  { %v1933_v46 = vmul.f32 -1.442695, %v809_v51 }
 0x325   :  { %v1991_v44 = vpop.eup %1990  ;;  %1992 = vpow2.f32 %v1933_v46  ;;  %v807_v46 = vadd.f32 %v806_v42, %v2757_v33 }
 0x326   :  { %v833_v39 = vadd.f32 1.0, %v1991_v44 }
 0x328   :  { %1994 = vrcp.f32 %v833_v39  ;;  %vm839_vm6 = vweird.f32 %v833_v39  ;;  %v843_v38 = vand.u32 2147483647, %v833_v39 }
 0x32a   :  { %vm844_vm8 = vcmp.eq.f32.partialorder %v843_v38, 8.507059e+37  ;;  %v3023_v38 = vld [vmem:[#allocation7 + $0x160] sm:$0xff] }
 0x32b   :  { %v1993_v43 = vpop.eup %1992 }
 0x32c   :  { %v813_v35 = vadd.f32 1.0, %v1993_v43 }
 0x32e   :  { %1996 = vrcp.f32 %v813_v35  ;;  %v1995_v11 = vpop.eup %1994  ;;  %v825_v40 = vand.u32 2147483648, %v813_v35  ;;  %v823_v17 = vand.u32 2147483647, %v813_v35  ;;  %vm819_vm2 = vweird.f32 %v813_v35 }
 0x32f   :  { %v835_v49 = vmul.f32 %v1995_v11, %v833_v39  ;;  %vm840_vm5 = vweird.f32 %v1995_v11 }
 0x330   :  { %v826_v44 = vor.u32 1.1754944e-38, %v825_v40  ;;  %vm824_vm4 = vcmp.eq.f32.partialorder %v823_v17, 8.507059e+37  ;;  %vm841_vm7 = vmor %vm839_vm6, %vm840_vm5 }
 0x331   :  { %v836_v12 = vsub.f32 1.0, %v835_v49  ;;  %v441_v49 = vadd.f32 %v2826_v32, %v2760_v2 }
 0x333   :  { %v837_v47 = vmul.f32 %v1995_v11, %v836_v12 }
 0x334   :  { %v1997_v13 = vpop.eup %1996 }
 0x335   :  { %v815_v6 = vmul.f32 %v1997_v13, %v813_v35  ;;  %vm820_vm1 = vweird.f32 %v1997_v13  ;;  %v838_v29 = vadd.f32 %v1995_v11, %v837_v47 }
 0x336   :  { %vm821_vm3 = vmor %vm819_vm2, %vm820_vm1  ;;  %vm859_vm2 = vcmp.gt.s32.totalorder %v2763_v15, 3 }
 0x337   :  { %v816_v41 = vsub.f32 1.0, %v815_v6  ;;  %v845_v6 = vand.u32 2147483648, %v833_v39  ;;  %v3028_v39 = vld [vmem:[#allocation7 + $0x148] sm:$0xff] }
 0x339   :  { %v817_v28 = vmul.f32 %v1997_v13, %v816_v41  ;;  %v846_v35 = vor.u32 1.1754944e-38, %v845_v6  ;;  %v3068_v6 = vld [vmem:[#allocation7 + $0x88] sm:$0xff] }
 0x33b   :  { %v818_v51 = vadd.f32 %v1997_v13, %v817_v28  ;;  %v842_v28 = vsel %vm841_vm7, %v1995_v11, %v838_v29  ;;  %v3018_v29 = vld [vmem:[#allocation7 + $0x178] sm:$0xff] }
 0x33c   :  { %v847_v40 = vsel %vm844_vm8, %v846_v35, %v842_v28  ;;  %v3038_v11 = vld [vmem:[#allocation7 + $0x118] sm:$0xff]  ;;  %v3083_v28 = vld [vmem:[#allocation7 + $0x40] sm:$0xff]  ;;  %v3088_v35 = vld [vmem:[#allocation7 + $0x28] sm:$0xff] }
 0x33d   :  { %v822_v43 = vsel %vm821_vm3, %v1997_v13, %v818_v51  ;;  %v852_v42 = vsub.f32 1.0, %v847_v40  ;;  %v854_v47 = vmul.f32 %v847_v40, %v2884_v10  ;;  %3701 = vst [vmem:[#allocation50_spill] sm:$0xff] %v3083_v28  ;;  %v3093_v40 = vld [vmem:[#allocation7 + $0x10] sm:$0xff] }
 0x33e   :  { %v827_v18 = vsel %vm824_vm4, %v826_v44, %v822_v43  ;;  %v3043_v44 = vld [vmem:[#allocation7 + $0x100] sm:$0xff]  ;;  %v3053_v43 = vld [vmem:[#allocation7 + $0xd0] sm:$0xff]  ;;  %3702 = vst [vmem:[#allocation51_spill] sm:$0xff] %v3088_v35 }
 0x33f   :  { %v849_v41 = vmul.f32 %v827_v18, %v807_v46  ;;  %v3048_v46 = vld [vmem:[#allocation7 + $0xe8] sm:$0xff]  ;;  %v3058_v18 = vld [vmem:[#allocation7 + $0xb8] sm:$0xff]  ;;  %3703 = vst [vmem:[#allocation52_spill] sm:$0xff] %v3093_v40 }
 0x341   :  { %v850_v12 = vadd.f32 %v849_v41, %v441_v49  ;;  %v3063_v49 = vld [vmem:[#allocation7 + $0xa0] sm:$0xff]  ;;  %v3073_v41 = vld [vmem:[#allocation7 + $0x70] sm:$0xff] }
 0x343   :  { %1998 = vtanh.f32 %v850_v12  ;;  %v3078_v12 = vld [vmem:[#allocation7 + $0x58] sm:$0xff] }
 0x349   :  { %v1999_v13 = vpop.eup %1998 }
 0x34a   :  { %v853_v17 = vmul.f32 %v1999_v13, %v852_v42 }
 0x34c   :  { %v855_v51 = vadd.f32 %v854_v47, %v853_v17  ;;  %v338_v17 = vadd.f32 %v2828_v34, %v3688_v0  ;;  %v391_v47 = vadd.f32 %v2818_v24, %v3689_v62 }
 0x34e   :  { %v3013_v32 = vsel %vm748_vm9, %v855_v51, %v2884_v10  ;;  %v3033_v10 = vld [vmem:[#allocation7 + $0x130] sm:$0xff] }
 0x34f   :  { %876 = vmatmul.f32.vlgmr.msra.gmra.mxu2 %v3013_v32  ;;  %896 = vmatmul.f32.vlgmr.msra.gmra.mxu3 %v3013_v32 }
 0x350   :  { %916 = vmatmul.f32.vlgmr.msrb.gmra.mxu0 %v3013_v32  ;;  %1122 = vmatpush.msra.mxu2 %v3018_v29 }
 0x351   :  { %1193 = vmatpush.msra.mxu3 %v2890_v25  ;;  %1213 = vmatpush.msrb.mxu0 %v2893_v45 }
 0x352   :  { %1123 = vmatpush.msra.mxu2 %v3023_v38 }
 0x353   :  { %1194 = vmatpush.msra.mxu3 %v2897_v26  ;;  %1214 = vmatpush.msrb.mxu0 %v2900_v36 }
 0x354   :  { %1124 = vmatpush.msra.mxu2 %v3028_v39 }
 0x355   :  { %1195 = vmatpush.msra.mxu3 %v2904_v54  ;;  %1215 = vmatpush.msrb.mxu0 %v2907_v61 }
 0x356   :  { %1125 = vmatpush.msra.mxu2 %v3033_v10 }
 0x357   :  { %1196 = vmatpush.msra.mxu3 %v2911_v57  ;;  %1216 = vmatpush.msrb.mxu0 %v2914_v59 }
 0x358   :  { %1126 = vmatpush.msra.mxu2 %v3038_v11 }
 0x359   :  { %1197 = vmatpush.msra.mxu3 %v2918_v60  ;;  %1217 = vmatpush.msrb.mxu0 %v2921_v22 }
 0x35a   :  { %1127 = vmatpush.msra.mxu2 %v3043_v44 }
 0x35b   :  { %1198 = vmatpush.msra.mxu3 %v2925_v63  ;;  %1218 = vmatpush.msrb.mxu0 %v2928_v23 }
 0x35c   :  { %1128 = vmatpush.msra.mxu2 %v3048_v46 }
 0x35d   :  { %1199 = vmatpush.msra.mxu3 %v2932_v1  ;;  %1219 = vmatpush.msrb.mxu0 %v2935_v50 }
 0x35e   :  { %1129 = vmatpush.msra.mxu2 %v3053_v43 }
 0x35f   :  { %1200 = vmatpush.msra.mxu3 %v2939_v3  ;;  %1220 = vmatpush.msrb.mxu0 %v2942_v16 }
 0x360   :  { %1130 = vmatpush.msra.mxu2 %v3058_v18 }
 0x361   :  { %1201 = vmatpush.msra.mxu3 %v2946_v4  ;;  %1221 = vmatpush.msrb.mxu0 %v2949_v19 }
 0x362   :  { %1131 = vmatpush.msra.mxu2 %v3063_v49 }
 0x363   :  { %1202 = vmatpush.msra.mxu3 %v2953_v5  ;;  %1222 = vmatpush.msrb.mxu0 %v2956_v9 }
 0x364   :  { %1132 = vmatpush.msra.mxu2 %v3068_v6 }
 0x365   :  { %1203 = vmatpush.msra.mxu3 %v2960_v7  ;;  %1223 = vmatpush.msrb.mxu0 %v2963_v48 }
 0x366   :  { %1133 = vmatpush.msra.mxu2 %v3073_v41 }
 0x367   :  { %1204 = vmatpush.msra.mxu3 %v2967_v8  ;;  %1224 = vmatpush.msrb.mxu0 %v2970_v56 }
 0x368   :  { %1134 = vmatpush.msra.mxu2 %v3078_v12 }
 0x369   :  { %1205 = vmatpush.msra.mxu3 %v2974_v14  ;;  %1225 = vmatpush.msrb.mxu0 %v2977_v52 }
 0x36a   :  { %1135 = vmatpush.msra.mxu2 %v3083_v28 }
 0x36b   :  { %1206 = vmatpush.msra.mxu3 %v2981_v20  ;;  %1226 = vmatpush.msrb.mxu0 %v2984_v31 }
 0x36c   :  { %1136 = vmatpush.msra.mxu2 %v3088_v35 }
 0x36d   :  { %1207 = vmatpush.msra.mxu3 %v2988_v21  ;;  %1227 = vmatpush.msrb.mxu0 %v2991_v55 }
 0x36e   :  { %1137 = vmatpush.msra.mxu2 %v3093_v40 }
 0x36f   :  { %1208 = vmatpush.msra.mxu3 %v2995_v27  ;;  %1228 = vmatpush.msrb.mxu0 %v2998_v30 }
 0x3d2   :  { %v877_v42 = vpop.f32.mrf.mxu2  ;;  %v897_v13 = vpop.f32.mrf.mxu3 }
 0x3d3   :  { %v878_v51 = vadd.f32 %v877_v42, %v3690_v58  ;;  %v898_v55 = vadd.f32 %v897_v13, %v3691_v53 }
 0x3d5   :  { %v920_v21 = vadd.f32 %v878_v51, %v338_v17  ;;  %v940_v35 = vadd.f32 %v898_v55, %v391_v47 }
 0x3d7   :  { %v1935_v31 = vmul.f32 -1.442695, %v920_v21  ;;  %v1936_v40 = vmul.f32 -1.442695, %v940_v35  ;;  %v917_v21 = vpop.f32.mrf.mxu0 }
 0x3d9   :  { %2000 = vpow2.f32 %v1935_v31 }
 0x3da   :  { %2002 = vpow2.f32 %v1936_v40 }
 0x3df   :  { %v2001_v27 = vpop.eup %2000 }
 0x3e0   :  { %v2003_v30 = vpop.eup %2002  ;;  %v924_v20 = vadd.f32 1.0, %v2001_v27  ;;  %v918_v27 = vadd.f32 %v917_v21, %v2757_v33 }
 0x3e1   :  { %v944_v28 = vadd.f32 1.0, %v2003_v30 }
 0x3e2   :  { %2004 = vrcp.f32 %v924_v20  ;;  %v936_v42 = vand.u32 2147483648, %v924_v20  ;;  %v934_v55 = vand.u32 2147483647, %v924_v20  ;;  %vm930_vm11 = vweird.f32 %v924_v20 }
 0x3e3   :  { %2006 = vrcp.f32 %v944_v28  ;;  %vm950_vm15 = vweird.f32 %v944_v28 }
 0x3e4   :  { %v937_v40 = vor.u32 1.1754944e-38, %v936_v42  ;;  %vm935_vm13 = vcmp.eq.f32.partialorder %v934_v55, 8.507059e+37 }
 0x3e8   :  { %v2005_v34 = vpop.eup %2004 }
 0x3e9   :  { %v2007_v0 = vpop.eup %2006  ;;  %v926_v52 = vmul.f32 %v2005_v34, %v924_v20  ;;  %vm931_vm10 = vweird.f32 %v2005_v34 }
 0x3ea   :  { %v946_v24 = vmul.f32 %v2007_v0, %v944_v28  ;;  %vm932_vm12 = vmor %vm930_vm11, %vm931_vm10  ;;  %vm951_vm14 = vweird.f32 %v2007_v0  ;;  %vm970_vm11 = vcmp.gt.s32.totalorder %v2763_v15, 4 }
 0x3eb   :  { %v927_v62 = vsub.f32 1.0, %v926_v52  ;;  %v444_v52 = vadd.f32 %v2832_v37, %v2760_v2  ;;  %vm952_vm0 = vmor %vm950_vm15, %vm951_vm14 }
 0x3ec   :  { %v947_v58 = vsub.f32 1.0, %v946_v24  ;;  %v954_v24 = vand.u32 2147483647, %v944_v28 }
 0x3ed   :  { %v928_v13 = vmul.f32 %v2005_v34, %v927_v62  ;;  %v956_v62 = vand.u32 2147483648, %v944_v28  ;;  %v3706_v28 = vld [vmem:[#allocation44_spill] sm:$0xff] }
 0x3ee   :  { %v948_v35 = vmul.f32 %v2007_v0, %v947_v58  ;;  %vm955_vm1 = vcmp.eq.f32.partialorder %v954_v24, 8.507059e+37  ;;  %v3714_v24 = vld [vmem:[#allocation23_spill] sm:$0xff] }
 0x3ef   :  { %v929_v31 = vadd.f32 %v2005_v34, %v928_v13  ;;  %v957_v20 = vor.u32 1.1754944e-38, %v956_v62 }
 0x3f0   :  { %v949_v47 = vadd.f32 %v2007_v0, %v948_v35 }
 0x3f1   :  { %v933_v30 = vsel %vm932_vm12, %v2005_v34, %v929_v31 }
 0x3f2   :  { %v938_v17 = vsel %vm935_vm13, %v937_v40, %v933_v30  ;;  %v953_v13 = vsel %vm952_vm0, %v2007_v0, %v949_v47  ;;  %v3704_v0 = vld [vmem:[#allocation43_spill] sm:$0xff]  ;;  %v3707_v40 = vld [vmem:[#allocation45_spill] sm:$0xff]  ;;  %v3709_v30 = vld [vmem:[#allocation46_spill] sm:$0xff] }
 0x3f3   :  { %v960_v51 = vmul.f32 %v938_v17, %v918_v27  ;;  %v958_v42 = vsel %vm955_vm1, %v957_v20, %v953_v13  ;;  %v3708_v27 = vld [vmem:[#allocation51_spill] sm:$0xff]  ;;  %v3711_v47 = vld [vmem:[#allocation52_spill] sm:$0xff]  ;;  %v3716_v20 = vld [vmem:[#allocation22_spill] sm:$0xff] }
 0x3f4   :  { %v963_v21 = vsub.f32 1.0, %v958_v42  ;;  %v965_v35 = vmul.f32 %v958_v42, %v3013_v32  ;;  %v3710_v17 = vld [vmem:[#allocation47_spill] sm:$0xff] }
 0x3f5   :  { %v961_v58 = vadd.f32 %v960_v51, %v444_v52  ;;  %v3712_v52 = vld [vmem:[#allocation48_spill] sm:$0xff]  ;;  %v3713_v51 = vld [vmem:[#allocation49_spill] sm:$0xff] }
 0x3f7   :  { %2008 = vtanh.f32 %v961_v58  ;;  %v3715_v58 = vld [vmem:[#allocation15_spill] sm:$0xff] }
 0x3f8   :  { %v341_v13 = vadd.f32 %v3715_v58, %v3714_v24 }
 0x3fd   :  { %v2009_v34 = vpop.eup %2008 }
 0x3fe   :  { %v964_v55 = vmul.f32 %v2009_v34, %v963_v21 }
 0x400   :  { %v966_v31 = vadd.f32 %v965_v35, %v964_v55  ;;  %v3717_v35 = vld [vmem:[#allocation27_spill] sm:$0xff] }
 0x402   :  { %v3110_v37 = vsel %vm859_vm2, %v966_v31, %v3013_v32  ;;  %v3705_v32 = vld [vmem:[#allocation50_spill] sm:$0xff]  ;;  %v3718_v31 = vld [vmem:[#allocation17_spill] sm:$0xff] }
 0x403   :  { %987 = vmatmul.f32.vlgmr.msra.gmra.mxu1 %v3110_v37  ;;  %1007 = vmatmul.f32.vlgmr.msrb.gmra.mxu2 %v3110_v37 }
 0x404   :  { %1027 = vmatmul.f32.vlgmr.msrb.gmra.mxu3 %v3110_v37  ;;  %1233 = vmatpush.msra.mxu1 %v3018_v29 }
 0x405   :  { %1304 = vmatpush.msrb.mxu2 %v2890_v25  ;;  %1324 = vmatpush.msrb.mxu3 %v2893_v45 }
 0x406   :  { %1234 = vmatpush.msra.mxu1 %v3023_v38 }
 0x407   :  { %1305 = vmatpush.msrb.mxu2 %v2897_v26  ;;  %1325 = vmatpush.msrb.mxu3 %v2900_v36 }
 0x408   :  { %1235 = vmatpush.msra.mxu1 %v3028_v39 }
 0x409   :  { %1306 = vmatpush.msrb.mxu2 %v2904_v54  ;;  %1326 = vmatpush.msrb.mxu3 %v2907_v61 }
 0x40a   :  { %1236 = vmatpush.msra.mxu1 %v3033_v10 }
 0x40b   :  { %1307 = vmatpush.msrb.mxu2 %v2911_v57  ;;  %1327 = vmatpush.msrb.mxu3 %v2914_v59 }
 0x40c   :  { %1237 = vmatpush.msra.mxu1 %v3038_v11 }
 0x40d   :  { %1308 = vmatpush.msrb.mxu2 %v2918_v60  ;;  %1328 = vmatpush.msrb.mxu3 %v2921_v22 }
 0x40e   :  { %1238 = vmatpush.msra.mxu1 %v3043_v44 }
 0x40f   :  { %1309 = vmatpush.msrb.mxu2 %v2925_v63  ;;  %1329 = vmatpush.msrb.mxu3 %v2928_v23 }
 0x410   :  { %1239 = vmatpush.msra.mxu1 %v3048_v46 }
 0x411   :  { %1310 = vmatpush.msrb.mxu2 %v2932_v1  ;;  %1330 = vmatpush.msrb.mxu3 %v2935_v50 }
 0x412   :  { %1240 = vmatpush.msra.mxu1 %v3053_v43 }
 0x413   :  { %1311 = vmatpush.msrb.mxu2 %v2939_v3  ;;  %1331 = vmatpush.msrb.mxu3 %v2942_v16 }
 0x414   :  { %1241 = vmatpush.msra.mxu1 %v3058_v18 }
 0x415   :  { %1312 = vmatpush.msrb.mxu2 %v2946_v4  ;;  %1332 = vmatpush.msrb.mxu3 %v2949_v19 }
 0x416   :  { %1242 = vmatpush.msra.mxu1 %v3063_v49 }
 0x417   :  { %1313 = vmatpush.msrb.mxu2 %v2953_v5  ;;  %1333 = vmatpush.msrb.mxu3 %v2956_v9 }
 0x418   :  { %1243 = vmatpush.msra.mxu1 %v3068_v6 }
 0x419   :  { %1314 = vmatpush.msrb.mxu2 %v2960_v7  ;;  %1334 = vmatpush.msrb.mxu3 %v2963_v48 }
 0x41a   :  { %1244 = vmatpush.msra.mxu1 %v3073_v41 }
 0x41b   :  { %1315 = vmatpush.msrb.mxu2 %v2967_v8  ;;  %1335 = vmatpush.msrb.mxu3 %v2970_v56 }
 0x41c   :  { %1245 = vmatpush.msra.mxu1 %v3078_v12 }
 0x41d   :  { %1316 = vmatpush.msrb.mxu2 %v2974_v14  ;;  %1336 = vmatpush.msrb.mxu3 %v3704_v0 }
 0x41e   :  { %1246 = vmatpush.msra.mxu1 %v3705_v32 }
 0x41f   :  { %1317 = vmatpush.msrb.mxu2 %v3706_v28  ;;  %1337 = vmatpush.msrb.mxu3 %v3707_v40 }
 0x420   :  { %1247 = vmatpush.msra.mxu1 %v3708_v27 }
 0x421   :  { %1318 = vmatpush.msrb.mxu2 %v3709_v30  ;;  %1338 = vmatpush.msrb.mxu3 %v3710_v17  ;;  %v394_v30 = vadd.f32 %v3718_v31, %v3717_v35 }
 0x422   :  { %1248 = vmatpush.msra.mxu1 %v3711_v47 }
 0x423   :  { %1319 = vmatpush.msrb.mxu2 %v3712_v52  ;;  %1339 = vmatpush.msrb.mxu3 %v3713_v51 }
 0x480   :  { %v988_v62 = vpop.f32.mrf.mxu1 }
 0x481   :  { %v989_v42 = vadd.f32 %v988_v62, %v3716_v20 }
 0x483   :  { %v1031_v21 = vadd.f32 %v989_v42, %v341_v13 }
 0x485   :  { %v1937_v34 = vmul.f32 -1.442695, %v1031_v21 }
 0x486   :  { %v1008_v55 = vpop.f32.mrf.mxu2 }
 0x487   :  { %2010 = vpow2.f32 %v1937_v34  ;;  %v1009_v17 = vadd.f32 %v1008_v55, %v3691_v53  ;;  %v1028_v34 = vpop.f32.mrf.mxu3 }
 0x489   :  { %v1051_v47 = vadd.f32 %v1009_v17, %v394_v30  ;;  %v1029_v17 = vadd.f32 %v1028_v34, %v2757_v33 }
 0x48b   :  { %v1938_v27 = vmul.f32 -1.442695, %v1051_v47 }
 0x48d   :  { %v2011_v52 = vpop.eup %2010  ;;  %2012 = vpow2.f32 %v1938_v27 }
 0x48e   :  { %v1035_v51 = vadd.f32 1.0, %v2011_v52 }
 0x490   :  { %2014 = vrcp.f32 %v1035_v51  ;;  %v1047_v42 = vand.u32 2147483648, %v1035_v51  ;;  %v1045_v20 = vand.u32 2147483647, %v1035_v51  ;;  %vm1041_vm4 = vweird.f32 %v1035_v51 }
 0x492   :  { %v1048_v30 = vor.u32 1.1754944e-38, %v1047_v42  ;;  %vm1046_vm6 = vcmp.eq.f32.partialorder %v1045_v20, 8.507059e+37 }
 0x493   :  { %v2013_v40 = vpop.eup %2012 }
 0x494   :  { %v1055_v28 = vadd.f32 1.0, %v2013_v40  ;;  %v3719_v40 = vld [vmem:[#allocation21_spill] sm:$0xff] }
 0x495   :  { %v447_v52 = vadd.f32 %v3719_v40, %v2760_v2  ;;  %v3729_v40 = vld [vmem:[#allocation49_spill] sm:$0xff] }
 0x496   :  { %v2015_v58 = vpop.eup %2014  ;;  %2016 = vrcp.f32 %v1055_v28  ;;  %v1065_v32 = vand.u32 2147483647, %v1055_v28  ;;  %vm1061_vm8 = vweird.f32 %v1055_v28 }
 0x497   :  { %v1037_v62 = vmul.f32 %v2015_v58, %v1035_v51  ;;  %vm1042_vm3 = vweird.f32 %v2015_v58 }
 0x498   :  { %vm1043_vm5 = vmor %vm1041_vm4, %vm1042_vm3  ;;  %vm1066_vm10 = vcmp.eq.f32.partialorder %v1065_v32, 8.507059e+37  ;;  %v3723_v32 = vld [vmem:[#allocation45_spill] sm:$0xff]  ;;  %vm1081_vm4 = vcmp.gt.s32.totalorder %v2763_v15, 5 }
 0x499   :  { %v1038_v13 = vsub.f32 1.0, %v1037_v62 }
 0x49b   :  { %v1039_v21 = vmul.f32 %v2015_v58, %v1038_v13  ;;  %v1067_v13 = vand.u32 2147483648, %v1055_v28 }
 0x49c   :  { %v2017_v31 = vpop.eup %2016 }
 0x49d   :  { %v1057_v35 = vmul.f32 %v2017_v31, %v1055_v28  ;;  %v1040_v55 = vadd.f32 %v2015_v58, %v1039_v21  ;;  %vm1062_vm7 = vweird.f32 %v2017_v31  ;;  %v1068_v51 = vor.u32 1.1754944e-38, %v1067_v13  ;;  %v3724_v28 = vld [vmem:[#allocation51_spill] sm:$0xff] }
 0x49e   :  { %vm1063_vm9 = vmor %vm1061_vm8, %vm1062_vm7  ;;  %v3730_v13 = vld [vmem:[#allocation23_spill] sm:$0xff] }
 0x49f   :  { %v1058_v27 = vsub.f32 1.0, %v1057_v35  ;;  %v1044_v47 = vsel %vm1043_vm5, %v2015_v58, %v1040_v55 }
 0x4a0   :  { %v1049_v62 = vsel %vm1046_vm6, %v1048_v30, %v1044_v47  ;;  %v3728_v47 = vld [vmem:[#allocation48_spill] sm:$0xff] }
 0x4a1   :  { %v1059_v53 = vmul.f32 %v2017_v31, %v1058_v27  ;;  %v1071_v24 = vmul.f32 %v1049_v62, %v1029_v17  ;;  %v3727_v17 = vld [vmem:[#allocation52_spill] sm:$0xff] }
 0x4a3   :  { %v1060_v0 = vadd.f32 %v2017_v31, %v1059_v53  ;;  %v1072_v21 = vadd.f32 %v1071_v24, %v447_v52  ;;  %v3720_v53 = vld [vmem:[#allocation43_spill] sm:$0xff]  ;;  %v3725_v24 = vld [vmem:[#allocation46_spill] sm:$0xff] }
 0x4a5   :  { %v1064_v42 = vsel %vm1063_vm9, %v2017_v31, %v1060_v0  ;;  %2018 = vtanh.f32 %v1072_v21  ;;  %v3722_v0 = vld [vmem:[#allocation44_spill] sm:$0xff]  ;;  %v3726_v31 = vld [vmem:[#allocation47_spill] sm:$0xff] }
 0x4a6   :  { %v1069_v35 = vsel %vm1066_vm10, %v1068_v51, %v1064_v42  ;;  %v3731_v21 = vld [vmem:[#allocation16_spill] sm:$0xff]  ;;  %v3732_v42 = vld [vmem:[#allocation27_spill] sm:$0xff] }
 0x4a7   :  { %v1074_v58 = vsub.f32 1.0, %v1069_v35  ;;  %v1076_v55 = vmul.f32 %v1069_v35, %v3110_v37  ;;  %v344_v51 = vadd.f32 %v3731_v21, %v3730_v13  ;;  %v3733_v35 = vld [vmem:[#allocation20_spill] sm:$0xff] }
 0x4ab   :  { %v2019_v20 = vpop.eup %2018 }
 0x4ac   :  { %v1075_v34 = vmul.f32 %v2019_v20, %v1074_v58  ;;  %v397_v58 = vadd.f32 %v3733_v35, %v3732_v42  ;;  %v3734_v20 = vld [vmem:[#allocation22_spill] sm:$0xff] }
 0x4ae   :  { %v1077_v30 = vadd.f32 %v1076_v55, %v1075_v34  ;;  %v3735_v55 = vld [vmem:[#allocation26_spill] sm:$0xff] }
 0x4b0   :  { %v3175_v27 = vsel %vm970_vm11, %v1077_v30, %v3110_v37  ;;  %v3721_v37 = vld [vmem:[#allocation50_spill] sm:$0xff] }
 0x4b1   :  { %1098 = vmatmul.f32.vlgmr.msra.gmra.mxu0 %v3175_v27  ;;  %1118 = vmatmul.f32.vlgmr.msrb.gmra.mxu1 %v3175_v27 }
 0x4b2   :  { %1138 = vmatmul.f32.vlgmr.msra.gmra.mxu2 %v3175_v27  ;;  %1344 = vmatpush.msra.mxu0 %v3018_v29 }
 0x4b3   :  { %1415 = vmatpush.msrb.mxu1 %v2890_v25  ;;  %1435 = vmatpush.msra.mxu2 %v2893_v45 }
 0x4b4   :  { %1345 = vmatpush.msra.mxu0 %v3023_v38 }
 0x4b5   :  { %1416 = vmatpush.msrb.mxu1 %v2897_v26  ;;  %1436 = vmatpush.msra.mxu2 %v2900_v36 }
 0x4b6   :  { %1346 = vmatpush.msra.mxu0 %v3028_v39 }
 0x4b7   :  { %1417 = vmatpush.msrb.mxu1 %v2904_v54  ;;  %1437 = vmatpush.msra.mxu2 %v2907_v61 }
 0x4b8   :  { %1347 = vmatpush.msra.mxu0 %v3033_v10 }
 0x4b9   :  { %1418 = vmatpush.msrb.mxu1 %v2911_v57  ;;  %1438 = vmatpush.msra.mxu2 %v2914_v59 }
 0x4ba   :  { %1348 = vmatpush.msra.mxu0 %v3038_v11 }
 0x4bb   :  { %1419 = vmatpush.msrb.mxu1 %v2918_v60  ;;  %1439 = vmatpush.msra.mxu2 %v2921_v22 }
 0x4bc   :  { %1349 = vmatpush.msra.mxu0 %v3043_v44 }
 0x4bd   :  { %1420 = vmatpush.msrb.mxu1 %v2925_v63  ;;  %1440 = vmatpush.msra.mxu2 %v2928_v23 }
 0x4be   :  { %1350 = vmatpush.msra.mxu0 %v3048_v46 }
 0x4bf   :  { %1421 = vmatpush.msrb.mxu1 %v2932_v1  ;;  %1441 = vmatpush.msra.mxu2 %v2935_v50 }
 0x4c0   :  { %1351 = vmatpush.msra.mxu0 %v3053_v43 }
 0x4c1   :  { %1422 = vmatpush.msrb.mxu1 %v2939_v3  ;;  %1442 = vmatpush.msra.mxu2 %v2942_v16 }
 0x4c2   :  { %1352 = vmatpush.msra.mxu0 %v3058_v18 }
 0x4c3   :  { %1423 = vmatpush.msrb.mxu1 %v2946_v4  ;;  %1443 = vmatpush.msra.mxu2 %v2949_v19 }
 0x4c4   :  { %1353 = vmatpush.msra.mxu0 %v3063_v49 }
 0x4c5   :  { %1424 = vmatpush.msrb.mxu1 %v2953_v5  ;;  %1444 = vmatpush.msra.mxu2 %v2956_v9 }
 0x4c6   :  { %1354 = vmatpush.msra.mxu0 %v3068_v6 }
 0x4c7   :  { %1425 = vmatpush.msrb.mxu1 %v2960_v7  ;;  %1445 = vmatpush.msra.mxu2 %v2963_v48 }
 0x4c8   :  { %1355 = vmatpush.msra.mxu0 %v3073_v41 }
 0x4c9   :  { %1426 = vmatpush.msrb.mxu1 %v2967_v8  ;;  %1446 = vmatpush.msra.mxu2 %v2970_v56 }
 0x4ca   :  { %1356 = vmatpush.msra.mxu0 %v3078_v12 }
 0x4cb   :  { %1427 = vmatpush.msrb.mxu1 %v2974_v14  ;;  %1447 = vmatpush.msra.mxu2 %v3720_v53 }
 0x4cc   :  { %1357 = vmatpush.msra.mxu0 %v3721_v37 }
 0x4cd   :  { %1428 = vmatpush.msrb.mxu1 %v3722_v0  ;;  %1448 = vmatpush.msra.mxu2 %v3723_v32 }
 0x4ce   :  { %1358 = vmatpush.msra.mxu0 %v3724_v28 }
 0x4cf   :  { %1429 = vmatpush.msrb.mxu1 %v3725_v24  ;;  %1449 = vmatpush.msra.mxu2 %v3726_v31 }
 0x4d0   :  { %1359 = vmatpush.msra.mxu0 %v3727_v17 }
 0x4d1   :  { %1430 = vmatpush.msrb.mxu1 %v3728_v47  ;;  %1450 = vmatpush.msra.mxu2 %v3729_v40 }
 0x52e   :  { %v1099_v52 = vpop.f32.mrf.mxu0  ;;  %v1119_v62 = vpop.f32.mrf.mxu1 }
 0x52f   :  { %v1100_v34 = vadd.f32 %v1099_v52, %v3734_v20  ;;  %v1120_v30 = vadd.f32 %v1119_v62, %v3735_v55 }
 0x531   :  { %v1142_v24 = vadd.f32 %v1100_v34, %v344_v51  ;;  %v1162_v31 = vadd.f32 %v1120_v30, %v397_v58 }
 0x533   :  { %v1939_v28 = vmul.f32 -1.442695, %v1142_v24  ;;  %v1940_v17 = vmul.f32 -1.442695, %v1162_v31 }
 0x535   :  { %2020 = vpow2.f32 %v1939_v28  ;;  %v1139_v31 = vpop.f32.mrf.mxu2 }
 0x536   :  { %2022 = vpow2.f32 %v1940_v17 }
 0x53b   :  { %v2021_v47 = vpop.eup %2020 }
 0x53c   :  { %v2023_v40 = vpop.eup %2022  ;;  %v1146_v32 = vadd.f32 1.0, %v2021_v47  ;;  %v1140_v47 = vadd.f32 %v1139_v31, %v2757_v33 }
 0x53d   :  { %v1166_v0 = vadd.f32 1.0, %v2023_v40 }
 0x53e   :  { %2024 = vrcp.f32 %v1146_v32  ;;  %v1158_v20 = vand.u32 2147483648, %v1146_v32  ;;  %v1156_v51 = vand.u32 2147483647, %v1146_v32  ;;  %vm1152_vm13 = vweird.f32 %v1146_v32 }
 0x53f   :  { %2026 = vrcp.f32 %v1166_v0  ;;  %vm1172_vm1 = vweird.f32 %v1166_v0  ;;  %v1176_v55 = vand.u32 2147483647, %v1166_v0 }
 0x540   :  { %v1159_v17 = vor.u32 1.1754944e-38, %v1158_v20  ;;  %vm1157_vm15 = vcmp.eq.f32.partialorder %v1156_v51, 8.507059e+37 }
 0x541   :  { %vm1177_vm3 = vcmp.eq.f32.partialorder %v1176_v55, 8.507059e+37 }
 0x544   :  { %v2025_v21 = vpop.eup %2024 }
 0x545   :  { %v2027_v13 = vpop.eup %2026  ;;  %v1148_v37 = vmul.f32 %v2025_v21, %v1146_v32  ;;  %vm1153_vm12 = vweird.f32 %v2025_v21 }
 0x546   :  { %v1168_v35 = vmul.f32 %v2027_v13, %v1166_v0  ;;  %vm1154_vm14 = vmor %vm1152_vm13, %vm1153_vm12  ;;  %vm1173_vm0 = vweird.f32 %v2027_v13  ;;  %vm1192_vm13 = vcmp.gt.s32.totalorder %v2763_v15, 6 }
 0x547   :  { %v1149_v42 = vsub.f32 1.0, %v1148_v37  ;;  %v3736_v37 = vld [vmem:[#allocation28_spill] sm:$0xff]  ;;  %vm1174_vm2 = vmor %vm1172_vm1, %vm1173_vm0 }
 0x548   :  { %v1169_v52 = vsub.f32 1.0, %v1168_v35  ;;  %v450_v30 = vadd.f32 %v3736_v37, %v2760_v2  ;;  %v1178_v35 = vand.u32 2147483648, %v1166_v0 }
 0x549   :  { %v1150_v62 = vmul.f32 %v2025_v21, %v1149_v42 }
 0x54a   :  { %v1170_v24 = vmul.f32 %v2027_v13, %v1169_v52  ;;  %v1179_v32 = vor.u32 1.1754944e-38, %v1178_v35 }
 0x54b   :  { %v1151_v28 = vadd.f32 %v2025_v21, %v1150_v62 }
 0x54c   :  { %v1171_v34 = vadd.f32 %v2027_v13, %v1170_v24 }
 0x54d   :  { %v1155_v40 = vsel %vm1154_vm14, %v2025_v21, %v1151_v28 }
 0x54e   :  { %v1160_v58 = vsel %vm1157_vm15, %v1159_v17, %v1155_v40  ;;  %v1175_v62 = vsel %vm1174_vm2, %v2027_v13, %v1171_v34 }
 0x54f   :  { %v1182_v42 = vmul.f32 %v1160_v58, %v1140_v47  ;;  %v1180_v20 = vsel %vm1177_vm3, %v1179_v32, %v1175_v62 }
 0x550   :  { %v1185_v31 = vsub.f32 1.0, %v1180_v20  ;;  %v1187_v28 = vmul.f32 %v1180_v20, %v3175_v27 }
 0x551   :  { %v1183_v52 = vadd.f32 %v1182_v42, %v450_v30 }
 0x553   :  { %2028 = vtanh.f32 %v1183_v52 }
 0x559   :  { %v2029_v21 = vpop.eup %2028 }
 0x55a   :  { %v1186_v51 = vmul.f32 %v2029_v21, %v1185_v31 }
 0x55c   :  { %v1188_v24 = vadd.f32 %v1187_v28, %v1186_v51 }
 0x55e   :  { %v3240_v17 = vsel %vm1081_vm4, %v1188_v24, %v3175_v27  ;;  %v3752_v24 = vld [vmem:[#allocation31_spill] sm:$0xff] }
 0x55f   :  { %1209 = vmatmul.f32.vlgmr.msra.gmra.mxu3 %v3240_v17  ;;  %1229 = vmatmul.f32.vlgmr.msrb.gmra.mxu0 %v3240_v17 }
 0x560   :  { %1249 = vmatmul.f32.vlgmr.msra.gmra.mxu1 %v3240_v17  ;;  %1455 = vmatpush.msra.mxu3 %v3018_v29 }
 0x561   :  { %1526 = vmatpush.msrb.mxu0 %v2890_v25  ;;  %1546 = vmatpush.msra.mxu1 %v2893_v45  ;;  %v3737_v25 = vld [vmem:[#allocation50_spill] sm:$0xff]  ;;  %v3738_v45 = vld [vmem:[#allocation44_spill] sm:$0xff] }
 0x562   :  { %1456 = vmatpush.msra.mxu3 %v3023_v38 }
 0x563   :  { %1527 = vmatpush.msrb.mxu0 %v2897_v26  ;;  %1547 = vmatpush.msra.mxu1 %v2900_v36  ;;  %v3739_v26 = vld [vmem:[#allocation45_spill] sm:$0xff]  ;;  %v3740_v36 = vld [vmem:[#allocation51_spill] sm:$0xff] }
 0x564   :  { %1457 = vmatpush.msra.mxu3 %v3028_v39 }
 0x565   :  { %1528 = vmatpush.msrb.mxu0 %v2904_v54  ;;  %1548 = vmatpush.msra.mxu1 %v2907_v61  ;;  %v3741_v54 = vld [vmem:[#allocation46_spill] sm:$0xff]  ;;  %v3742_v61 = vld [vmem:[#allocation47_spill] sm:$0xff] }
 0x566   :  { %1458 = vmatpush.msra.mxu3 %v3033_v10 }
 0x567   :  { %1529 = vmatpush.msrb.mxu0 %v2911_v57  ;;  %1549 = vmatpush.msra.mxu1 %v2914_v59  ;;  %v3743_v57 = vld [vmem:[#allocation52_spill] sm:$0xff] }
 0x568   :  { %1459 = vmatpush.msra.mxu3 %v3038_v11  ;;  %v3744_v59 = vld [vmem:[#allocation48_spill] sm:$0xff] }
 0x569   :  { %1530 = vmatpush.msrb.mxu0 %v2918_v60  ;;  %1550 = vmatpush.msra.mxu1 %v2921_v22  ;;  %v3745_v60 = vld [vmem:[#allocation49_spill] sm:$0xff] }
 0x56a   :  { %1460 = vmatpush.msra.mxu3 %v3043_v44 }
 0x56b   :  { %1531 = vmatpush.msrb.mxu0 %v2925_v63  ;;  %1551 = vmatpush.msra.mxu1 %v2928_v23  ;;  %v3746_v63 = vld [vmem:[#allocation27_spill] sm:$0xff]  ;;  %v3747_v23 = vld [vmem:[#allocation18_spill] sm:$0xff] }
 0x56c   :  { %1461 = vmatpush.msra.mxu3 %v3048_v46 }
 0x56d   :  { %1532 = vmatpush.msrb.mxu0 %v2932_v1  ;;  %1552 = vmatpush.msra.mxu1 %v2935_v50  ;;  %v400_v1 = vadd.f32 %v3747_v23, %v3746_v63  ;;  %v3748_v50 = vld [vmem:[#allocation26_spill] sm:$0xff] }
 0x56e   :  { %1462 = vmatpush.msra.mxu3 %v3053_v43 }
 0x56f   :  { %1533 = vmatpush.msrb.mxu0 %v2939_v3  ;;  %1553 = vmatpush.msra.mxu1 %v2942_v16 }
 0x570   :  { %1463 = vmatpush.msra.mxu3 %v3058_v18 }
 0x571   :  { %1534 = vmatpush.msrb.mxu0 %v2946_v4  ;;  %1554 = vmatpush.msra.mxu1 %v2949_v19 }
 0x572   :  { %1464 = vmatpush.msra.mxu3 %v3063_v49 }
 0x573   :  { %1535 = vmatpush.msrb.mxu0 %v2953_v5  ;;  %1555 = vmatpush.msra.mxu1 %v2956_v9  ;;  %v3749_v5 = vld [vmem:[#allocation23_spill] sm:$0xff]  ;;  %v3750_v9 = vld [vmem:[#allocation29_spill] sm:$0xff] }
 0x574   :  { %1465 = vmatpush.msra.mxu3 %v3068_v6 }
 0x575   :  { %1536 = vmatpush.msrb.mxu0 %v2960_v7  ;;  %1556 = vmatpush.msra.mxu1 %v2963_v48  ;;  %v347_v7 = vadd.f32 %v3750_v9, %v3749_v5  ;;  %v3751_v48 = vld [vmem:[#allocation22_spill] sm:$0xff] }
 0x576   :  { %1466 = vmatpush.msra.mxu3 %v3073_v41 }
 0x577   :  { %1537 = vmatpush.msrb.mxu0 %v2967_v8  ;;  %1557 = vmatpush.msra.mxu1 %v2970_v56 }
 0x578   :  { %1467 = vmatpush.msra.mxu3 %v3078_v12 }
 0x579   :  { %1538 = vmatpush.msrb.mxu0 %v2974_v14  ;;  %1558 = vmatpush.msra.mxu1 %v3720_v53 }
 0x57a   :  { %1468 = vmatpush.msra.mxu3 %v3737_v25 }
 0x57b   :  { %1539 = vmatpush.msrb.mxu0 %v3738_v45  ;;  %1559 = vmatpush.msra.mxu1 %v3739_v26  ;;  %v453_v45 = vadd.f32 %v3752_v24, %v2760_v2 }
 0x57c   :  { %1469 = vmatpush.msra.mxu3 %v3740_v36 }
 0x57d   :  { %1540 = vmatpush.msrb.mxu0 %v3741_v54  ;;  %1560 = vmatpush.msra.mxu1 %v3742_v61 }
 0x57e   :  { %1470 = vmatpush.msra.mxu3 %v3743_v57 }
 0x57f   :  { %1541 = vmatpush.msrb.mxu0 %v3744_v59  ;;  %1561 = vmatpush.msra.mxu1 %v3745_v60 }
 0x5dc   :  { %v1230_v22 = vpop.f32.mrf.mxu0 }
 0x5dd   :  { %v1231_v3 = vadd.f32 %v1230_v22, %v3748_v50  ;;  %v1250_v62 = vpop.f32.mrf.mxu1 }
 0x5de   :  { %v1251_v31 = vadd.f32 %v1250_v62, %v2757_v33  ;;  %v3753_v62 = vld [vmem:[#allocation32_spill] sm:$0xff] }
 0x5df   :  { %v1273_v16 = vadd.f32 %v1231_v3, %v400_v1 }
 0x5e1   :  { %v1942_v4 = vmul.f32 -1.442695, %v1273_v16 }
 0x5e2   :  { %v1210_v19 = vpop.f32.mrf.mxu3 }
 0x5e3   :  { %2030 = vpow2.f32 %v1942_v4  ;;  %v1211_v8 = vadd.f32 %v1210_v19, %v3751_v48 }
 0x5e5   :  { %v1253_v56 = vadd.f32 %v1211_v8, %v347_v7  ;;  %v3311_v7 = vld [vmem:[#allocation7 + $0x168] sm:$0xff]  ;;  %v3314_v8 = vld [vmem:[#allocation7 + $0x170] sm:$0xff] }
 0x5e7   :  { %v1941_v14 = vmul.f32 -1.442695, %v1253_v56  ;;  %v3321_v56 = vld [vmem:[#allocation7 + $0x158] sm:$0xff] }
 0x5e9   :  { %v2031_v27 = vpop.eup %2030  ;;  %2032 = vpow2.f32 %v1941_v14  ;;  %v3328_v14 = vld [vmem:[#allocation7 + $0x140] sm:$0xff] }
 0x5ea   :  { %v1277_v53 = vadd.f32 1.0, %v2031_v27  ;;  %v3335_v27 = vld [vmem:[#allocation7 + $0x128] sm:$0xff] }
 0x5ec   :  { %2034 = vrcp.f32 %v1277_v53  ;;  %v1289_v26 = vand.u32 2147483648, %v1277_v53  ;;  %vm1283_vm10 = vweird.f32 %v1277_v53  ;;  %v1287_v61 = vand.u32 2147483647, %v1277_v53 }
 0x5ee   :  { %v1290_v22 = vor.u32 1.1754944e-38, %v1289_v26  ;;  %vm1288_vm12 = vcmp.eq.f32.partialorder %v1287_v61, 8.507059e+37 }
 0x5ef   :  { %v2033_v0 = vpop.eup %2032 }
 0x5f0   :  { %v1257_v13 = vadd.f32 1.0, %v2033_v0  ;;  %v3349_v0 = vld [vmem:[#allocation7 + $0xf8] sm:$0xff] }
 0x5f2   :  { %2036 = vrcp.f32 %v1257_v13  ;;  %v2035_v55 = vpop.eup %2034  ;;  %v1269_v30 = vand.u32 2147483648, %v1257_v13  ;;  %v1267_v42 = vand.u32 2147483647, %v1257_v13  ;;  %vm1263_vm6 = vweird.f32 %v1257_v13 }
 0x5f3   :  { %v1279_v47 = vmul.f32 %v2035_v55, %v1277_v53  ;;  %vm1284_vm9 = vweird.f32 %v2035_v55  ;;  %v3342_v53 = vld [vmem:[#allocation7 + $0x110] sm:$0xff] }
 0x5f4   :  { %v1270_v20 = vor.u32 1.1754944e-38, %v1269_v30  ;;  %vm1268_vm8 = vcmp.eq.f32.partialorder %v1267_v42, 8.507059e+37  ;;  %vm1285_vm11 = vmor %vm1283_vm10, %vm1284_vm9  ;;  %v3405_v30 = vld [vmem:[#allocation7 + $0x38] sm:$0xff]  ;;  %v3419_v42 = vld [vmem:[#allocation7 + $0x8] sm:$0xff] }
 0x5f5   :  { %v1280_v34 = vsub.f32 1.0, %v1279_v47  ;;  %v3370_v47 = vld [vmem:[#allocation7 + $0xb0] sm:$0xff] }
 0x5f7   :  { %v1281_v52 = vmul.f32 %v2035_v55, %v1280_v34  ;;  %v3391_v34 = vld [vmem:[#allocation7 + $0x68] sm:$0xff] }
 0x5f8   :  { %v2037_v40 = vpop.eup %2036 }
 0x5f9   :  { %v1259_v58 = vmul.f32 %v2037_v40, %v1257_v13  ;;  %vm1264_vm5 = vweird.f32 %v2037_v40  ;;  %v1282_v28 = vadd.f32 %v2035_v55, %v1281_v52  ;;  %v3356_v13 = vld [vmem:[#allocation7 + $0xe0] sm:$0xff] }
 0x5fa   :  { %vm1265_vm7 = vmor %vm1263_vm6, %vm1264_vm5  ;;  %vm1303_vm6 = vcmp.gt.s32.totalorder %v2763_v15, 7 }
 0x5fb   :  { %v1260_v37 = vsub.f32 1.0, %v1259_v58  ;;  %v1286_v60 = vsel %vm1285_vm11, %v2035_v55, %v1282_v28  ;;  %v3363_v55 = vld [vmem:[#allocation7 + $0xc8] sm:$0xff]  ;;  %v3384_v58 = vld [vmem:[#allocation7 + $0x80] sm:$0xff] }
 0x5fc   :  { %v1291_v23 = vsel %vm1288_vm12, %v1290_v22, %v1286_v60 }
 0x5fd   :  { %v1261_v35 = vmul.f32 %v2037_v40, %v1260_v37  ;;  %v1296_v1 = vsub.f32 1.0, %v1291_v23  ;;  %v1298_v4 = vmul.f32 %v1291_v23, %v3240_v17  ;;  %v3398_v37 = vld [vmem:[#allocation7 + $0x50] sm:$0xff] }
 0x5ff   :  { %v1262_v32 = vadd.f32 %v2037_v40, %v1261_v35  ;;  %v3412_v35 = vld [vmem:[#allocation7 + $0x20] sm:$0xff] }
 0x601   :  { %v1266_v21 = vsel %vm1265_vm7, %v2037_v40, %v1262_v32  ;;  %v3377_v40 = vld [vmem:[#allocation7 + $0x98] sm:$0xff]  ;;  %v350_v32 = vadd.f32 %v3753_v62, %v3749_v5 }
 0x602   :  { %v1271_v51 = vsel %vm1268_vm8, %v1270_v20, %v1266_v21  ;;  %v3754_v20 = vld [vmem:[#allocation19_spill] sm:$0xff] }
 0x603   :  { %v1293_v54 = vmul.f32 %v1271_v51, %v1251_v31  ;;  %v403_v31 = vadd.f32 %v3754_v20, %v3746_v63 }
 0x605   :  { %v1294_v59 = vadd.f32 %v1293_v54, %v453_v45 }
 0x607   :  { %2038 = vtanh.f32 %v1294_v59 }
 0x60d   :  { %v2039_v3 = vpop.eup %2038 }
 0x60e   :  { %v1297_v16 = vmul.f32 %v2039_v3, %v1296_v1 }
 0x610   :  { %v1299_v19 = vadd.f32 %v1298_v4, %v1297_v16 }
 0x612   :  { %v3305_v9 = vsel %vm1192_vm13, %v1299_v19, %v3240_v17  ;;  %v3318_v17 = vld [vmem:[#allocation7 + $0x150] sm:$0xff] }
 0x613   :  { %1320 = vmatmul.f32.vlgmr.msrb.gmra.mxu2 %v3305_v9  ;;  %1340 = vmatmul.f32.vlgmr.msrb.gmra.mxu3 %v3305_v9 }
 0x614   :  { %1360 = vmatmul.f32.vlgmr.msra.gmra.mxu0 %v3305_v9  ;;  %1566 = vmatpush.msrb.mxu2 %v3018_v29  ;;  %v3325_v29 = vld [vmem:[#allocation7 + $0x138] sm:$0xff] }
 0x615   :  { %1637 = vmatpush.msrb.mxu3 %v3311_v7  ;;  %1657 = vmatpush.msra.mxu0 %v3314_v8 }
 0x616   :  { %1567 = vmatpush.msrb.mxu2 %v3023_v38  ;;  %v3332_v38 = vld [vmem:[#allocation7 + $0x120] sm:$0xff] }
 0x617   :  { %1638 = vmatpush.msrb.mxu3 %v3318_v17  ;;  %1658 = vmatpush.msra.mxu0 %v3321_v56 }
 0x618   :  { %1568 = vmatpush.msrb.mxu2 %v3028_v39  ;;  %v3339_v39 = vld [vmem:[#allocation7 + $0x108] sm:$0xff] }
 0x619   :  { %1639 = vmatpush.msrb.mxu3 %v3325_v29  ;;  %1659 = vmatpush.msra.mxu0 %v3328_v14 }
 0x61a   :  { %1569 = vmatpush.msrb.mxu2 %v3033_v10  ;;  %v3346_v10 = vld [vmem:[#allocation7 + $0xf0] sm:$0xff] }
 0x61b   :  { %1640 = vmatpush.msrb.mxu3 %v3332_v38  ;;  %1660 = vmatpush.msra.mxu0 %v3335_v27 }
 0x61c   :  { %1570 = vmatpush.msrb.mxu2 %v3038_v11  ;;  %v3353_v11 = vld [vmem:[#allocation7 + $0xd8] sm:$0xff] }
 0x61d   :  { %1641 = vmatpush.msrb.mxu3 %v3339_v39  ;;  %1661 = vmatpush.msra.mxu0 %v3342_v53 }
 0x61e   :  { %1571 = vmatpush.msrb.mxu2 %v3043_v44  ;;  %v3360_v44 = vld [vmem:[#allocation7 + $0xc0] sm:$0xff] }
 0x61f   :  { %1642 = vmatpush.msrb.mxu3 %v3346_v10  ;;  %1662 = vmatpush.msra.mxu0 %v3349_v0 }
 0x620   :  { %1572 = vmatpush.msrb.mxu2 %v3048_v46  ;;  %v3367_v46 = vld [vmem:[#allocation7 + $0xa8] sm:$0xff] }
 0x621   :  { %1643 = vmatpush.msrb.mxu3 %v3353_v11  ;;  %1663 = vmatpush.msra.mxu0 %v3356_v13 }
 0x622   :  { %1573 = vmatpush.msrb.mxu2 %v3053_v43  ;;  %v3374_v43 = vld [vmem:[#allocation7 + $0x90] sm:$0xff] }
 0x623   :  { %1644 = vmatpush.msrb.mxu3 %v3360_v44  ;;  %1664 = vmatpush.msra.mxu0 %v3363_v55 }
 0x624   :  { %1574 = vmatpush.msrb.mxu2 %v3058_v18  ;;  %v3381_v18 = vld [vmem:[#allocation7 + $0x78] sm:$0xff] }
 0x625   :  { %1645 = vmatpush.msrb.mxu3 %v3367_v46  ;;  %1665 = vmatpush.msra.mxu0 %v3370_v47 }
 0x626   :  { %1575 = vmatpush.msrb.mxu2 %v3063_v49  ;;  %v3388_v49 = vld [vmem:[#allocation7 + $0x60] sm:$0xff] }
 0x627   :  { %1646 = vmatpush.msrb.mxu3 %v3374_v43  ;;  %1666 = vmatpush.msra.mxu0 %v3377_v40 }
 0x628   :  { %1576 = vmatpush.msrb.mxu2 %v3068_v6  ;;  %v3395_v6 = vld [vmem:[#allocation7 + $0x48] sm:$0xff] }
 0x629   :  { %1647 = vmatpush.msrb.mxu3 %v3381_v18  ;;  %1667 = vmatpush.msra.mxu0 %v3384_v58 }
 0x62a   :  { %1577 = vmatpush.msrb.mxu2 %v3073_v41  ;;  %v3402_v41 = vld [vmem:[#allocation7 + $0x30] sm:$0xff] }
 0x62b   :  { %1648 = vmatpush.msrb.mxu3 %v3388_v49  ;;  %1668 = vmatpush.msra.mxu0 %v3391_v34 }
 0x62c   :  { %1578 = vmatpush.msrb.mxu2 %v3078_v12  ;;  %v3409_v12 = vld [vmem:[#allocation7 + $0x18] sm:$0xff] }
 0x62d   :  { %1649 = vmatpush.msrb.mxu3 %v3395_v6  ;;  %1669 = vmatpush.msra.mxu0 %v3398_v37 }
 0x62e   :  { %1579 = vmatpush.msrb.mxu2 %v3737_v25  ;;  %v3416_v25 = vld [vmem:[#allocation7] sm:$0xff] }
 0x62f   :  { %1650 = vmatpush.msrb.mxu3 %v3402_v41  ;;  %1670 = vmatpush.msra.mxu0 %v3405_v30 }
 0x630   :  { %1580 = vmatpush.msrb.mxu2 %v3740_v36 }
 0x631   :  { %1651 = vmatpush.msrb.mxu3 %v3409_v12  ;;  %1671 = vmatpush.msra.mxu0 %v3412_v35 }
 0x632   :  { %1581 = vmatpush.msrb.mxu2 %v3743_v57 }
 0x633   :  { %1652 = vmatpush.msrb.mxu3 %v3416_v25  ;;  %1672 = vmatpush.msra.mxu0 %v3419_v42 }
 0x696   :  { %v1321_v52 = vpop.f32.mrf.mxu2  ;;  %v1341_v36 = vpop.f32.mrf.mxu3 }
 0x697   :  { %v1322_v21 = vadd.f32 %v1321_v52, %v3751_v48  ;;  %v1342_v57 = vadd.f32 %v1341_v36, %v3748_v50  ;;  %v1361_v36 = vpop.f32.mrf.mxu0 }
 0x699   :  { %v1364_v51 = vadd.f32 %v1322_v21, %v350_v32  ;;  %v1384_v28 = vadd.f32 %v1342_v57, %v403_v31  ;;  %v1362_v31 = vadd.f32 %v1361_v36, %v2757_v33 }
 0x69b   :  { %v1943_v24 = vmul.f32 -1.442695, %v1364_v51  ;;  %v1944_v45 = vmul.f32 -1.442695, %v1384_v28  ;;  %v3755_v28 = vld [vmem:[#allocation34_spill] sm:$0xff] }
 0x69d   :  { %2040 = vpow2.f32 %v1943_v24  ;;  %v456_v24 = vadd.f32 %v3755_v28, %v2760_v2 }
 0x69e   :  { %2042 = vpow2.f32 %v1944_v45 }
 0x6a3   :  { %v2041_v26 = vpop.eup %2040 }
 0x6a4   :  { %v2043_v54 = vpop.eup %2042  ;;  %v1368_v61 = vadd.f32 1.0, %v2041_v26 }
 0x6a5   :  { %v1388_v59 = vadd.f32 1.0, %v2043_v54 }
 0x6a6   :  { %2044 = vrcp.f32 %v1368_v61  ;;  %v1380_v16 = vand.u32 2147483648, %v1368_v61  ;;  %v1378_v52 = vand.u32 2147483647, %v1368_v61  ;;  %vm1374_vm15 = vweird.f32 %v1368_v61 }
 0x6a7   :  { %2046 = vrcp.f32 %v1388_v59  ;;  %v1400_v26 = vand.u32 2147483648, %v1388_v59  ;;  %vm1394_vm3 = vweird.f32 %v1388_v59  ;;  %v1398_v54 = vand.u32 2147483647, %v1388_v59 }
 0x6a8   :  { %v1381_v20 = vor.u32 1.1754944e-38, %v1380_v16  ;;  %vm1379_vm1 = vcmp.eq.f32.partialorder %v1378_v52, 8.507059e+37 }
 0x6a9   :  { %vm1399_vm5 = vcmp.eq.f32.partialorder %v1398_v54, 8.507059e+37  ;;  %v3758_v54 = vld [vmem:[#allocation37_spill] sm:$0xff] }
 0x6ac   :  { %v2045_v60 = vpop.eup %2044 }
 0x6ad   :  { %v2047_v22 = vpop.eup %2046  ;;  %v1370_v23 = vmul.f32 %v2045_v60, %v1368_v61  ;;  %vm1375_vm14 = vweird.f32 %v2045_v60  ;;  %v1401_v61 = vor.u32 1.1754944e-38, %v1400_v26 }
 0x6ae   :  { %v1390_v1 = vmul.f32 %v2047_v22, %v1388_v59  ;;  %vm1376_vm0 = vmor %vm1374_vm15, %vm1375_vm14  ;;  %vm1395_vm2 = vweird.f32 %v2047_v22  ;;  %v3439_v59 = vld [vmem:[#allocation7 + $0x178] sm:$0xff]  ;;  %vm1414_vm15 = vcmp.gt.s32.totalorder %v2763_v15, 8 }
 0x6af   :  { %v1371_v3 = vsub.f32 1.0, %v1370_v23  ;;  %vm1396_vm4 = vmor %vm1394_vm3, %vm1395_vm2 }
 0x6b0   :  { %v1391_v4 = vsub.f32 1.0, %v1390_v1 }
 0x6b1   :  { %v1372_v19 = vmul.f32 %v2045_v60, %v1371_v3 }
 0x6b2   :  { %v1392_v62 = vmul.f32 %v2047_v22, %v1391_v4 }
 0x6b3   :  { %v1373_v32 = vadd.f32 %v2045_v60, %v1372_v19 }
 0x6b4   :  { %v1393_v51 = vadd.f32 %v2047_v22, %v1392_v62  ;;  %v3454_v62 = vld [vmem:[#allocation7 + $0x130] sm:$0xff] }
 0x6b5   :  { %v1377_v21 = vsel %vm1376_vm0, %v2045_v60, %v1373_v32 }
 0x6b6   :  { %v1382_v57 = vsel %vm1379_vm1, %v1381_v20, %v1377_v21  ;;  %v1397_v1 = vsel %vm1396_vm4, %v2047_v22, %v1393_v51  ;;  %v3444_v22 = vld [vmem:[#allocation7 + $0x160] sm:$0xff] }
 0x6b7   :  { %v1404_v45 = vmul.f32 %v1382_v57, %v1362_v31  ;;  %v1402_v3 = vsel %vm1399_vm5, %v1401_v61, %v1397_v1 }
 0x6b8   :  { %v1407_v16 = vsub.f32 1.0, %v1402_v3  ;;  %v1409_v19 = vmul.f32 %v1402_v3, %v3305_v9 }
 0x6b9   :  { %v1405_v23 = vadd.f32 %v1404_v45, %v456_v24 }
 0x6bb   :  { %2048 = vtanh.f32 %v1405_v23  ;;  %v459_v23 = vadd.f32 %v3758_v54, %v2760_v2 }
 0x6c1   :  { %v2049_v60 = vpop.eup %2048 }
 0x6c2   :  { %v1408_v4 = vmul.f32 %v2049_v60, %v1407_v16 }
 0x6c4   :  { %v1410_v52 = vadd.f32 %v1409_v19, %v1408_v4 }
 0x6c6   :  { %v3434_v36 = vsel %vm1303_vm6, %v1410_v52, %v3305_v9  ;;  %v3449_v9 = vld [vmem:[#allocation7 + $0x148] sm:$0xff] }
 0x6c7   :  { %1431 = vmatmul.f32.vlgmr.msrb.gmra.mxu1 %v3434_v36  ;;  %1451 = vmatmul.f32.vlgmr.msra.gmra.mxu2 %v3434_v36 }
 0x6c8   :  { %1471 = vmatmul.f32.vlgmr.msra.gmra.mxu3 %v3434_v36  ;;  %1677 = vmatpush.msrb.mxu1 %v3439_v59 }
 0x6c9   :  { %1748 = vmatpush.msra.mxu2 %v3311_v7  ;;  %1768 = vmatpush.msra.mxu3 %v3314_v8  ;;  %v3459_v7 = vld [vmem:[#allocation7 + $0x118] sm:$0xff]  ;;  %v3464_v8 = vld [vmem:[#allocation7 + $0x100] sm:$0xff] }
 0x6ca   :  { %1678 = vmatpush.msrb.mxu1 %v3444_v22 }
 0x6cb   :  { %1749 = vmatpush.msra.mxu2 %v3318_v17  ;;  %1769 = vmatpush.msra.mxu3 %v3321_v56  ;;  %v3469_v17 = vld [vmem:[#allocation7 + $0xe8] sm:$0xff]  ;;  %v3474_v56 = vld [vmem:[#allocation7 + $0xd0] sm:$0xff] }
 0x6cc   :  { %1679 = vmatpush.msrb.mxu1 %v3449_v9 }
 0x6cd   :  { %1750 = vmatpush.msra.mxu2 %v3325_v29  ;;  %1770 = vmatpush.msra.mxu3 %v3328_v14  ;;  %v3479_v29 = vld [vmem:[#allocation7 + $0xb8] sm:$0xff]  ;;  %v3484_v14 = vld [vmem:[#allocation7 + $0xa0] sm:$0xff] }
 0x6ce   :  { %1680 = vmatpush.msrb.mxu1 %v3454_v62 }
 0x6cf   :  { %1751 = vmatpush.msra.mxu2 %v3332_v38  ;;  %1771 = vmatpush.msra.mxu3 %v3335_v27  ;;  %v3489_v38 = vld [vmem:[#allocation7 + $0x88] sm:$0xff]  ;;  %v3494_v27 = vld [vmem:[#allocation7 + $0x70] sm:$0xff] }
 0x6d0   :  { %1681 = vmatpush.msrb.mxu1 %v3459_v7 }
 0x6d1   :  { %1752 = vmatpush.msra.mxu2 %v3339_v39  ;;  %1772 = vmatpush.msra.mxu3 %v3342_v53  ;;  %v3499_v39 = vld [vmem:[#allocation7 + $0x58] sm:$0xff]  ;;  %v3504_v53 = vld [vmem:[#allocation7 + $0x40] sm:$0xff] }
 0x6d2   :  { %1682 = vmatpush.msrb.mxu1 %v3464_v8 }
 0x6d3   :  { %1753 = vmatpush.msra.mxu2 %v3346_v10  ;;  %1773 = vmatpush.msra.mxu3 %v3349_v0  ;;  %v3509_v10 = vld [vmem:[#allocation7 + $0x28] sm:$0xff]  ;;  %v3514_v0 = vld [vmem:[#allocation7 + $0x10] sm:$0xff] }
 0x6d4   :  { %1683 = vmatpush.msrb.mxu1 %v3469_v17 }
 0x6d5   :  { %1754 = vmatpush.msra.mxu2 %v3353_v11  ;;  %1774 = vmatpush.msra.mxu3 %v3356_v13  ;;  %v3756_v13 = vld [vmem:[#allocation35_spill] sm:$0xff] }
 0x6d6   :  { %1684 = vmatpush.msrb.mxu1 %v3474_v56 }
 0x6d7   :  { %1755 = vmatpush.msra.mxu2 %v3360_v44  ;;  %1775 = vmatpush.msra.mxu3 %v3363_v55  ;;  %v353_v44 = vadd.f32 %v3756_v13, %v3749_v5 }
 0x6d8   :  { %1685 = vmatpush.msrb.mxu1 %v3479_v29 }
 0x6d9   :  { %1756 = vmatpush.msra.mxu2 %v3367_v46  ;;  %1776 = vmatpush.msra.mxu3 %v3370_v47 }
 0x6da   :  { %1686 = vmatpush.msrb.mxu1 %v3484_v14 }
 0x6db   :  { %1757 = vmatpush.msra.mxu2 %v3374_v43  ;;  %1777 = vmatpush.msra.mxu3 %v3377_v40  ;;  %v3757_v40 = vld [vmem:[#allocation30_spill] sm:$0xff] }
 0x6dc   :  { %1687 = vmatpush.msrb.mxu1 %v3489_v38 }
 0x6dd   :  { %1758 = vmatpush.msra.mxu2 %v3381_v18  ;;  %1778 = vmatpush.msra.mxu3 %v3384_v58  ;;  %v406_v18 = vadd.f32 %v3757_v40, %v3746_v63 }
 0x6de   :  { %1688 = vmatpush.msrb.mxu1 %v3494_v27 }
 0x6df   :  { %1759 = vmatpush.msra.mxu2 %v3388_v49  ;;  %1779 = vmatpush.msra.mxu3 %v3391_v34 }
 0x6e0   :  { %1689 = vmatpush.msrb.mxu1 %v3499_v39 }
 0x6e1   :  { %1760 = vmatpush.msra.mxu2 %v3395_v6  ;;  %1780 = vmatpush.msra.mxu3 %v3398_v37 }
 0x6e2   :  { %1690 = vmatpush.msrb.mxu1 %v3504_v53 }
 0x6e3   :  { %1761 = vmatpush.msra.mxu2 %v3402_v41  ;;  %1781 = vmatpush.msra.mxu3 %v3405_v30 }
 0x6e4   :  { %1691 = vmatpush.msrb.mxu1 %v3509_v10 }
 0x6e5   :  { %1762 = vmatpush.msra.mxu2 %v3409_v12  ;;  %1782 = vmatpush.msra.mxu3 %v3412_v35 }
 0x6e6   :  { %1692 = vmatpush.msrb.mxu1 %v3514_v0 }
 0x6e7   :  { %1763 = vmatpush.msra.mxu2 %v3416_v25  ;;  %1783 = vmatpush.msra.mxu3 %v3419_v42 }
 0x744   :  { %v1432_v11 = vpop.f32.mrf.mxu1 }
 0x745   :  { %v1433_v55 = vadd.f32 %v1432_v11, %v3751_v48 }
 0x747   :  { %v1475_v46 = vadd.f32 %v1433_v55, %v353_v44 }
 0x749   :  { %v1945_v47 = vmul.f32 -1.442695, %v1475_v46 }
 0x74a   :  { %v1452_v43 = vpop.f32.mrf.mxu2 }
 0x74b   :  { %2050 = vpow2.f32 %v1945_v47  ;;  %v1453_v58 = vadd.f32 %v1452_v43, %v3748_v50  ;;  %v1472_v21 = vpop.f32.mrf.mxu3 }
 0x74c   :  { %v1473_v45 = vadd.f32 %v1472_v21, %v2757_v33 }
 0x74d   :  { %v1495_v49 = vadd.f32 %v1453_v58, %v406_v18 }
 0x74f   :  { %v1946_v34 = vmul.f32 -1.442695, %v1495_v49 }
 0x751   :  { %v2051_v6 = vpop.eup %2050  ;;  %2052 = vpow2.f32 %v1946_v34 }
 0x752   :  { %v1479_v37 = vadd.f32 1.0, %v2051_v6 }
 0x754   :  { %2054 = vrcp.f32 %v1479_v37  ;;  %v1491_v42 = vand.u32 2147483648, %v1479_v37  ;;  %v1489_v20 = vand.u32 2147483647, %v1479_v37  ;;  %vm1485_vm8 = vweird.f32 %v1479_v37 }
 0x756   :  { %v1492_v28 = vor.u32 1.1754944e-38, %v1491_v42  ;;  %vm1490_vm10 = vcmp.eq.f32.partialorder %v1489_v20, 8.507059e+37 }
 0x757   :  { %v2053_v41 = vpop.eup %2052 }
 0x758   :  { %v1499_v30 = vadd.f32 1.0, %v2053_v41 }
 0x75a   :  { %v2055_v12 = vpop.eup %2054  ;;  %2056 = vrcp.f32 %v1499_v30  ;;  %v1511_v3 = vand.u32 2147483648, %v1499_v30  ;;  %v1509_v60 = vand.u32 2147483647, %v1499_v30  ;;  %vm1505_vm12 = vweird.f32 %v1499_v30 }
 0x75b   :  { %v1481_v35 = vmul.f32 %v2055_v12, %v1479_v37  ;;  %vm1486_vm7 = vweird.f32 %v2055_v12 }
 0x75c   :  { %vm1487_vm9 = vmor %vm1485_vm8, %vm1486_vm7  ;;  %v1512_v52 = vor.u32 1.1754944e-38, %v1511_v3  ;;  %vm1510_vm14 = vcmp.eq.f32.partialorder %v1509_v60, 8.507059e+37  ;;  %vm1525_vm8 = vcmp.gt.s32.totalorder %v2763_v15, 9 }
 0x75d   :  { %v1482_v25 = vsub.f32 1.0, %v1481_v35 }
 0x75f   :  { %v1483_v32 = vmul.f32 %v2055_v12, %v1482_v25 }
 0x760   :  { %v2057_v31 = vpop.eup %2056 }
 0x761   :  { %v1501_v57 = vmul.f32 %v2057_v31, %v1499_v30  ;;  %v1484_v51 = vadd.f32 %v2055_v12, %v1483_v32  ;;  %vm1506_vm11 = vweird.f32 %v2057_v31 }
 0x762   :  { %vm1507_vm13 = vmor %vm1505_vm12, %vm1506_vm11 }
 0x763   :  { %v1502_v24 = vsub.f32 1.0, %v1501_v57  ;;  %v1488_v26 = vsel %vm1487_vm9, %v2055_v12, %v1484_v51  ;;  %v3761_v57 = vld [vmem:[#allocation40_spill] sm:$0xff] }
 0x764   :  { %v1493_v1 = vsel %vm1490_vm10, %v1492_v28, %v1488_v26  ;;  %v462_v51 = vadd.f32 %v3761_v57, %v2760_v2 }
 0x765   :  { %v1503_v61 = vmul.f32 %v2057_v31, %v1502_v24  ;;  %v1515_v16 = vmul.f32 %v1493_v1, %v1473_v45 }
 0x767   :  { %v1504_v4 = vadd.f32 %v2057_v31, %v1503_v61  ;;  %v1516_v19 = vadd.f32 %v1515_v16, %v459_v23 }
 0x769   :  { %v1508_v11 = vsel %vm1507_vm13, %v2057_v31, %v1504_v4  ;;  %2058 = vtanh.f32 %v1516_v19 }
 0x76a   :  { %v1513_v13 = vsel %vm1510_vm14, %v1512_v52, %v1508_v11  ;;  %v3762_v11 = vld [vmem:[#allocation36_spill] sm:$0xff] }
 0x76b   :  { %v1518_v44 = vsub.f32 1.0, %v1513_v13  ;;  %v1520_v47 = vmul.f32 %v1513_v13, %v3434_v36  ;;  %v412_v13 = vadd.f32 %v3762_v11, %v3746_v63 }
 0x76f   :  { %v2059_v55 = vpop.eup %2058 }
 0x770   :  { %v1519_v46 = vmul.f32 %v2059_v55, %v1518_v44 }
 0x772   :  { %v1521_v43 = vadd.f32 %v1520_v47, %v1519_v46 }
 0x774   :  { %v3531_v40 = vsel %vm1414_vm15, %v1521_v43, %v3434_v36  ;;  %v3763_v43 = vld [vmem:[#allocation24_spill] sm:$0xff] }
 0x775   :  { %1542 = vmatmul.f32.vlgmr.msrb.gmra.mxu0 %v3531_v40  ;;  %1562 = vmatmul.f32.vlgmr.msra.gmra.mxu1 %v3531_v40 }
 0x776   :  { %1582 = vmatmul.f32.vlgmr.msrb.gmra.mxu2 %v3531_v40  ;;  %1788 = vmatpush.msrb.mxu0 %v3439_v59 }
 0x778   :  { %1789 = vmatpush.msrb.mxu0 %v3444_v22  ;;  %v3759_v22 = vld [vmem:[#allocation38_spill] sm:$0xff] }
 0x77a   :  { %1790 = vmatpush.msrb.mxu0 %v3449_v9  ;;  %v356_v9 = vadd.f32 %v3759_v22, %v3749_v5 }
 0x77c   :  { %1791 = vmatpush.msrb.mxu0 %v3454_v62  ;;  %v3760_v62 = vld [vmem:[#allocation33_spill] sm:$0xff] }
 0x77e   :  { %1792 = vmatpush.msrb.mxu0 %v3459_v7  ;;  %v409_v7 = vadd.f32 %v3760_v62, %v3746_v63 }
 0x780   :  { %1793 = vmatpush.msrb.mxu0 %v3464_v8 }
 0x782   :  { %1794 = vmatpush.msrb.mxu0 %v3469_v17 }
 0x784   :  { %1795 = vmatpush.msrb.mxu0 %v3474_v56 }
 0x786   :  { %1796 = vmatpush.msrb.mxu0 %v3479_v29 }
 0x788   :  { %1797 = vmatpush.msrb.mxu0 %v3484_v14 }
 0x78a   :  { %1798 = vmatpush.msrb.mxu0 %v3489_v38 }
 0x78c   :  { %1799 = vmatpush.msrb.mxu0 %v3494_v27 }
 0x78e   :  { %1800 = vmatpush.msrb.mxu0 %v3499_v39 }
 0x790   :  { %1801 = vmatpush.msrb.mxu0 %v3504_v53 }
 0x792   :  { %1802 = vmatpush.msrb.mxu0 %v3509_v10 }
 0x794   :  { %1803 = vmatpush.msrb.mxu0 %v3514_v0 }
 0x7f2   :  { %v1543_v36 = vpop.f32.mrf.mxu0  ;;  %v1563_v59 = vpop.f32.mrf.mxu1 }
 0x7f3   :  { %v1544_v8 = vadd.f32 %v1543_v36, %v3751_v48  ;;  %v1564_v17 = vadd.f32 %v1563_v59, %v3748_v50  ;;  %v359_v36 = vadd.f32 %v3763_v43, %v3749_v5 }
 0x7f5   :  { %v1586_v56 = vadd.f32 %v1544_v8, %v356_v9  ;;  %v1606_v29 = vadd.f32 %v1564_v17, %v409_v7 }
 0x7f7   :  { %v1947_v14 = vmul.f32 -1.442695, %v1586_v56  ;;  %v1948_v38 = vmul.f32 -1.442695, %v1606_v29 }
 0x7f9   :  { %2060 = vpow2.f32 %v1947_v14  ;;  %v1583_v35 = vpop.f32.mrf.mxu2 }
 0x7fa   :  { %2062 = vpow2.f32 %v1948_v38  ;;  %v1584_v32 = vadd.f32 %v1583_v35, %v2757_v33 }
 0x7ff   :  { %v2061_v27 = vpop.eup %2060 }
 0x800   :  { %v2063_v39 = vpop.eup %2062  ;;  %v1590_v53 = vadd.f32 1.0, %v2061_v27 }
 0x801   :  { %v1610_v10 = vadd.f32 1.0, %v2063_v39 }
 0x802   :  { %2064 = vrcp.f32 %v1590_v53  ;;  %v1602_v37 = vand.u32 2147483648, %v1590_v53  ;;  %v1600_v30 = vand.u32 2147483647, %v1590_v53  ;;  %vm1596_vm1 = vweird.f32 %v1590_v53 }
 0x803   :  { %2066 = vrcp.f32 %v1610_v10  ;;  %v1622_v28 = vand.u32 2147483648, %v1610_v10  ;;  %vm1616_vm5 = vweird.f32 %v1610_v10  ;;  %v1620_v45 = vand.u32 2147483647, %v1610_v10 }
 0x804   :  { %v1603_v42 = vor.u32 1.1754944e-38, %v1602_v37  ;;  %vm1601_vm3 = vcmp.eq.f32.partialorder %v1600_v30, 8.507059e+37  ;;  %v3764_v30 = vld [vmem:[#allocation41_spill] sm:$0xff] }
 0x805   :  { %v1623_v23 = vor.u32 1.1754944e-38, %v1622_v28  ;;  %vm1621_vm7 = vcmp.eq.f32.partialorder %v1620_v45, 8.507059e+37 }
 0x808   :  { %v2065_v0 = vpop.eup %2064 }
 0x809   :  { %v2067_v18 = vpop.eup %2066  ;;  %v1592_v58 = vmul.f32 %v2065_v0, %v1590_v53  ;;  %vm1597_vm0 = vweird.f32 %v2065_v0 }
 0x80a   :  { %v1612_v49 = vmul.f32 %v2067_v18, %v1610_v10  ;;  %vm1598_vm2 = vmor %vm1596_vm1, %vm1597_vm0  ;;  %vm1617_vm4 = vweird.f32 %v2067_v18  ;;  %vm1636_vm1 = vcmp.gt.s32.totalorder %v2763_v15, 10 }
 0x80b   :  { %v1593_v34 = vsub.f32 1.0, %v1592_v58  ;;  %vm1618_vm6 = vmor %vm1616_vm5, %vm1617_vm4 }
 0x80c   :  { %v1613_v6 = vsub.f32 1.0, %v1612_v49 }
 0x80d   :  { %v1594_v41 = vmul.f32 %v2065_v0, %v1593_v34 }
 0x80e   :  { %v1614_v12 = vmul.f32 %v2067_v18, %v1613_v6 }
 0x80f   :  { %v1595_v25 = vadd.f32 %v2065_v0, %v1594_v41 }
 0x810   :  { %v1615_v21 = vadd.f32 %v2067_v18, %v1614_v12  ;;  %v465_v12 = vadd.f32 %v3764_v30, %v2760_v2 }
 0x811   :  { %v1599_v20 = vsel %vm1598_vm2, %v2065_v0, %v1595_v25 }
 0x812   :  { %v1604_v31 = vsel %vm1601_vm3, %v1603_v42, %v1599_v20  ;;  %v1619_v54 = vsel %vm1618_vm6, %v2067_v18, %v1615_v21 }
 0x813   :  { %v1626_v24 = vmul.f32 %v1604_v31, %v1584_v32  ;;  %v1624_v1 = vsel %vm1621_vm7, %v1623_v23, %v1619_v54 }
 0x814   :  { %v1629_v61 = vsub.f32 1.0, %v1624_v1  ;;  %v1631_v60 = vmul.f32 %v1624_v1, %v3531_v40  ;;  %v3765_v1 = vld [vmem:[#allocation25_spill] sm:$0xff] }
 0x815   :  { %v1627_v26 = vadd.f32 %v1626_v24, %v462_v51 }
 0x817   :  { %2068 = vtanh.f32 %v1627_v26 }
 0x81d   :  { %v2069_v3 = vpop.eup %2068 }
 0x81e   :  { %v1630_v16 = vmul.f32 %v2069_v3, %v1629_v61  ;;  %v362_v61 = vadd.f32 %v3765_v1, %v3749_v5  ;;  %v3766_v3 = vld [vmem:[#allocation39_spill] sm:$0xff] }
 0x820   :  { %v1632_v4 = vadd.f32 %v1631_v60, %v1630_v16  ;;  %v415_v16 = vadd.f32 %v3766_v3, %v3746_v63 }
 0x822   :  { %v3564_v19 = vsel %vm1525_vm8, %v1632_v4, %v3531_v40 }
 0x823   :  { %1653 = vmatmul.f32.vlgmr.msrb.gmra.mxu3 %v3564_v19  ;;  %1673 = vmatmul.f32.vlgmr.msra.gmra.mxu0 %v3564_v19 }
 0x824   :  { %1693 = vmatmul.f32.vlgmr.msrb.gmra.mxu1 %v3564_v19 }
 0x8a0   :  { %v1674_v52 = vpop.f32.mrf.mxu0 }
 0x8a1   :  { %v1675_v44 = vadd.f32 %v1674_v52, %v3748_v50  ;;  %v1694_v18 = vpop.f32.mrf.mxu1 }
 0x8a2   :  { %v1695_v34 = vadd.f32 %v1694_v18, %v2757_v33 }
 0x8a3   :  { %v1717_v55 = vadd.f32 %v1675_v44, %v412_v13 }
 0x8a5   :  { %v1950_v46 = vmul.f32 -1.442695, %v1717_v55 }
 0x8a6   :  { %v1654_v47 = vpop.f32.mrf.mxu3 }
 0x8a7   :  { %2070 = vpow2.f32 %v1950_v46  ;;  %v1655_v40 = vadd.f32 %v1654_v47, %v3751_v48 }
 0x8a9   :  { %v1697_v59 = vadd.f32 %v1655_v40, %v359_v36 }
 0x8ab   :  { %v1949_v22 = vmul.f32 -1.442695, %v1697_v59 }
 0x8ad   :  { %v2071_v9 = vpop.eup %2070  ;;  %2072 = vpow2.f32 %v1949_v22 }
 0x8ae   :  { %v1721_v62 = vadd.f32 1.0, %v2071_v9 }
 0x8b0   :  { %2074 = vrcp.f32 %v1721_v62  ;;  %v1733_v35 = vand.u32 2147483648, %v1721_v62  ;;  %vm1727_vm14 = vweird.f32 %v1721_v62  ;;  %v1731_v42 = vand.u32 2147483647, %v1721_v62 }
 0x8b2   :  { %v1734_v31 = vor.u32 1.1754944e-38, %v1733_v35  ;;  %vm1732_vm0 = vcmp.eq.f32.partialorder %v1731_v42, 8.507059e+37 }
 0x8b3   :  { %v2073_v7 = vpop.eup %2072 }
 0x8b4   :  { %v1701_v8 = vadd.f32 1.0, %v2073_v7 }
 0x8b6   :  { %2076 = vrcp.f32 %v1701_v8  ;;  %v2075_v17 = vpop.eup %2074  ;;  %v1713_v39 = vand.u32 2147483648, %v1701_v8  ;;  %v1711_v10 = vand.u32 2147483647, %v1701_v8  ;;  %vm1707_vm10 = vweird.f32 %v1701_v8 }
 0x8b7   :  { %v1723_v56 = vmul.f32 %v2075_v17, %v1721_v62  ;;  %vm1728_vm13 = vweird.f32 %v2075_v17 }
 0x8b8   :  { %v1714_v49 = vor.u32 1.1754944e-38, %v1713_v39  ;;  %vm1712_vm12 = vcmp.eq.f32.partialorder %v1711_v10, 8.507059e+37  ;;  %vm1729_vm15 = vmor %vm1727_vm14, %vm1728_vm13 }
 0x8b9   :  { %v1724_v38 = vsub.f32 1.0, %v1723_v56 }
 0x8bb   :  { %v1725_v0 = vmul.f32 %v2075_v17, %v1724_v38  ;;  %v3767_v38 = vld [vmem:[#allocation42_spill] sm:$0xff] }
 0x8bc   :  { %v2077_v29 = vpop.eup %2076 }
 0x8bd   :  { %v1703_v14 = vmul.f32 %v2077_v29, %v1701_v8  ;;  %vm1708_vm9 = vweird.f32 %v2077_v29  ;;  %v1726_v41 = vadd.f32 %v2075_v17, %v1725_v0 }
 0x8be   :  { %vm1709_vm11 = vmor %vm1707_vm10, %vm1708_vm9  ;;  %vm1747_vm10 = vcmp.gt.s32.totalorder %v2763_v15, 11 }
 0x8bf   :  { %v1704_v27 = vsub.f32 1.0, %v1703_v14  ;;  %v1730_v20 = vsel %vm1729_vm15, %v2075_v17, %v1726_v41 }
 0x8c0   :  { %v1735_v21 = vsel %vm1732_vm0, %v1734_v31, %v1730_v20 }
 0x8c1   :  { %v1705_v53 = vmul.f32 %v2077_v29, %v1704_v27  ;;  %v1740_v57 = vsub.f32 1.0, %v1735_v21  ;;  %v1742_v24 = vmul.f32 %v1735_v21, %v3564_v19  ;;  %v468_v27 = vadd.f32 %v3767_v38, %v2760_v2 }
 0x8c3   :  { %v1706_v58 = vadd.f32 %v2077_v29, %v1705_v53 }
 0x8c5   :  { %v1710_v6 = vsel %vm1709_vm11, %v2077_v29, %v1706_v58 }
 0x8c6   :  { %v1715_v37 = vsel %vm1712_vm12, %v1714_v49, %v1710_v6 }
 0x8c7   :  { %v1737_v25 = vmul.f32 %v1715_v37, %v1695_v34 }
 0x8c9   :  { %v1738_v32 = vadd.f32 %v1737_v25, %v465_v12 }
 0x8cb   :  { %2078 = vtanh.f32 %v1738_v32 }
 0x8d1   :  { %v2079_v51 = vpop.eup %2078 }
 0x8d2   :  { %v1741_v28 = vmul.f32 %v2079_v51, %v1740_v57 }
 0x8d4   :  { %v1743_v45 = vadd.f32 %v1742_v24, %v1741_v28 }
 0x8d6   :  { %v3581_v26 = vsel %vm1636_vm1, %v1743_v45, %v3564_v19 }
 0x8d7   :  { %1764 = vmatmul.f32.vlgmr.msra.gmra.mxu2 %v3581_v26  ;;  %1784 = vmatmul.f32.vlgmr.msra.gmra.mxu3 %v3581_v26 }
 0x8d8   :  { %1804 = vmatmul.f32.vlgmr.msrb.gmra.mxu0 %v3581_v26 }
 0x955   :  { %v1805_v9 = vpop.f32.mrf.mxu0 }
 0x956   :  { %v1806_v17 = vadd.f32 %v1805_v9, %v2757_v33 }
 0x95a   :  { %v1765_v54 = vpop.f32.mrf.mxu2  ;;  %v1785_v23 = vpop.f32.mrf.mxu3 }
 0x95b   :  { %v1766_v60 = vadd.f32 %v1765_v54, %v3751_v48  ;;  %v1786_v4 = vadd.f32 %v1785_v23, %v3748_v50 }
 0x95d   :  { %v1808_v19 = vadd.f32 %v1766_v60, %v362_v61  ;;  %v1828_v52 = vadd.f32 %v1786_v4, %v415_v16 }
 0x95f   :  { %v1951_v11 = vmul.f32 -1.442695, %v1808_v19  ;;  %v1952_v13 = vmul.f32 -1.442695, %v1828_v52 }
 0x961   :  { %2080 = vpow2.f32 %v1951_v11 }
 0x962   :  { %2082 = vpow2.f32 %v1952_v13 }
 0x967   :  { %v2081_v44 = vpop.eup %2080 }
 0x968   :  { %v2083_v55 = vpop.eup %2082  ;;  %v1812_v46 = vadd.f32 1.0, %v2081_v44 }
 0x969   :  { %v1832_v47 = vadd.f32 1.0, %v2083_v55 }
 0x96a   :  { %2084 = vrcp.f32 %v1812_v46  ;;  %v1824_v48 = vand.u32 2147483648, %v1812_v46  ;;  %v1822_v22 = vand.u32 2147483647, %v1812_v46  ;;  %vm1818_vm3 = vweird.f32 %v1812_v46 }
 0x96b   :  { %2086 = vrcp.f32 %v1832_v47  ;;  %v1844_v39 = vand.u32 2147483648, %v1832_v47  ;;  %vm1838_vm7 = vweird.f32 %v1832_v47  ;;  %v1842_v10 = vand.u32 2147483647, %v1832_v47 }
 0x96c   :  { %v1825_v8 = vor.u32 1.1754944e-38, %v1824_v48  ;;  %vm1823_vm5 = vcmp.eq.f32.partialorder %v1822_v22, 8.507059e+37 }
 0x96d   :  { %v1845_v58 = vor.u32 1.1754944e-38, %v1844_v39  ;;  %vm1843_vm9 = vcmp.eq.f32.partialorder %v1842_v10, 8.507059e+37 }
 0x970   :  { %v2085_v5 = vpop.eup %2084 }
 0x971   :  { %v2087_v43 = vpop.eup %2086  ;;  %v1814_v36 = vmul.f32 %v2085_v5, %v1812_v46  ;;  %vm1819_vm2 = vweird.f32 %v2085_v5 }
 0x972   :  { %v1834_v63 = vmul.f32 %v2087_v43, %v1832_v47  ;;  %vm1820_vm4 = vmor %vm1818_vm3, %vm1819_vm2  ;;  %vm1839_vm6 = vweird.f32 %v2087_v43 }
 0x973   :  { %v1815_v40 = vsub.f32 1.0, %v1814_v36  ;;  %vm1840_vm8 = vmor %vm1838_vm7, %vm1839_vm6 }
 0x974   :  { %v1835_v59 = vsub.f32 1.0, %v1834_v63 }
 0x975   :  { %v1816_v50 = vmul.f32 %v2085_v5, %v1815_v40 }
 0x976   :  { %v1836_v62 = vmul.f32 %v2087_v43, %v1835_v59 }
 0x977   :  { %v1817_v7 = vadd.f32 %v2085_v5, %v1816_v50 }
 0x978   :  { %v1837_v14 = vadd.f32 %v2087_v43, %v1836_v62 }
 0x979   :  { %v1821_v56 = vsel %vm1820_vm4, %v2085_v5, %v1817_v7 }
 0x97a   :  { %v1826_v29 = vsel %vm1823_vm5, %v1825_v8, %v1821_v56  ;;  %v1841_v18 = vsel %vm1840_vm8, %v2087_v43, %v1837_v14 }
 0x97b   :  { %v1848_v53 = vmul.f32 %v1826_v29, %v1806_v17  ;;  %v1846_v49 = vsel %vm1843_vm9, %v1845_v58, %v1841_v18 }
 0x97c   :  { %v1851_v33 = vsub.f32 1.0, %v1846_v49  ;;  %v1853_v37 = vmul.f32 %v1846_v49, %v3581_v26 }
 0x97d   :  { %v1849_v0 = vadd.f32 %v1848_v53, %v468_v27 }
 0x97f   :  { %2088 = vtanh.f32 %v1849_v0 }
 0x985   :  { %v2089_v34 = vpop.eup %2088 }
 0x986   :  { %v1852_v6 = vmul.f32 %v2089_v34, %v1851_v33 }
 0x988   :  { %v1854_v2 = vadd.f32 %v1853_v37, %v1852_v6 }
 0x98a   :  { %v1857_v41 = vsel %vm1747_vm10, %v1854_v2, %v3581_v26 }
 0x98b   :  { %1858 = vst [vmem:[#allocation10] sm:$0xff] %v1857_v41 }
 0x98c   :  { %1869 = dma.vmem_to_hbm [thread:$0]  %s1865_s13, 128, %s1867_s16, [#allocation4]  }
 0x98d   :  { %2312 = dma.done.wait [#allocation4], 128  }
 0x98e   :  { %2313 = vsyncadd [#allocation4], 4294967168 }
 0x98f   :  { %1874 = vsyncpa [#allocation3], 1 }
 0x990   :  { %1875 = vsyncpa [#allocation6], 1 }
 0x991   :  { %1876 = vsyncpa [#allocation9], 1 }
 0x992   :  { %1877 = vsyncpa [#allocation4], 1 }

</bundles_post_ra>
